<compile_context>
chip_gen: v5e
topology: v5e:2x2
jax: 0.10.0
libtpu: 0.0.40
codegen_flags: <defaults>
</compile_context>

<pallas_src>
import jax
import jax.numpy as jnp
from jax import lax
from jax.experimental import pallas as pl
from jax.experimental.pallas import tpu as pltpu


# ----------------------------------------------------------------------------
# Pallas kernel: 2-layer LSTM over time + FC + ReLU + LogSoftmax
# ----------------------------------------------------------------------------
def rnn_model_kernel(
    x_ref,      # (T, E)    bf16  embedded sentence
    wih1_ref,   # (E, 8H)   bf16  layer-0 input weights  (gate layout, scaled)
    whh1_ref,   # (4H, 8H)  bf16  layer-0 hidden weights (rows [H,4H) = 0)
    b1_ref,     # (1, 8H)   f32   layer-0 bias (b_ih + b_hh, scaled)
    wih2_ref,   # (4H, 8H)  bf16  layer-1 input weights  (rows [H,4H) = 0)
    whh2_ref,   # (4H, 8H)  bf16  layer-1 hidden weights (rows [H,4H) = 0)
    b2_ref,     # (1, 8H)   f32   layer-1 bias
    wfc_ref,    # (4H, V)   bf16  fc weights (rows [H,4H) = 0)
    bfc_ref,    # (1, V)    f32   fc bias
    out_ref,    # (T, V)    f32   log-probs
    xg1_ref,    # scratch (T, 8H) f32 : hoisted layer-0 input projection
    hseq_ref,   # scratch (T, 4H) f32 : layer-1 hidden-state slabs
):
    T = x_ref.shape[0]
    GW = whh1_ref.shape[1]          # 8*H : full gate-slab width (2 chunks)
    HS = GW // 2                    # 4*H : h/c slab & chunk width (1 vreg)
    HALF = HS // 2                  # 2*H : half-chunk roll shift

    # Hoisted layer-0 input projection + bias: one well-shaped (T,E)x(E,8H)
    # matmul off the serial chain instead of T tiny matmuls inside it.
    xg1_ref[...] = (
        jnp.dot(x_ref[...], wih1_ref[...], preferred_element_type=jnp.float32)
        + b1_ref[...]
    )

    # Hoist weight loads out of the recurrence.
    whh1 = whh1_ref[...]
    wih2 = wih2_ref[...]
    whh2 = whh2_ref[...]
    b2 = b2_ref[...]

    def lstm_cell(gates, c):
        # gates: (1, 8H) pre-activations, chunk A = [i|0|g|0], B = [f|0|o|0];
        # i/f/o columns & biases were pre-scaled by 0.5 so ONE tanh per chunk
        # gives sigmoid(a) = 0.5 + 0.5*tanh(a/2) and tanh(a) for the g gate.
        # c: (1, 4H) slab, real cell state in lanes [0, H); remaining lanes
        # hold bounded junk that the zero weight rows annihilate exactly.
        ga = gates[:, :HS]                        # vreg-aligned chunk split
        gb = gates[:, HS:]
        ta = jnp.tanh(ga)                         # one EUP op per chunk
        tb = jnp.tanh(gb)
        sa = 0.5 + 0.5 * ta                       # lanes [0,H): sigmoid(i)
        sb = 0.5 + 0.5 * tb                       # lanes [0,H): sigmoid(f)
        tg = pltpu.roll(ta, shift=HALF, axis=1)   # lanes [0,H): tanh(g)
        so = pltpu.roll(sb, shift=HALF, axis=1)   # lanes [0,H): sigmoid(o)
        c_new = sb * c + sa * tg                  # lanes [0,H): c'
        h_new = so * jnp.tanh(c_new)              # lanes [0,H): h'
        return h_new, c_new

    def step(t, carry):
        h1, c1, h2, c2 = carry
        # Layer-1 hidden term depends only on h2(t-1): issue its MXU pass
        # first so it overlaps the layer-0 matmul + gate (EUP/VPU) chain.
        g2_hh = jnp.dot(h2.astype(jnp.bfloat16), whh2,
                        preferred_element_type=jnp.float32)
        # Layer 0: only the hidden matmul remains on the per-step chain.
        g1 = xg1_ref[pl.ds(t, 1), :] + jnp.dot(
            h1.astype(jnp.bfloat16), whh1, preferred_element_type=jnp.float32)
        h1, c1 = lstm_cell(g1, c1)
        # Layer 1: input matmul on the fresh h1 + the precomputed hidden term.
        g2 = (jnp.dot(h1.astype(jnp.bfloat16), wih2,
                      preferred_element_type=jnp.float32) + g2_hh + b2)
        h2, c2 = lstm_cell(g2, c2)
        hseq_ref[pl.ds(t, 1), :] = h2
        return (h1, c1, h2, c2)

    z = jnp.zeros((1, HS), jnp.float32)
    # T is static and small (16): full unroll lets the scheduler overlap the
    # independent layer-0(t+1) / layer-1(t) chains.  Cap the unroll for long
    # sequences so live gate temporaries don't spill out of the 64 vregs.
    lax.fori_loop(0, T, step, (z, z, z, z), unroll=True if T <= 32 else 8)

    # fc -> ReLU -> LogSoftmax(dim=1).  Zero rows [H,4H) of wfc annihilate the
    # junk lanes of the stored h-slabs, so the result is exact.
    # NOTE: at a production vocab this epilogue should become a V-tiled grid
    # ("parallel" axis, >=512-lane blocks) to stream wfc with double-buffering
    # and use both TensorCores on v7x; at V=128 one block is optimal.
    logits = (
        jnp.dot(hseq_ref[...].astype(jnp.bfloat16), wfc_ref[...],
                preferred_element_type=jnp.float32)
        + bfc_ref[...]
    )
    logits = jnp.maximum(logits, 0.0)
    m = jnp.max(logits, axis=1, keepdims=True)
    lse = m + jnp.log(jnp.sum(jnp.exp(logits - m), axis=1, keepdims=True))
    out_ref[...] = logits - lse


# ----------------------------------------------------------------------------
# Wrapper
# ----------------------------------------------------------------------------
def rnn_model_forward(sentence, params):
    """Mirrors RNN_model.forward(sentence, is_test=False): the sentence is
    flattened to one length-(batch*seq) sequence (PyTorch view(1,-1,E)), so the
    hidden state intentionally carries across the batch boundary."""
    emb = params["embedding"]                                   # (V, E) f32
    x = emb[sentence.reshape(-1)].astype(jnp.bfloat16)          # (T, E)
    T = x.shape[0]
    HS = params["whh1"].shape[0]      # 4*H  (h-slab width)
    GW = params["whh1"].shape[1]      # 8*H  (gate-slab width)
    V = params["wfc"].shape[1]

    args = (x, params["wih1"], params["whh1"], params["b1"],
            params["wih2"], params["whh2"], params["b2"],
            params["wfc"], params["bfc"])

    full_spec = lambda a: pl.BlockSpec(a.shape, lambda: (0,) * a.ndim)

    return pl.pallas_call(
        rnn_model_kernel,
        out_shape=jax.ShapeDtypeStruct((T, V), jnp.float32),
        in_specs=[full_spec(a) for a in args],
        out_specs=pl.BlockSpec((T, V), lambda: (0, 0)),
        scratch_shapes=[
            pltpu.VMEM((T, GW), jnp.float32),   # xg1: hoisted input projection
            pltpu.VMEM((T, HS), jnp.float32),   # hseq: layer-1 hidden slabs
        ],
        compiler_params=pltpu.CompilerParams(
            vmem_limit_bytes=32 * 1024 * 1024),
    )(*args)


# ----------------------------------------------------------------------------
# Deterministic parameter construction (matches the PyTorch module's init),
# pre-laid-out for the kernel (transposed, 2-chunk gate layout, 0.5-scaled
# i/f/o columns, bf16 weights).
# ----------------------------------------------------------------------------
def make_params(key, vocab_len, embedding_dim, lstm_hidden_dim):
    H, E, V = lstm_hidden_dim, embedding_dim, vocab_len
    keys = jax.random.split(key, 10)
    k_lstm = 1.0 / jnp.sqrt(H)                 # PyTorch LSTM default init
    w_bound = jnp.sqrt(6.0 / (H + V))          # weights_init for Linear

    def u(k, shape, bound):
        return jax.random.uniform(k, shape, jnp.float32, -bound, bound)

    # word_embedding: uniform(-1, 1)
    embedding = u(keys[0], (V, E), 1.0)
    # nn.LSTM params (gate order i, f, g, o along the 4H axis)
    w_ih_l0 = u(keys[1], (4 * H, E), k_lstm)
    w_hh_l0 = u(keys[2], (4 * H, H), k_lstm)
    b_ih_l0 = u(keys[3], (4 * H,), k_lstm)
    b_hh_l0 = u(keys[4], (4 * H,), k_lstm)
    w_ih_l1 = u(keys[5], (4 * H, H), k_lstm)
    w_hh_l1 = u(keys[6], (4 * H, H), k_lstm)
    b_ih_l1 = u(keys[7], (4 * H,), k_lstm)
    b_hh_l1 = u(keys[8], (4 * H,), k_lstm)
    # fc: Linear(H, V), weights_init -> uniform(+-w_bound), bias = 0
    w_fc = u(keys[9], (V, H), w_bound)
    b_fc = jnp.zeros((V,), jnp.float32)

    # Kernel gate layout along the 8H output axis (two 4H chunks of H-blocks):
    #   chunk A: [ i | 0 | g | 0 ]      chunk B: [ f | 0 | o | 0 ]
    # i/f/o columns & biases are pre-scaled by 0.5 (exact in fp) so the kernel
    # evaluates sigmoid via 0.5 + 0.5*tanh(a/2) with ONE tanh per chunk, and
    # every gate sits either at lanes [0,H) or a half-vreg roll away.
    def place_gates(w_t):
        """(in, 4H) [i|f|g|o] -> (in, 8H) kernel layout, i/f/o scaled by 0.5."""
        n_in = w_t.shape[0]
        out = jnp.zeros((n_in, 8 * H), jnp.float32)
        out = out.at[:, 0 * H:1 * H].set(0.5 * w_t[:, 0 * H:1 * H])  # i -> A0
        out = out.at[:, 2 * H:3 * H].set(w_t[:, 2 * H:3 * H])        # g -> A2
        out = out.at[:, 4 * H:5 * H].set(0.5 * w_t[:, 1 * H:2 * H])  # f -> B0
        out = out.at[:, 6 * H:7 * H].set(0.5 * w_t[:, 3 * H:4 * H])  # o -> B2
        return out

    def in_w(w):
        """(4H, E) -> (E, 8H) bf16 (the x input has no junk lanes)."""
        return place_gates(w.T).astype(jnp.bfloat16)

    def rec_w(w):
        """(4H, H) -> (4H, 8H) bf16: K padded to the 4H h-slab width with ZERO
        rows so the bounded junk lanes of the h/c slabs contribute exactly 0."""
        placed = place_gates(w.T)                                  # (H, 8H)
        full = jnp.zeros((4 * H, 8 * H), jnp.float32).at[:H, :].set(placed)
        return full.astype(jnp.bfloat16)

    def bias(b_ih, b_hh):
        return place_gates((b_ih + b_hh).reshape(1, 4 * H))        # (1,8H) f32

    wfc = jnp.zeros((4 * H, V), jnp.float32).at[:H, :].set(w_fc.T)

    return dict(
        embedding=embedding,
        wih1=in_w(w_ih_l0), whh1=rec_w(w_hh_l0), b1=bias(b_ih_l0, b_hh_l0),
        wih2=rec_w(w_ih_l1), whh2=rec_w(w_hh_l1), b2=bias(b_ih_l1, b_hh_l1),
        wfc=wfc.astype(jnp.bfloat16), bfc=b_fc.reshape(1, V),
    )


if __name__ == "__main__":
    batch_sz = 2
    seq_len = 8
    vocab_len = 128
    embedding_dim = 32
    lstm_hidden_dim = 32

    key = jax.random.PRNGKey(0)
    k_params, k_sent = jax.random.split(key)
    params = make_params(k_params, vocab_len, embedding_dim, lstm_hidden_dim)

    # word indices; forward folds them to one (1, batch*seq, E) sequence, so
    # (as in the PyTorch view(1,-1,E)) the hidden state carries across the
    # batch boundary — batched-M MXU use would change these semantics.
    sentence = jax.random.randint(k_sent, (batch_sz, seq_len), 0, vocab_len,
                                  dtype=jnp.int32)

    out = rnn_model_forward(sentence, params)        # (batch*seq, vocab_len)
    out = jax.block_until_ready(out)

    assert out.shape == (batch_sz * seq_len, vocab_len)
    # log-softmax rows must sum (in prob space) to ~1
    assert bool(jnp.all(jnp.abs(jnp.sum(jnp.exp(out), axis=1) - 1.0) < 1e-3))
    print("KERNEL_OK")
</pallas_src>

<mosaic_0001>
module attributes {stable_mosaic.version = 11 : i64} {
  func.func @rnn_model_kernel(%arg0: memref<16x32xbf16, #tpu.memory_space<vmem>>, %arg1: memref<32x256xbf16, #tpu.memory_space<vmem>>, %arg2: memref<128x256xbf16, #tpu.memory_space<vmem>>, %arg3: memref<1x256xf32, #tpu.memory_space<vmem>>, %arg4: memref<128x256xbf16, #tpu.memory_space<vmem>>, %arg5: memref<128x256xbf16, #tpu.memory_space<vmem>>, %arg6: memref<1x256xf32, #tpu.memory_space<vmem>>, %arg7: memref<128x128xbf16, #tpu.memory_space<vmem>>, %arg8: memref<1x128xf32, #tpu.memory_space<vmem>>, %arg9: memref<16x128xf32, #tpu.memory_space<vmem>>, %arg10: memref<16x256xf32, #tpu.memory_space<vmem>>, %arg11: memref<16x128xf32, #tpu.memory_space<vmem>>) attributes {dimension_semantics = [], scalar_prefetch = 0 : i64, scratch_operands = 2 : i64, tpu.core_type = #tpu.core_type<tc>} {
    %c0 = arith.constant 0 : index
    %c0_0 = arith.constant 0 : index
    %0 = vector.load %arg0[%c0, %c0_0] : memref<16x32xbf16, #tpu.memory_space<vmem>>, vector<16x32xbf16>
    %c0_1 = arith.constant 0 : index
    %c0_2 = arith.constant 0 : index
    %1 = vector.load %arg1[%c0_1, %c0_2] : memref<32x256xbf16, #tpu.memory_space<vmem>>, vector<32x256xbf16>
    %cst = arith.constant dense<0.000000e+00> : vector<16x256xf32>
    %2 = tpu.matmul %0, %1, %cst {dimension_numbers = #tpu.dot_dimension_numbers<[1], [0], [0], [1], [0, 0, 1, 1], [], []>} : vector<16x32xbf16>, vector<32x256xbf16>, vector<16x256xf32> -> vector<16x256xf32>
    %c0_3 = arith.constant 0 : index
    %c0_4 = arith.constant 0 : index
    %3 = vector.load %arg3[%c0_3, %c0_4] : memref<1x256xf32, #tpu.memory_space<vmem>>, vector<1x256xf32>
    %4 = vector.broadcast %3 : vector<1x256xf32> to vector<16x256xf32>
    %5 = arith.addf %2, %4 : vector<16x256xf32>
    %c0_5 = arith.constant 0 : index
    %c0_6 = arith.constant 0 : index
    %6 = vector.load %arg10[%c0_5, %c0_6] : memref<16x256xf32, #tpu.memory_space<vmem>>, vector<16x256xf32>
    tpu.vector_store %arg10[%c0_5, %c0_6], %5 {strides = array<i32>} : memref<16x256xf32, #tpu.memory_space<vmem>>, vector<16x256xf32>,
    %c0_7 = arith.constant 0 : index
    %c0_8 = arith.constant 0 : index
    %7 = vector.load %arg2[%c0_7, %c0_8] : memref<128x256xbf16, #tpu.memory_space<vmem>>, vector<128x256xbf16>
    %c0_9 = arith.constant 0 : index
    %c0_10 = arith.constant 0 : index
    %8 = vector.load %arg4[%c0_9, %c0_10] : memref<128x256xbf16, #tpu.memory_space<vmem>>, vector<128x256xbf16>
    %c0_11 = arith.constant 0 : index
    %c0_12 = arith.constant 0 : index
    %9 = vector.load %arg5[%c0_11, %c0_12] : memref<128x256xbf16, #tpu.memory_space<vmem>>, vector<128x256xbf16>
    %c0_13 = arith.constant 0 : index
    %c0_14 = arith.constant 0 : index
    %10 = vector.load %arg6[%c0_13, %c0_14] : memref<1x256xf32, #tpu.memory_space<vmem>>, vector<1x256xf32>
    %cst_15 = arith.constant 0.000000e+00 : f32
    %11 = vector.broadcast %cst_15 : f32 to vector<1x128xf32>
    %c0_i32 = arith.constant 0 : i32
    %12 = arith.truncf %11 : vector<1x128xf32> to vector<1x128xbf16>
    %cst_16 = arith.constant dense<0.000000e+00> : vector<1x256xf32>
    %13 = tpu.matmul %12, %9, %cst_16 {dimension_numbers = #tpu.dot_dimension_numbers<[1], [0], [0], [1], [0, 0, 1, 1], [], []>} : vector<1x128xbf16>, vector<128x256xbf16>, vector<1x256xf32> -> vector<1x256xf32>
    %14 = arith.index_cast %c0_i32 : i32 to index
    %c0_17 = arith.constant 0 : index
    %15 = vector.load %arg10[%14, %c0_17] : memref<16x256xf32, #tpu.memory_space<vmem>>, vector<1x256xf32>
    %16 = arith.truncf %11 : vector<1x128xf32> to vector<1x128xbf16>
    %cst_18 = arith.constant dense<0.000000e+00> : vector<1x256xf32>
    %17 = tpu.matmul %16, %7, %cst_18 {dimension_numbers = #tpu.dot_dimension_numbers<[1], [0], [0], [1], [0, 0, 1, 1], [], []>} : vector<1x128xbf16>, vector<128x256xbf16>, vector<1x256xf32> -> vector<1x256xf32>
    %18 = arith.addf %15, %17 : vector<1x256xf32>
    %19 = vector.extract_strided_slice %18 {offsets = [0, 0], sizes = [1, 128], strides = [1, 1]} : vector<1x256xf32> to vector<1x128xf32>
    %20 = vector.extract_strided_slice %18 {offsets = [0, 128], sizes = [1, 128], strides = [1, 1]} : vector<1x256xf32> to vector<1x128xf32>
    %21 = math.tanh %19 : vector<1x128xf32>
    %22 = math.tanh %20 : vector<1x128xf32>
    %cst_19 = arith.constant 5.000000e-01 : f32
    %23 = vector.broadcast %cst_19 : f32 to vector<1x128xf32>
    %24 = arith.mulf %23, %21 : vector<1x128xf32>
    %cst_20 = arith.constant 5.000000e-01 : f32
    %25 = vector.broadcast %cst_20 : f32 to vector<1x128xf32>
    %26 = arith.addf %25, %24 : vector<1x128xf32>
    %cst_21 = arith.constant 5.000000e-01 : f32
    %27 = vector.broadcast %cst_21 : f32 to vector<1x128xf32>
    %28 = arith.mulf %27, %22 : vector<1x128xf32>
    %cst_22 = arith.constant 5.000000e-01 : f32
    %29 = vector.broadcast %cst_22 : f32 to vector<1x128xf32>
    %30 = arith.addf %29, %28 : vector<1x128xf32>
    %c64_i32 = arith.constant 64 : i32
    %31 = tpu.dynamic_rotate %21 by %c64_i32 dim 1 : vector<1x128xf32>, i32 -> vector<1x128xf32>
    %c64_i32_23 = arith.constant 64 : i32
    %32 = tpu.dynamic_rotate %30 by %c64_i32_23 dim 1 : vector<1x128xf32>, i32 -> vector<1x128xf32>
    %33 = arith.mulf %30, %11 : vector<1x128xf32>
    %34 = arith.mulf %26, %31 : vector<1x128xf32>
    %35 = arith.addf %33, %34 : vector<1x128xf32>
    %36 = math.tanh %35 : vector<1x128xf32>
    %37 = arith.mulf %32, %36 : vector<1x128xf32>
    %38 = arith.truncf %37 : vector<1x128xf32> to vector<1x128xbf16>
    %cst_24 = arith.constant dense<0.000000e+00> : vector<1x256xf32>
    %39 = tpu.matmul %38, %8, %cst_24 {dimension_numbers = #tpu.dot_dimension_numbers<[1], [0], [0], [1], [0, 0, 1, 1], [], []>} : vector<1x128xbf16>, vector<128x256xbf16>, vector<1x256xf32> -> vector<1x256xf32>
    %40 = arith.addf %39, %13 : vector<1x256xf32>
    %41 = arith.addf %40, %10 : vector<1x256xf32>
    %42 = vector.extract_strided_slice %41 {offsets = [0, 0], sizes = [1, 128], strides = [1, 1]} : vector<1x256xf32> to vector<1x128xf32>
    %43 = vector.extract_strided_slice %41 {offsets = [0, 128], sizes = [1, 128], strides = [1, 1]} : vector<1x256xf32> to vector<1x128xf32>
    %44 = math.tanh %42 : vector<1x128xf32>
    %45 = math.tanh %43 : vector<1x128xf32>
    %cst_25 = arith.constant 5.000000e-01 : f32
    %46 = vector.broadcast %cst_25 : f32 to vector<1x128xf32>
    %47 = arith.mulf %46, %44 : vector<1x128xf32>
    %cst_26 = arith.constant 5.000000e-01 : f32
    %48 = vector.broadcast %cst_26 : f32 to vector<1x128xf32>
    %49 = arith.addf %48, %47 : vector<1x128xf32>
    %cst_27 = arith.constant 5.000000e-01 : f32
    %50 = vector.broadcast %cst_27 : f32 to vector<1x128xf32>
    %51 = arith.mulf %50, %45 : vector<1x128xf32>
    %cst_28 = arith.constant 5.000000e-01 : f32
    %52 = vector.broadcast %cst_28 : f32 to vector<1x128xf32>
    %53 = arith.addf %52, %51 : vector<1x128xf32>
    %c64_i32_29 = arith.constant 64 : i32
    %54 = tpu.dynamic_rotate %44 by %c64_i32_29 dim 1 : vector<1x128xf32>, i32 -> vector<1x128xf32>
    %c64_i32_30 = arith.constant 64 : i32
    %55 = tpu.dynamic_rotate %53 by %c64_i32_30 dim 1 : vector<1x128xf32>, i32 -> vector<1x128xf32>
    %56 = arith.mulf %53, %11 : vector<1x128xf32>
    %57 = arith.mulf %49, %54 : vector<1x128xf32>
    %58 = arith.addf %56, %57 : vector<1x128xf32>
    %59 = math.tanh %58 : vector<1x128xf32>
    %60 = arith.mulf %55, %59 : vector<1x128xf32>
    %61 = arith.index_cast %c0_i32 : i32 to index
    %c0_31 = arith.constant 0 : index
    %62 = vector.load %arg11[%61, %c0_31] : memref<16x128xf32, #tpu.memory_space<vmem>>, vector<1x128xf32>
    tpu.vector_store %arg11[%61, %c0_31], %60 {strides = array<i32>} : memref<16x128xf32, #tpu.memory_space<vmem>>, vector<1x128xf32>,
    %c1_i32 = arith.constant 1 : i32
    %63 = arith.truncf %60 : vector<1x128xf32> to vector<1x128xbf16>
    %cst_32 = arith.constant dense<0.000000e+00> : vector<1x256xf32>
    %64 = tpu.matmul %63, %9, %cst_32 {dimension_numbers = #tpu.dot_dimension_numbers<[1], [0], [0], [1], [0, 0, 1, 1], [], []>} : vector<1x128xbf16>, vector<128x256xbf16>, vector<1x256xf32> -> vector<1x256xf32>
    %65 = arith.index_cast %c1_i32 : i32 to index
    %c0_33 = arith.constant 0 : index
    %66 = vector.load %arg10[%65, %c0_33] : memref<16x256xf32, #tpu.memory_space<vmem>>, vector<1x256xf32>
    %67 = arith.truncf %37 : vector<1x128xf32> to vector<1x128xbf16>
    %cst_34 = arith.constant dense<0.000000e+00> : vector<1x256xf32>
    %68 = tpu.matmul %67, %7, %cst_34 {dimension_numbers = #tpu.dot_dimension_numbers<[1], [0], [0], [1], [0, 0, 1, 1], [], []>} : vector<1x128xbf16>, vector<128x256xbf16>, vector<1x256xf32> -> vector<1x256xf32>
    %69 = arith.addf %66, %68 : vector<1x256xf32>
    %70 = vector.extract_strided_slice %69 {offsets = [0, 0], sizes = [1, 128], strides = [1, 1]} : vector<1x256xf32> to vector<1x128xf32>
    %71 = vector.extract_strided_slice %69 {offsets = [0, 128], sizes = [1, 128], strides = [1, 1]} : vector<1x256xf32> to vector<1x128xf32>
    %72 = math.tanh %70 : vector<1x128xf32>
    %73 = math.tanh %71 : vector<1x128xf32>
    %cst_35 = arith.constant 5.000000e-01 : f32
    %74 = vector.broadcast %cst_35 : f32 to vector<1x128xf32>
    %75 = arith.mulf %74, %72 : vector<1x128xf32>
    %cst_36 = arith.constant 5.000000e-01 : f32
    %76 = vector.broadcast %cst_36 : f32 to vector<1x128xf32>
    %77 = arith.addf %76, %75 : vector<1x128xf32>
    %cst_37 = arith.constant 5.000000e-01 : f32
    %78 = vector.broadcast %cst_37 : f32 to vector<1x128xf32>
    %79 = arith.mulf %78, %73 : vector<1x128xf32>
    %cst_38 = arith.constant 5.000000e-01 : f32
    %80 = vector.broadcast %cst_38 : f32 to vector<1x128xf32>
    %81 = arith.addf %80, %79 : vector<1x128xf32>
    %c64_i32_39 = arith.constant 64 : i32
    %82 = tpu.dynamic_rotate %72 by %c64_i32_39 dim 1 : vector<1x128xf32>, i32 -> vector<1x128xf32>
    %c64_i32_40 = arith.constant 64 : i32
    %83 = tpu.dynamic_rotate %81 by %c64_i32_40 dim 1 : vector<1x128xf32>, i32 -> vector<1x128xf32>
    %84 = arith.mulf %81, %35 : vector<1x128xf32>
    %85 = arith.mulf %77, %82 : vector<1x128xf32>
    %86 = arith.addf %84, %85 : vector<1x128xf32>
    %87 = math.tanh %86 : vector<1x128xf32>
    %88 = arith.mulf %83, %87 : vector<1x128xf32>
    %89 = arith.truncf %88 : vector<1x128xf32> to vector<1x128xbf16>
    %cst_41 = arith.constant dense<0.000000e+00> : vector<1x256xf32>
    %90 = tpu.matmul %89, %8, %cst_41 {dimension_numbers = #tpu.dot_dimension_numbers<[1], [0], [0], [1], [0, 0, 1, 1], [], []>} : vector<1x128xbf16>, vector<128x256xbf16>, vector<1x256xf32> -> vector<1x256xf32>
    %91 = arith.addf %90, %64 : vector<1x256xf32>
    %92 = arith.addf %91, %10 : vector<1x256xf32>
    %93 = vector.extract_strided_slice %92 {offsets = [0, 0], sizes = [1, 128], strides = [1, 1]} : vector<1x256xf32> to vector<1x128xf32>
    %94 = vector.extract_strided_slice %92 {offsets = [0, 128], sizes = [1, 128], strides = [1, 1]} : vector<1x256xf32> to vector<1x128xf32>
    %95 = math.tanh %93 : vector<1x128xf32>
    %96 = math.tanh %94 : vector<1x128xf32>
    %cst_42 = arith.constant 5.000000e-01 : f32
    %97 = vector.broadcast %cst_42 : f32 to vector<1x128xf32>
    %98 = arith.mulf %97, %95 : vector<1x128xf32>
    %cst_43 = arith.constant 5.000000e-01 : f32
    %99 = vector.broadcast %cst_43 : f32 to vector<1x128xf32>
    %100 = arith.addf %99, %98 : vector<1x128xf32>
    %cst_44 = arith.constant 5.000000e-01 : f32
    %101 = vector.broadcast %cst_44 : f32 to vector<1x128xf32>
    %102 = arith.mulf %101, %96 : vector<1x128xf32>
    %cst_45 = arith.constant 5.000000e-01 : f32
    %103 = vector.broadcast %cst_45 : f32 to vector<1x128xf32>
    %104 = arith.addf %103, %102 : vector<1x128xf32>
    %c64_i32_46 = arith.constant 64 : i32
    %105 = tpu.dynamic_rotate %95 by %c64_i32_46 dim 1 : vector<1x128xf32>, i32 -> vector<1x128xf32>
    %c64_i32_47 = arith.constant 64 : i32
    %106 = tpu.dynamic_rotate %104 by %c64_i32_47 dim 1 : vector<1x128xf32>, i32 -> vector<1x128xf32>
    %107 = arith.mulf %104, %58 : vector<1x128xf32>
    %108 = arith.mulf %100, %105 : vector<1x128xf32>
    %109 = arith.addf %107, %108 : vector<1x128xf32>
    %110 = math.tanh %109 : vector<1x128xf32>
    %111 = arith.mulf %106, %110 : vector<1x128xf32>
    %112 = arith.index_cast %c1_i32 : i32 to index
    %c0_48 = arith.constant 0 : index
    %113 = vector.load %arg11[%112, %c0_48] : memref<16x128xf32, #tpu.memory_space<vmem>>, vector<1x128xf32>
    tpu.vector_store %arg11[%112, %c0_48], %111 {strides = array<i32>} : memref<16x128xf32, #tpu.memory_space<vmem>>, vector<1x128xf32>,
    %c2_i32 = arith.constant 2 : i32
    %114 = arith.truncf %111 : vector<1x128xf32> to vector<1x128xbf16>
    %cst_49 = arith.constant dense<0.000000e+00> : vector<1x256xf32>
    %115 = tpu.matmul %114, %9, %cst_49 {dimension_numbers = #tpu.dot_dimension_numbers<[1], [0], [0], [1], [0, 0, 1, 1], [], []>} : vector<1x128xbf16>, vector<128x256xbf16>, vector<1x256xf32> -> vector<1x256xf32>
    %116 = arith.index_cast %c2_i32 : i32 to index
    %c0_50 = arith.constant 0 : index
    %117 = vector.load %arg10[%116, %c0_50] : memref<16x256xf32, #tpu.memory_space<vmem>>, vector<1x256xf32>
    %118 = arith.truncf %88 : vector<1x128xf32> to vector<1x128xbf16>
    %cst_51 = arith.constant dense<0.000000e+00> : vector<1x256xf32>
    %119 = tpu.matmul %118, %7, %cst_51 {dimension_numbers = #tpu.dot_dimension_numbers<[1], [0], [0], [1], [0, 0, 1, 1], [], []>} : vector<1x128xbf16>, vector<128x256xbf16>, vector<1x256xf32> -> vector<1x256xf32>
    %120 = arith.addf %117, %119 : vector<1x256xf32>
    %121 = vector.extract_strided_slice %120 {offsets = [0, 0], sizes = [1, 128], strides = [1, 1]} : vector<1x256xf32> to vector<1x128xf32>
    %122 = vector.extract_strided_slice %120 {offsets = [0, 128], sizes = [1, 128], strides = [1, 1]} : vector<1x256xf32> to vector<1x128xf32>
    %123 = math.tanh %121 : vector<1x128xf32>
    %124 = math.tanh %122 : vector<1x128xf32>
    %cst_52 = arith.constant 5.000000e-01 : f32
    %125 = vector.broadcast %cst_52 : f32 to vector<1x128xf32>
    %126 = arith.mulf %125, %123 : vector<1x128xf32>
    %cst_53 = arith.constant 5.000000e-01 : f32
    %127 = vector.broadcast %cst_53 : f32 to vector<1x128xf32>
    %128 = arith.addf %127, %126 : vector<1x128xf32>
    %cst_54 = arith.constant 5.000000e-01 : f32
    %129 = vector.broadcast %cst_54 : f32 to vector<1x128xf32>
    %130 = arith.mulf %129, %124 : vector<1x128xf32>
    %cst_55 = arith.constant 5.000000e-01 : f32
    %131 = vector.broadcast %cst_55 : f32 to vector<1x128xf32>
    %132 = arith.addf %131, %130 : vector<1x128xf32>
    %c64_i32_56 = arith.constant 64 : i32
    %133 = tpu.dynamic_rotate %123 by %c64_i32_56 dim 1 : vector<1x128xf32>, i32 -> vector<1x128xf32>
    %c64_i32_57 = arith.constant 64 : i32
    %134 = tpu.dynamic_rotate %132 by %c64_i32_57 dim 1 : vector<1x128xf32>, i32 -> vector<1x128xf32>
    %135 = arith.mulf %132, %86 : vector<1x128xf32>
    %136 = arith.mulf %128, %133 : vector<1x128xf32>
    %137 = arith.addf %135, %136 : vector<1x128xf32>
    %138 = math.tanh %137 : vector<1x128xf32>
    %139 = arith.mulf %134, %138 : vector<1x128xf32>
    %140 = arith.truncf %139 : vector<1x128xf32> to vector<1x128xbf16>
    %cst_58 = arith.constant dense<0.000000e+00> : vector<1x256xf32>
    %141 = tpu.matmul %140, %8, %cst_58 {dimension_numbers = #tpu.dot_dimension_numbers<[1], [0], [0], [1], [0, 0, 1, 1], [], []>} : vector<1x128xbf16>, vector<128x256xbf16>, vector<1x256xf32> -> vector<1x256xf32>
    %142 = arith.addf %141, %115 : vector<1x256xf32>
    %143 = arith.addf %142, %10 : vector<1x256xf32>
    %144 = vector.extract_strided_slice %143 {offsets = [0, 0], sizes = [1, 128], strides = [1, 1]} : vector<1x256xf32> to vector<1x128xf32>
    %145 = vector.extract_strided_slice %143 {offsets = [0, 128], sizes = [1, 128], strides = [1, 1]} : vector<1x256xf32> to vector<1x128xf32>
    %146 = math.tanh %144 : vector<1x128xf32>
    %147 = math.tanh %145 : vector<1x128xf32>
    %cst_59 = arith.constant 5.000000e-01 : f32
    %148 = vector.broadcast %cst_59 : f32 to vector<1x128xf32>
    %149 = arith.mulf %148, %146 : vector<1x128xf32>
    %cst_60 = arith.constant 5.000000e-01 : f32
    %150 = vector.broadcast %cst_60 : f32 to vector<1x128xf32>
    %151 = arith.addf %150, %149 : vector<1x128xf32>
    %cst_61 = arith.constant 5.000000e-01 : f32
    %152 = vector.broadcast %cst_61 : f32 to vector<1x128xf32>
    %153 = arith.mulf %152, %147 : vector<1x128xf32>
    %cst_62 = arith.constant 5.000000e-01 : f32
    %154 = vector.broadcast %cst_62 : f32 to vector<1x128xf32>
    %155 = arith.addf %154, %153 : vector<1x128xf32>
    %c64_i32_63 = arith.constant 64 : i32
    %156 = tpu.dynamic_rotate %146 by %c64_i32_63 dim 1 : vector<1x128xf32>, i32 -> vector<1x128xf32>
    %c64_i32_64 = arith.constant 64 : i32
    %157 = tpu.dynamic_rotate %155 by %c64_i32_64 dim 1 : vector<1x128xf32>, i32 -> vector<1x128xf32>
    %158 = arith.mulf %155, %109 : vector<1x128xf32>
    %159 = arith.mulf %151, %156 : vector<1x128xf32>
    %160 = arith.addf %158, %159 : vector<1x128xf32>
    %161 = math.tanh %160 : vector<1x128xf32>
    %162 = arith.mulf %157, %161 : vector<1x128xf32>
    %163 = arith.index_cast %c2_i32 : i32 to index
    %c0_65 = arith.constant 0 : index
    %164 = vector.load %arg11[%163, %c0_65] : memref<16x128xf32, #tpu.memory_space<vmem>>, vector<1x128xf32>
    tpu.vector_store %arg11[%163, %c0_65], %162 {strides = array<i32>} : memref<16x128xf32, #tpu.memory_space<vmem>>, vector<1x128xf32>,
    %c3_i32 = arith.constant 3 : i32
    %165 = arith.truncf %162 : vector<1x128xf32> to vector<1x128xbf16>
    %cst_66 = arith.constant dense<0.000000e+00> : vector<1x256xf32>
    %166 = tpu.matmul %165, %9, %cst_66 {dimension_numbers = #tpu.dot_dimension_numbers<[1], [0], [0], [1], [0, 0, 1, 1], [], []>} : vector<1x128xbf16>, vector<128x256xbf16>, vector<1x256xf32> -> vector<1x256xf32>
    %167 = arith.index_cast %c3_i32 : i32 to index
    %c0_67 = arith.constant 0 : index
    %168 = vector.load %arg10[%167, %c0_67] : memref<16x256xf32, #tpu.memory_space<vmem>>, vector<1x256xf32>
    %169 = arith.truncf %139 : vector<1x128xf32> to vector<1x128xbf16>
    %cst_68 = arith.constant dense<0.000000e+00> : vector<1x256xf32>
    %170 = tpu.matmul %169, %7, %cst_68 {dimension_numbers = #tpu.dot_dimension_numbers<[1], [0], [0], [1], [0, 0, 1, 1], [], []>} : vector<1x128xbf16>, vector<128x256xbf16>, vector<1x256xf32> -> vector<1x256xf32>
    %171 = arith.addf %168, %170 : vector<1x256xf32>
    %172 = vector.extract_strided_slice %171 {offsets = [0, 0], sizes = [1, 128], strides = [1, 1]} : vector<1x256xf32> to vector<1x128xf32>
    %173 = vector.extract_strided_slice %171 {offsets = [0, 128], sizes = [1, 128], strides = [1, 1]} : vector<1x256xf32> to vector<1x128xf32>
    %174 = math.tanh %172 : vector<1x128xf32>
    %175 = math.tanh %173 : vector<1x128xf32>
    %cst_69 = arith.constant 5.000000e-01 : f32
    %176 = vector.broadcast %cst_69 : f32 to vector<1x128xf32>
    %177 = arith.mulf %176, %174 : vector<1x128xf32>
    %cst_70 = arith.constant 5.000000e-01 : f32
    %178 = vector.broadcast %cst_70 : f32 to vector<1x128xf32>
    %179 = arith.addf %178, %177 : vector<1x128xf32>
    %cst_71 = arith.constant 5.000000e-01 : f32
    %180 = vector.broadcast %cst_71 : f32 to vector<1x128xf32>
    %181 = arith.mulf %180, %175 : vector<1x128xf32>
    %cst_72 = arith.constant 5.000000e-01 : f32
    %182 = vector.broadcast %cst_72 : f32 to vector<1x128xf32>
    %183 = arith.addf %182, %181 : vector<1x128xf32>
    %c64_i32_73 = arith.constant 64 : i32
    %184 = tpu.dynamic_rotate %174 by %c64_i32_73 dim 1 : vector<1x128xf32>, i32 -> vector<1x128xf32>
    %c64_i32_74 = arith.constant 64 : i32
    %185 = tpu.dynamic_rotate %183 by %c64_i32_74 dim 1 : vector<1x128xf32>, i32 -> vector<1x128xf32>
    %186 = arith.mulf %183, %137 : vector<1x128xf32>
    %187 = arith.mulf %179, %184 : vector<1x128xf32>
    %188 = arith.addf %186, %187 : vector<1x128xf32>
    %189 = math.tanh %188 : vector<1x128xf32>
    %190 = arith.mulf %185, %189 : vector<1x128xf32>
    %191 = arith.truncf %190 : vector<1x128xf32> to vector<1x128xbf16>
    %cst_75 = arith.constant dense<0.000000e+00> : vector<1x256xf32>
    %192 = tpu.matmul %191, %8, %cst_75 {dimension_numbers = #tpu.dot_dimension_numbers<[1], [0], [0], [1], [0, 0, 1, 1], [], []>} : vector<1x128xbf16>, vector<128x256xbf16>, vector<1x256xf32> -> vector<1x256xf32>
    %193 = arith.addf %192, %166 : vector<1x256xf32>
    %194 = arith.addf %193, %10 : vector<1x256xf32>
    %195 = vector.extract_strided_slice %194 {offsets = [0, 0], sizes = [1, 128], strides = [1, 1]} : vector<1x256xf32> to vector<1x128xf32>
    %196 = vector.extract_strided_slice %194 {offsets = [0, 128], sizes = [1, 128], strides = [1, 1]} : vector<1x256xf32> to vector<1x128xf32>
    %197 = math.tanh %195 : vector<1x128xf32>
    %198 = math.tanh %196 : vector<1x128xf32>
    %cst_76 = arith.constant 5.000000e-01 : f32
    %199 = vector.broadcast %cst_76 : f32 to vector<1x128xf32>
    %200 = arith.mulf %199, %197 : vector<1x128xf32>
    %cst_77 = arith.constant 5.000000e-01 : f32
    %201 = vector.broadcast %cst_77 : f32 to vector<1x128xf32>
    %202 = arith.addf %201, %200 : vector<1x128xf32>
    %cst_78 = arith.constant 5.000000e-01 : f32
    %203 = vector.broadcast %cst_78 : f32 to vector<1x128xf32>
    %204 = arith.mulf %203, %198 : vector<1x128xf32>
    %cst_79 = arith.constant 5.000000e-01 : f32
    %205 = vector.broadcast %cst_79 : f32 to vector<1x128xf32>
    %206 = arith.addf %205, %204 : vector<1x128xf32>
    %c64_i32_80 = arith.constant 64 : i32
    %207 = tpu.dynamic_rotate %197 by %c64_i32_80 dim 1 : vector<1x128xf32>, i32 -> vector<1x128xf32>
    %c64_i32_81 = arith.constant 64 : i32
    %208 = tpu.dynamic_rotate %206 by %c64_i32_81 dim 1 : vector<1x128xf32>, i32 -> vector<1x128xf32>
    %209 = arith.mulf %206, %160 : vector<1x128xf32>
    %210 = arith.mulf %202, %207 : vector<1x128xf32>
    %211 = arith.addf %209, %210 : vector<1x128xf32>
    %212 = math.tanh %211 : vector<1x128xf32>
    %213 = arith.mulf %208, %212 : vector<1x128xf32>
    %214 = arith.index_cast %c3_i32 : i32 to index
    %c0_82 = arith.constant 0 : index
    %215 = vector.load %arg11[%214, %c0_82] : memref<16x128xf32, #tpu.memory_space<vmem>>, vector<1x128xf32>
    tpu.vector_store %arg11[%214, %c0_82], %213 {strides = array<i32>} : memref<16x128xf32, #tpu.memory_space<vmem>>, vector<1x128xf32>,
    %c4_i32 = arith.constant 4 : i32
    %216 = arith.truncf %213 : vector<1x128xf32> to vector<1x128xbf16>
    %cst_83 = arith.constant dense<0.000000e+00> : vector<1x256xf32>
    %217 = tpu.matmul %216, %9, %cst_83 {dimension_numbers = #tpu.dot_dimension_numbers<[1], [0], [0], [1], [0, 0, 1, 1], [], []>} : vector<1x128xbf16>, vector<128x256xbf16>, vector<1x256xf32> -> vector<1x256xf32>
    %218 = arith.index_cast %c4_i32 : i32 to index
    %c0_84 = arith.constant 0 : index
    %219 = vector.load %arg10[%218, %c0_84] : memref<16x256xf32, #tpu.memory_space<vmem>>, vector<1x256xf32>
    %220 = arith.truncf %190 : vector<1x128xf32> to vector<1x128xbf16>
    %cst_85 = arith.constant dense<0.000000e+00> : vector<1x256xf32>
    %221 = tpu.matmul %220, %7, %cst_85 {dimension_numbers = #tpu.dot_dimension_numbers<[1], [0], [0], [1], [0, 0, 1, 1], [], []>} : vector<1x128xbf16>, vector<128x256xbf16>, vector<1x256xf32> -> vector<1x256xf32>
    %222 = arith.addf %219, %221 : vector<1x256xf32>
    %223 = vector.extract_strided_slice %222 {offsets = [0, 0], sizes = [1, 128], strides = [1, 1]} : vector<1x256xf32> to vector<1x128xf32>
    %224 = vector.extract_strided_slice %222 {offsets = [0, 128], sizes = [1, 128], strides = [1, 1]} : vector<1x256xf32> to vector<1x128xf32>
    %225 = math.tanh %223 : vector<1x128xf32>
    %226 = math.tanh %224 : vector<1x128xf32>
    %cst_86 = arith.constant 5.000000e-01 : f32
    %227 = vector.broadcast %cst_86 : f32 to vector<1x128xf32>
    %228 = arith.mulf %227, %225 : vector<1x128xf32>
    %cst_87 = arith.constant 5.000000e-01 : f32
    %229 = vector.broadcast %cst_87 : f32 to vector<1x128xf32>
    %230 = arith.addf %229, %228 : vector<1x128xf32>
    %cst_88 = arith.constant 5.000000e-01 : f32
    %231 = vector.broadcast %cst_88 : f32 to vector<1x128xf32>
    %232 = arith.mulf %231, %226 : vector<1x128xf32>
    %cst_89 = arith.constant 5.000000e-01 : f32
    %233 = vector.broadcast %cst_89 : f32 to vector<1x128xf32>
    %234 = arith.addf %233, %232 : vector<1x128xf32>
    %c64_i32_90 = arith.constant 64 : i32
    %235 = tpu.dynamic_rotate %225 by %c64_i32_90 dim 1 : vector<1x128xf32>, i32 -> vector<1x128xf32>
    %c64_i32_91 = arith.constant 64 : i32
    %236 = tpu.dynamic_rotate %234 by %c64_i32_91 dim 1 : vector<1x128xf32>, i32 -> vector<1x128xf32>
    %237 = arith.mulf %234, %188 : vector<1x128xf32>
    %238 = arith.mulf %230, %235 : vector<1x128xf32>
    %239 = arith.addf %237, %238 : vector<1x128xf32>
    %240 = math.tanh %239 : vector<1x128xf32>
    %241 = arith.mulf %236, %240 : vector<1x128xf32>
    %242 = arith.truncf %241 : vector<1x128xf32> to vector<1x128xbf16>
    %cst_92 = arith.constant dense<0.000000e+00> : vector<1x256xf32>
    %243 = tpu.matmul %242, %8, %cst_92 {dimension_numbers = #tpu.dot_dimension_numbers<[1], [0], [0], [1], [0, 0, 1, 1], [], []>} : vector<1x128xbf16>, vector<128x256xbf16>, vector<1x256xf32> -> vector<1x256xf32>
    %244 = arith.addf %243, %217 : vector<1x256xf32>
    %245 = arith.addf %244, %10 : vector<1x256xf32>
    %246 = vector.extract_strided_slice %245 {offsets = [0, 0], sizes = [1, 128], strides = [1, 1]} : vector<1x256xf32> to vector<1x128xf32>
    %247 = vector.extract_strided_slice %245 {offsets = [0, 128], sizes = [1, 128], strides = [1, 1]} : vector<1x256xf32> to vector<1x128xf32>
    %248 = math.tanh %246 : vector<1x128xf32>
    %249 = math.tanh %247 : vector<1x128xf32>
    %cst_93 = arith.constant 5.000000e-01 : f32
    %250 = vector.broadcast %cst_93 : f32 to vector<1x128xf32>
    %251 = arith.mulf %250, %248 : vector<1x128xf32>
    %cst_94 = arith.constant 5.000000e-01 : f32
    %252 = vector.broadcast %cst_94 : f32 to vector<1x128xf32>
    %253 = arith.addf %252, %251 : vector<1x128xf32>
    %cst_95 = arith.constant 5.000000e-01 : f32
    %254 = vector.broadcast %cst_95 : f32 to vector<1x128xf32>
    %255 = arith.mulf %254, %249 : vector<1x128xf32>
    %cst_96 = arith.constant 5.000000e-01 : f32
    %256 = vector.broadcast %cst_96 : f32 to vector<1x128xf32>
    %257 = arith.addf %256, %255 : vector<1x128xf32>
    %c64_i32_97 = arith.constant 64 : i32
    %258 = tpu.dynamic_rotate %248 by %c64_i32_97 dim 1 : vector<1x128xf32>, i32 -> vector<1x128xf32>
    %c64_i32_98 = arith.constant 64 : i32
    %259 = tpu.dynamic_rotate %257 by %c64_i32_98 dim 1 : vector<1x128xf32>, i32 -> vector<1x128xf32>
    %260 = arith.mulf %257, %211 : vector<1x128xf32>
    %261 = arith.mulf %253, %258 : vector<1x128xf32>
    %262 = arith.addf %260, %261 : vector<1x128xf32>
    %263 = math.tanh %262 : vector<1x128xf32>
    %264 = arith.mulf %259, %263 : vector<1x128xf32>
    %265 = arith.index_cast %c4_i32 : i32 to index
    %c0_99 = arith.constant 0 : index
    %266 = vector.load %arg11[%265, %c0_99] : memref<16x128xf32, #tpu.memory_space<vmem>>, vector<1x128xf32>
    tpu.vector_store %arg11[%265, %c0_99], %264 {strides = array<i32>} : memref<16x128xf32, #tpu.memory_space<vmem>>, vector<1x128xf32>,
    %c5_i32 = arith.constant 5 : i32
    %267 = arith.truncf %264 : vector<1x128xf32> to vector<1x128xbf16>
    %cst_100 = arith.constant dense<0.000000e+00> : vector<1x256xf32>
    %268 = tpu.matmul %267, %9, %cst_100 {dimension_numbers = #tpu.dot_dimension_numbers<[1], [0], [0], [1], [0, 0, 1, 1], [], []>} : vector<1x128xbf16>, vector<128x256xbf16>, vector<1x256xf32> -> vector<1x256xf32>
    %269 = arith.index_cast %c5_i32 : i32 to index
    %c0_101 = arith.constant 0 : index
    %270 = vector.load %arg10[%269, %c0_101] : memref<16x256xf32, #tpu.memory_space<vmem>>, vector<1x256xf32>
    %271 = arith.truncf %241 : vector<1x128xf32> to vector<1x128xbf16>
    %cst_102 = arith.constant dense<0.000000e+00> : vector<1x256xf32>
    %272 = tpu.matmul %271, %7, %cst_102 {dimension_numbers = #tpu.dot_dimension_numbers<[1], [0], [0], [1], [0, 0, 1, 1], [], []>} : vector<1x128xbf16>, vector<128x256xbf16>, vector<1x256xf32> -> vector<1x256xf32>
    %273 = arith.addf %270, %272 : vector<1x256xf32>
    %274 = vector.extract_strided_slice %273 {offsets = [0, 0], sizes = [1, 128], strides = [1, 1]} : vector<1x256xf32> to vector<1x128xf32>
    %275 = vector.extract_strided_slice %273 {offsets = [0, 128], sizes = [1, 128], strides = [1, 1]} : vector<1x256xf32> to vector<1x128xf32>
    %276 = math.tanh %274 : vector<1x128xf32>
    %277 = math.tanh %275 : vector<1x128xf32>
    %cst_103 = arith.constant 5.000000e-01 : f32
    %278 = vector.broadcast %cst_103 : f32 to vector<1x128xf32>
    %279 = arith.mulf %278, %276 : vector<1x128xf32>
    %cst_104 = arith.constant 5.000000e-01 : f32
    %280 = vector.broadcast %cst_104 : f32 to vector<1x128xf32>
    %281 = arith.addf %280, %279 : vector<1x128xf32>
    %cst_105 = arith.constant 5.000000e-01 : f32
    %282 = vector.broadcast %cst_105 : f32 to vector<1x128xf32>
    %283 = arith.mulf %282, %277 : vector<1x128xf32>
    %cst_106 = arith.constant 5.000000e-01 : f32
    %284 = vector.broadcast %cst_106 : f32 to vector<1x128xf32>
    %285 = arith.addf %284, %283 : vector<1x128xf32>
    %c64_i32_107 = arith.constant 64 : i32
    %286 = tpu.dynamic_rotate %276 by %c64_i32_107 dim 1 : vector<1x128xf32>, i32 -> vector<1x128xf32>
    %c64_i32_108 = arith.constant 64 : i32
    %287 = tpu.dynamic_rotate %285 by %c64_i32_108 dim 1 : vector<1x128xf32>, i32 -> vector<1x128xf32>
    %288 = arith.mulf %285, %239 : vector<1x128xf32>
    %289 = arith.mulf %281, %286 : vector<1x128xf32>
    %290 = arith.addf %288, %289 : vector<1x128xf32>
    %291 = math.tanh %290 : vector<1x128xf32>
    %292 = arith.mulf %287, %291 : vector<1x128xf32>
    %293 = arith.truncf %292 : vector<1x128xf32> to vector<1x128xbf16>
    %cst_109 = arith.constant dense<0.000000e+00> : vector<1x256xf32>
    %294 = tpu.matmul %293, %8, %cst_109 {dimension_numbers = #tpu.dot_dimension_numbers<[1], [0], [0], [1], [0, 0, 1, 1], [], []>} : vector<1x128xbf16>, vector<128x256xbf16>, vector<1x256xf32> -> vector<1x256xf32>
    %295 = arith.addf %294, %268 : vector<1x256xf32>
    %296 = arith.addf %295, %10 : vector<1x256xf32>
    %297 = vector.extract_strided_slice %296 {offsets = [0, 0], sizes = [1, 128], strides = [1, 1]} : vector<1x256xf32> to vector<1x128xf32>
    %298 = vector.extract_strided_slice %296 {offsets = [0, 128], sizes = [1, 128], strides = [1, 1]} : vector<1x256xf32> to vector<1x128xf32>
    %299 = math.tanh %297 : vector<1x128xf32>
    %300 = math.tanh %298 : vector<1x128xf32>
    %cst_110 = arith.constant 5.000000e-01 : f32
    %301 = vector.broadcast %cst_110 : f32 to vector<1x128xf32>
    %302 = arith.mulf %301, %299 : vector<1x128xf32>
    %cst_111 = arith.constant 5.000000e-01 : f32
    %303 = vector.broadcast %cst_111 : f32 to vector<1x128xf32>
    %304 = arith.addf %303, %302 : vector<1x128xf32>
    %cst_112 = arith.constant 5.000000e-01 : f32
    %305 = vector.broadcast %cst_112 : f32 to vector<1x128xf32>
    %306 = arith.mulf %305, %300 : vector<1x128xf32>
    %cst_113 = arith.constant 5.000000e-01 : f32
    %307 = vector.broadcast %cst_113 : f32 to vector<1x128xf32>
    %308 = arith.addf %307, %306 : vector<1x128xf32>
    %c64_i32_114 = arith.constant 64 : i32
    %309 = tpu.dynamic_rotate %299 by %c64_i32_114 dim 1 : vector<1x128xf32>, i32 -> vector<1x128xf32>
    %c64_i32_115 = arith.constant 64 : i32
    %310 = tpu.dynamic_rotate %308 by %c64_i32_115 dim 1 : vector<1x128xf32>, i32 -> vector<1x128xf32>
    %311 = arith.mulf %308, %262 : vector<1x128xf32>
    %312 = arith.mulf %304, %309 : vector<1x128xf32>
    %313 = arith.addf %311, %312 : vector<1x128xf32>
    %314 = math.tanh %313 : vector<1x128xf32>
    %315 = arith.mulf %310, %314 : vector<1x128xf32>
    %316 = arith.index_cast %c5_i32 : i32 to index
    %c0_116 = arith.constant 0 : index
    %317 = vector.load %arg11[%316, %c0_116] : memref<16x128xf32, #tpu.memory_space<vmem>>, vector<1x128xf32>
    tpu.vector_store %arg11[%316, %c0_116], %315 {strides = array<i32>} : memref<16x128xf32, #tpu.memory_space<vmem>>, vector<1x128xf32>,
    %c6_i32 = arith.constant 6 : i32
    %318 = arith.truncf %315 : vector<1x128xf32> to vector<1x128xbf16>
    %cst_117 = arith.constant dense<0.000000e+00> : vector<1x256xf32>
    %319 = tpu.matmul %318, %9, %cst_117 {dimension_numbers = #tpu.dot_dimension_numbers<[1], [0], [0], [1], [0, 0, 1, 1], [], []>} : vector<1x128xbf16>, vector<128x256xbf16>, vector<1x256xf32> -> vector<1x256xf32>
    %320 = arith.index_cast %c6_i32 : i32 to index
    %c0_118 = arith.constant 0 : index
    %321 = vector.load %arg10[%320, %c0_118] : memref<16x256xf32, #tpu.memory_space<vmem>>, vector<1x256xf32>
    %322 = arith.truncf %292 : vector<1x128xf32> to vector<1x128xbf16>
    %cst_119 = arith.constant dense<0.000000e+00> : vector<1x256xf32>
    %323 = tpu.matmul %322, %7, %cst_119 {dimension_numbers = #tpu.dot_dimension_numbers<[1], [0], [0], [1], [0, 0, 1, 1], [], []>} : vector<1x128xbf16>, vector<128x256xbf16>, vector<1x256xf32> -> vector<1x256xf32>
    %324 = arith.addf %321, %323 : vector<1x256xf32>
    %325 = vector.extract_strided_slice %324 {offsets = [0, 0], sizes = [1, 128], strides = [1, 1]} : vector<1x256xf32> to vector<1x128xf32>
    %326 = vector.extract_strided_slice %324 {offsets = [0, 128], sizes = [1, 128], strides = [1, 1]} : vector<1x256xf32> to vector<1x128xf32>
    %327 = math.tanh %325 : vector<1x128xf32>
    %328 = math.tanh %326 : vector<1x128xf32>
    %cst_120 = arith.constant 5.000000e-01 : f32
    %329 = vector.broadcast %cst_120 : f32 to vector<1x128xf32>
    %330 = arith.mulf %329, %327 : vector<1x128xf32>
    %cst_121 = arith.constant 5.000000e-01 : f32
    %331 = vector.broadcast %cst_121 : f32 to vector<1x128xf32>
    %332 = arith.addf %331, %330 : vector<1x128xf32>
    %cst_122 = arith.constant 5.000000e-01 : f32
    %333 = vector.broadcast %cst_122 : f32 to vector<1x128xf32>
    %334 = arith.mulf %333, %328 : vector<1x128xf32>
    %cst_123 = arith.constant 5.000000e-01 : f32
    %335 = vector.broadcast %cst_123 : f32 to vector<1x128xf32>
    %336 = arith.addf %335, %334 : vector<1x128xf32>
    %c64_i32_124 = arith.constant 64 : i32
    %337 = tpu.dynamic_rotate %327 by %c64_i32_124 dim 1 : vector<1x128xf32>, i32 -> vector<1x128xf32>
    %c64_i32_125 = arith.constant 64 : i32
    %338 = tpu.dynamic_rotate %336 by %c64_i32_125 dim 1 : vector<1x128xf32>, i32 -> vector<1x128xf32>
    %339 = arith.mulf %336, %290 : vector<1x128xf32>
    %340 = arith.mulf %332, %337 : vector<1x128xf32>
    %341 = arith.addf %339, %340 : vector<1x128xf32>
    %342 = math.tanh %341 : vector<1x128xf32>
    %343 = arith.mulf %338, %342 : vector<1x128xf32>
    %344 = arith.truncf %343 : vector<1x128xf32> to vector<1x128xbf16>
    %cst_126 = arith.constant dense<0.000000e+00> : vector<1x256xf32>
    %345 = tpu.matmul %344, %8, %cst_126 {dimension_numbers = #tpu.dot_dimension_numbers<[1], [0], [0], [1], [0, 0, 1, 1], [], []>} : vector<1x128xbf16>, vector<128x256xbf16>, vector<1x256xf32> -> vector<1x256xf32>
    %346 = arith.addf %345, %319 : vector<1x256xf32>
    %347 = arith.addf %346, %10 : vector<1x256xf32>
    %348 = vector.extract_strided_slice %347 {offsets = [0, 0], sizes = [1, 128], strides = [1, 1]} : vector<1x256xf32> to vector<1x128xf32>
    %349 = vector.extract_strided_slice %347 {offsets = [0, 128], sizes = [1, 128], strides = [1, 1]} : vector<1x256xf32> to vector<1x128xf32>
    %350 = math.tanh %348 : vector<1x128xf32>
    %351 = math.tanh %349 : vector<1x128xf32>
    %cst_127 = arith.constant 5.000000e-01 : f32
    %352 = vector.broadcast %cst_127 : f32 to vector<1x128xf32>
    %353 = arith.mulf %352, %350 : vector<1x128xf32>
    %cst_128 = arith.constant 5.000000e-01 : f32
    %354 = vector.broadcast %cst_128 : f32 to vector<1x128xf32>
    %355 = arith.addf %354, %353 : vector<1x128xf32>
    %cst_129 = arith.constant 5.000000e-01 : f32
    %356 = vector.broadcast %cst_129 : f32 to vector<1x128xf32>
    %357 = arith.mulf %356, %351 : vector<1x128xf32>
    %cst_130 = arith.constant 5.000000e-01 : f32
    %358 = vector.broadcast %cst_130 : f32 to vector<1x128xf32>
    %359 = arith.addf %358, %357 : vector<1x128xf32>
    %c64_i32_131 = arith.constant 64 : i32
    %360 = tpu.dynamic_rotate %350 by %c64_i32_131 dim 1 : vector<1x128xf32>, i32 -> vector<1x128xf32>
    %c64_i32_132 = arith.constant 64 : i32
    %361 = tpu.dynamic_rotate %359 by %c64_i32_132 dim 1 : vector<1x128xf32>, i32 -> vector<1x128xf32>
    %362 = arith.mulf %359, %313 : vector<1x128xf32>
    %363 = arith.mulf %355, %360 : vector<1x128xf32>
    %364 = arith.addf %362, %363 : vector<1x128xf32>
    %365 = math.tanh %364 : vector<1x128xf32>
    %366 = arith.mulf %361, %365 : vector<1x128xf32>
    %367 = arith.index_cast %c6_i32 : i32 to index
    %c0_133 = arith.constant 0 : index
    %368 = vector.load %arg11[%367, %c0_133] : memref<16x128xf32, #tpu.memory_space<vmem>>, vector<1x128xf32>
    tpu.vector_store %arg11[%367, %c0_133], %366 {strides = array<i32>} : memref<16x128xf32, #tpu.memory_space<vmem>>, vector<1x128xf32>,
    %c7_i32 = arith.constant 7 : i32
    %369 = arith.truncf %366 : vector<1x128xf32> to vector<1x128xbf16>
    %cst_134 = arith.constant dense<0.000000e+00> : vector<1x256xf32>
    %370 = tpu.matmul %369, %9, %cst_134 {dimension_numbers = #tpu.dot_dimension_numbers<[1], [0], [0], [1], [0, 0, 1, 1], [], []>} : vector<1x128xbf16>, vector<128x256xbf16>, vector<1x256xf32> -> vector<1x256xf32>
    %371 = arith.index_cast %c7_i32 : i32 to index
    %c0_135 = arith.constant 0 : index
    %372 = vector.load %arg10[%371, %c0_135] : memref<16x256xf32, #tpu.memory_space<vmem>>, vector<1x256xf32>
    %373 = arith.truncf %343 : vector<1x128xf32> to vector<1x128xbf16>
    %cst_136 = arith.constant dense<0.000000e+00> : vector<1x256xf32>
    %374 = tpu.matmul %373, %7, %cst_136 {dimension_numbers = #tpu.dot_dimension_numbers<[1], [0], [0], [1], [0, 0, 1, 1], [], []>} : vector<1x128xbf16>, vector<128x256xbf16>, vector<1x256xf32> -> vector<1x256xf32>
    %375 = arith.addf %372, %374 : vector<1x256xf32>
    %376 = vector.extract_strided_slice %375 {offsets = [0, 0], sizes = [1, 128], strides = [1, 1]} : vector<1x256xf32> to vector<1x128xf32>
    %377 = vector.extract_strided_slice %375 {offsets = [0, 128], sizes = [1, 128], strides = [1, 1]} : vector<1x256xf32> to vector<1x128xf32>
    %378 = math.tanh %376 : vector<1x128xf32>
    %379 = math.tanh %377 : vector<1x128xf32>
    %cst_137 = arith.constant 5.000000e-01 : f32
    %380 = vector.broadcast %cst_137 : f32 to vector<1x128xf32>
    %381 = arith.mulf %380, %378 : vector<1x128xf32>
    %cst_138 = arith.constant 5.000000e-01 : f32
    %382 = vector.broadcast %cst_138 : f32 to vector<1x128xf32>
    %383 = arith.addf %382, %381 : vector<1x128xf32>
    %cst_139 = arith.constant 5.000000e-01 : f32
    %384 = vector.broadcast %cst_139 : f32 to vector<1x128xf32>
    %385 = arith.mulf %384, %379 : vector<1x128xf32>
    %cst_140 = arith.constant 5.000000e-01 : f32
    %386 = vector.broadcast %cst_140 : f32 to vector<1x128xf32>
    %387 = arith.addf %386, %385 : vector<1x128xf32>
    %c64_i32_141 = arith.constant 64 : i32
    %388 = tpu.dynamic_rotate %378 by %c64_i32_141 dim 1 : vector<1x128xf32>, i32 -> vector<1x128xf32>
    %c64_i32_142 = arith.constant 64 : i32
    %389 = tpu.dynamic_rotate %387 by %c64_i32_142 dim 1 : vector<1x128xf32>, i32 -> vector<1x128xf32>
    %390 = arith.mulf %387, %341 : vector<1x128xf32>
    %391 = arith.mulf %383, %388 : vector<1x128xf32>
    %392 = arith.addf %390, %391 : vector<1x128xf32>
    %393 = math.tanh %392 : vector<1x128xf32>
    %394 = arith.mulf %389, %393 : vector<1x128xf32>
    %395 = arith.truncf %394 : vector<1x128xf32> to vector<1x128xbf16>
    %cst_143 = arith.constant dense<0.000000e+00> : vector<1x256xf32>
    %396 = tpu.matmul %395, %8, %cst_143 {dimension_numbers = #tpu.dot_dimension_numbers<[1], [0], [0], [1], [0, 0, 1, 1], [], []>} : vector<1x128xbf16>, vector<128x256xbf16>, vector<1x256xf32> -> vector<1x256xf32>
    %397 = arith.addf %396, %370 : vector<1x256xf32>
    %398 = arith.addf %397, %10 : vector<1x256xf32>
    %399 = vector.extract_strided_slice %398 {offsets = [0, 0], sizes = [1, 128], strides = [1, 1]} : vector<1x256xf32> to vector<1x128xf32>
    %400 = vector.extract_strided_slice %398 {offsets = [0, 128], sizes = [1, 128], strides = [1, 1]} : vector<1x256xf32> to vector<1x128xf32>
    %401 = math.tanh %399 : vector<1x128xf32>
    %402 = math.tanh %400 : vector<1x128xf32>
    %cst_144 = arith.constant 5.000000e-01 : f32
    %403 = vector.broadcast %cst_144 : f32 to vector<1x128xf32>
    %404 = arith.mulf %403, %401 : vector<1x128xf32>
    %cst_145 = arith.constant 5.000000e-01 : f32
    %405 = vector.broadcast %cst_145 : f32 to vector<1x128xf32>
    %406 = arith.addf %405, %404 : vector<1x128xf32>
    %cst_146 = arith.constant 5.000000e-01 : f32
    %407 = vector.broadcast %cst_146 : f32 to vector<1x128xf32>
    %408 = arith.mulf %407, %402 : vector<1x128xf32>
    %cst_147 = arith.constant 5.000000e-01 : f32
    %409 = vector.broadcast %cst_147 : f32 to vector<1x128xf32>
    %410 = arith.addf %409, %408 : vector<1x128xf32>
    %c64_i32_148 = arith.constant 64 : i32
    %411 = tpu.dynamic_rotate %401 by %c64_i32_148 dim 1 : vector<1x128xf32>, i32 -> vector<1x128xf32>
    %c64_i32_149 = arith.constant 64 : i32
    %412 = tpu.dynamic_rotate %410 by %c64_i32_149 dim 1 : vector<1x128xf32>, i32 -> vector<1x128xf32>
    %413 = arith.mulf %410, %364 : vector<1x128xf32>
    %414 = arith.mulf %406, %411 : vector<1x128xf32>
    %415 = arith.addf %413, %414 : vector<1x128xf32>
    %416 = math.tanh %415 : vector<1x128xf32>
    %417 = arith.mulf %412, %416 : vector<1x128xf32>
    %418 = arith.index_cast %c7_i32 : i32 to index
    %c0_150 = arith.constant 0 : index
    %419 = vector.load %arg11[%418, %c0_150] : memref<16x128xf32, #tpu.memory_space<vmem>>, vector<1x128xf32>
    tpu.vector_store %arg11[%418, %c0_150], %417 {strides = array<i32>} : memref<16x128xf32, #tpu.memory_space<vmem>>, vector<1x128xf32>,
    %c8_i32 = arith.constant 8 : i32
    %420 = arith.truncf %417 : vector<1x128xf32> to vector<1x128xbf16>
    %cst_151 = arith.constant dense<0.000000e+00> : vector<1x256xf32>
    %421 = tpu.matmul %420, %9, %cst_151 {dimension_numbers = #tpu.dot_dimension_numbers<[1], [0], [0], [1], [0, 0, 1, 1], [], []>} : vector<1x128xbf16>, vector<128x256xbf16>, vector<1x256xf32> -> vector<1x256xf32>
    %422 = arith.index_cast %c8_i32 : i32 to index
    %c0_152 = arith.constant 0 : index
    %423 = vector.load %arg10[%422, %c0_152] : memref<16x256xf32, #tpu.memory_space<vmem>>, vector<1x256xf32>
    %424 = arith.truncf %394 : vector<1x128xf32> to vector<1x128xbf16>
    %cst_153 = arith.constant dense<0.000000e+00> : vector<1x256xf32>
    %425 = tpu.matmul %424, %7, %cst_153 {dimension_numbers = #tpu.dot_dimension_numbers<[1], [0], [0], [1], [0, 0, 1, 1], [], []>} : vector<1x128xbf16>, vector<128x256xbf16>, vector<1x256xf32> -> vector<1x256xf32>
    %426 = arith.addf %423, %425 : vector<1x256xf32>
    %427 = vector.extract_strided_slice %426 {offsets = [0, 0], sizes = [1, 128], strides = [1, 1]} : vector<1x256xf32> to vector<1x128xf32>
    %428 = vector.extract_strided_slice %426 {offsets = [0, 128], sizes = [1, 128], strides = [1, 1]} : vector<1x256xf32> to vector<1x128xf32>
    %429 = math.tanh %427 : vector<1x128xf32>
    %430 = math.tanh %428 : vector<1x128xf32>
    %cst_154 = arith.constant 5.000000e-01 : f32
    %431 = vector.broadcast %cst_154 : f32 to vector<1x128xf32>
    %432 = arith.mulf %431, %429 : vector<1x128xf32>
    %cst_155 = arith.constant 5.000000e-01 : f32
    %433 = vector.broadcast %cst_155 : f32 to vector<1x128xf32>
    %434 = arith.addf %433, %432 : vector<1x128xf32>
    %cst_156 = arith.constant 5.000000e-01 : f32
    %435 = vector.broadcast %cst_156 : f32 to vector<1x128xf32>
    %436 = arith.mulf %435, %430 : vector<1x128xf32>
    %cst_157 = arith.constant 5.000000e-01 : f32
    %437 = vector.broadcast %cst_157 : f32 to vector<1x128xf32>
    %438 = arith.addf %437, %436 : vector<1x128xf32>
    %c64_i32_158 = arith.constant 64 : i32
    %439 = tpu.dynamic_rotate %429 by %c64_i32_158 dim 1 : vector<1x128xf32>, i32 -> vector<1x128xf32>
    %c64_i32_159 = arith.constant 64 : i32
    %440 = tpu.dynamic_rotate %438 by %c64_i32_159 dim 1 : vector<1x128xf32>, i32 -> vector<1x128xf32>
    %441 = arith.mulf %438, %392 : vector<1x128xf32>
    %442 = arith.mulf %434, %439 : vector<1x128xf32>
    %443 = arith.addf %441, %442 : vector<1x128xf32>
    %444 = math.tanh %443 : vector<1x128xf32>
    %445 = arith.mulf %440, %444 : vector<1x128xf32>
    %446 = arith.truncf %445 : vector<1x128xf32> to vector<1x128xbf16>
    %cst_160 = arith.constant dense<0.000000e+00> : vector<1x256xf32>
    %447 = tpu.matmul %446, %8, %cst_160 {dimension_numbers = #tpu.dot_dimension_numbers<[1], [0], [0], [1], [0, 0, 1, 1], [], []>} : vector<1x128xbf16>, vector<128x256xbf16>, vector<1x256xf32> -> vector<1x256xf32>
    %448 = arith.addf %447, %421 : vector<1x256xf32>
    %449 = arith.addf %448, %10 : vector<1x256xf32>
    %450 = vector.extract_strided_slice %449 {offsets = [0, 0], sizes = [1, 128], strides = [1, 1]} : vector<1x256xf32> to vector<1x128xf32>
    %451 = vector.extract_strided_slice %449 {offsets = [0, 128], sizes = [1, 128], strides = [1, 1]} : vector<1x256xf32> to vector<1x128xf32>
    %452 = math.tanh %450 : vector<1x128xf32>
    %453 = math.tanh %451 : vector<1x128xf32>
    %cst_161 = arith.constant 5.000000e-01 : f32
    %454 = vector.broadcast %cst_161 : f32 to vector<1x128xf32>
    %455 = arith.mulf %454, %452 : vector<1x128xf32>
    %cst_162 = arith.constant 5.000000e-01 : f32
    %456 = vector.broadcast %cst_162 : f32 to vector<1x128xf32>
    %457 = arith.addf %456, %455 : vector<1x128xf32>
    %cst_163 = arith.constant 5.000000e-01 : f32
    %458 = vector.broadcast %cst_163 : f32 to vector<1x128xf32>
    %459 = arith.mulf %458, %453 : vector<1x128xf32>
    %cst_164 = arith.constant 5.000000e-01 : f32
    %460 = vector.broadcast %cst_164 : f32 to vector<1x128xf32>
    %461 = arith.addf %460, %459 : vector<1x128xf32>
    %c64_i32_165 = arith.constant 64 : i32
    %462 = tpu.dynamic_rotate %452 by %c64_i32_165 dim 1 : vector<1x128xf32>, i32 -> vector<1x128xf32>
    %c64_i32_166 = arith.constant 64 : i32
    %463 = tpu.dynamic_rotate %461 by %c64_i32_166 dim 1 : vector<1x128xf32>, i32 -> vector<1x128xf32>
    %464 = arith.mulf %461, %415 : vector<1x128xf32>
    %465 = arith.mulf %457, %462 : vector<1x128xf32>
    %466 = arith.addf %464, %465 : vector<1x128xf32>
    %467 = math.tanh %466 : vector<1x128xf32>
    %468 = arith.mulf %463, %467 : vector<1x128xf32>
    %469 = arith.index_cast %c8_i32 : i32 to index
    %c0_167 = arith.constant 0 : index
    %470 = vector.load %arg11[%469, %c0_167] : memref<16x128xf32, #tpu.memory_space<vmem>>, vector<1x128xf32>
    tpu.vector_store %arg11[%469, %c0_167], %468 {strides = array<i32>} : memref<16x128xf32, #tpu.memory_space<vmem>>, vector<1x128xf32>,
    %c9_i32 = arith.constant 9 : i32
    %471 = arith.truncf %468 : vector<1x128xf32> to vector<1x128xbf16>
    %cst_168 = arith.constant dense<0.000000e+00> : vector<1x256xf32>
    %472 = tpu.matmul %471, %9, %cst_168 {dimension_numbers = #tpu.dot_dimension_numbers<[1], [0], [0], [1], [0, 0, 1, 1], [], []>} : vector<1x128xbf16>, vector<128x256xbf16>, vector<1x256xf32> -> vector<1x256xf32>
    %473 = arith.index_cast %c9_i32 : i32 to index
    %c0_169 = arith.constant 0 : index
    %474 = vector.load %arg10[%473, %c0_169] : memref<16x256xf32, #tpu.memory_space<vmem>>, vector<1x256xf32>
    %475 = arith.truncf %445 : vector<1x128xf32> to vector<1x128xbf16>
    %cst_170 = arith.constant dense<0.000000e+00> : vector<1x256xf32>
    %476 = tpu.matmul %475, %7, %cst_170 {dimension_numbers = #tpu.dot_dimension_numbers<[1], [0], [0], [1], [0, 0, 1, 1], [], []>} : vector<1x128xbf16>, vector<128x256xbf16>, vector<1x256xf32> -> vector<1x256xf32>
    %477 = arith.addf %474, %476 : vector<1x256xf32>
    %478 = vector.extract_strided_slice %477 {offsets = [0, 0], sizes = [1, 128], strides = [1, 1]} : vector<1x256xf32> to vector<1x128xf32>
    %479 = vector.extract_strided_slice %477 {offsets = [0, 128], sizes = [1, 128], strides = [1, 1]} : vector<1x256xf32> to vector<1x128xf32>
    %480 = math.tanh %478 : vector<1x128xf32>
    %481 = math.tanh %479 : vector<1x128xf32>
    %cst_171 = arith.constant 5.000000e-01 : f32
    %482 = vector.broadcast %cst_171 : f32 to vector<1x128xf32>
    %483 = arith.mulf %482, %480 : vector<1x128xf32>
    %cst_172 = arith.constant 5.000000e-01 : f32
    %484 = vector.broadcast %cst_172 : f32 to vector<1x128xf32>
    %485 = arith.addf %484, %483 : vector<1x128xf32>
    %cst_173 = arith.constant 5.000000e-01 : f32
    %486 = vector.broadcast %cst_173 : f32 to vector<1x128xf32>
    %487 = arith.mulf %486, %481 : vector<1x128xf32>
    %cst_174 = arith.constant 5.000000e-01 : f32
    %488 = vector.broadcast %cst_174 : f32 to vector<1x128xf32>
    %489 = arith.addf %488, %487 : vector<1x128xf32>
    %c64_i32_175 = arith.constant 64 : i32
    %490 = tpu.dynamic_rotate %480 by %c64_i32_175 dim 1 : vector<1x128xf32>, i32 -> vector<1x128xf32>
    %c64_i32_176 = arith.constant 64 : i32
    %491 = tpu.dynamic_rotate %489 by %c64_i32_176 dim 1 : vector<1x128xf32>, i32 -> vector<1x128xf32>
    %492 = arith.mulf %489, %443 : vector<1x128xf32>
    %493 = arith.mulf %485, %490 : vector<1x128xf32>
    %494 = arith.addf %492, %493 : vector<1x128xf32>
    %495 = math.tanh %494 : vector<1x128xf32>
    %496 = arith.mulf %491, %495 : vector<1x128xf32>
    %497 = arith.truncf %496 : vector<1x128xf32> to vector<1x128xbf16>
    %cst_177 = arith.constant dense<0.000000e+00> : vector<1x256xf32>
    %498 = tpu.matmul %497, %8, %cst_177 {dimension_numbers = #tpu.dot_dimension_numbers<[1], [0], [0], [1], [0, 0, 1, 1], [], []>} : vector<1x128xbf16>, vector<128x256xbf16>, vector<1x256xf32> -> vector<1x256xf32>
    %499 = arith.addf %498, %472 : vector<1x256xf32>
    %500 = arith.addf %499, %10 : vector<1x256xf32>
    %501 = vector.extract_strided_slice %500 {offsets = [0, 0], sizes = [1, 128], strides = [1, 1]} : vector<1x256xf32> to vector<1x128xf32>
    %502 = vector.extract_strided_slice %500 {offsets = [0, 128], sizes = [1, 128], strides = [1, 1]} : vector<1x256xf32> to vector<1x128xf32>
    %503 = math.tanh %501 : vector<1x128xf32>
    %504 = math.tanh %502 : vector<1x128xf32>
    %cst_178 = arith.constant 5.000000e-01 : f32
    %505 = vector.broadcast %cst_178 : f32 to vector<1x128xf32>
    %506 = arith.mulf %505, %503 : vector<1x128xf32>
    %cst_179 = arith.constant 5.000000e-01 : f32
    %507 = vector.broadcast %cst_179 : f32 to vector<1x128xf32>
    %508 = arith.addf %507, %506 : vector<1x128xf32>
    %cst_180 = arith.constant 5.000000e-01 : f32
    %509 = vector.broadcast %cst_180 : f32 to vector<1x128xf32>
    %510 = arith.mulf %509, %504 : vector<1x128xf32>
    %cst_181 = arith.constant 5.000000e-01 : f32
    %511 = vector.broadcast %cst_181 : f32 to vector<1x128xf32>
    %512 = arith.addf %511, %510 : vector<1x128xf32>
    %c64_i32_182 = arith.constant 64 : i32
    %513 = tpu.dynamic_rotate %503 by %c64_i32_182 dim 1 : vector<1x128xf32>, i32 -> vector<1x128xf32>
    %c64_i32_183 = arith.constant 64 : i32
    %514 = tpu.dynamic_rotate %512 by %c64_i32_183 dim 1 : vector<1x128xf32>, i32 -> vector<1x128xf32>
    %515 = arith.mulf %512, %466 : vector<1x128xf32>
    %516 = arith.mulf %508, %513 : vector<1x128xf32>
    %517 = arith.addf %515, %516 : vector<1x128xf32>
    %518 = math.tanh %517 : vector<1x128xf32>
    %519 = arith.mulf %514, %518 : vector<1x128xf32>
    %520 = arith.index_cast %c9_i32 : i32 to index
    %c0_184 = arith.constant 0 : index
    %521 = vector.load %arg11[%520, %c0_184] : memref<16x128xf32, #tpu.memory_space<vmem>>, vector<1x128xf32>
    tpu.vector_store %arg11[%520, %c0_184], %519 {strides = array<i32>} : memref<16x128xf32, #tpu.memory_space<vmem>>, vector<1x128xf32>,
    %c10_i32 = arith.constant 10 : i32
    %522 = arith.truncf %519 : vector<1x128xf32> to vector<1x128xbf16>
    %cst_185 = arith.constant dense<0.000000e+00> : vector<1x256xf32>
    %523 = tpu.matmul %522, %9, %cst_185 {dimension_numbers = #tpu.dot_dimension_numbers<[1], [0], [0], [1], [0, 0, 1, 1], [], []>} : vector<1x128xbf16>, vector<128x256xbf16>, vector<1x256xf32> -> vector<1x256xf32>
    %524 = arith.index_cast %c10_i32 : i32 to index
    %c0_186 = arith.constant 0 : index
    %525 = vector.load %arg10[%524, %c0_186] : memref<16x256xf32, #tpu.memory_space<vmem>>, vector<1x256xf32>
    %526 = arith.truncf %496 : vector<1x128xf32> to vector<1x128xbf16>
    %cst_187 = arith.constant dense<0.000000e+00> : vector<1x256xf32>
    %527 = tpu.matmul %526, %7, %cst_187 {dimension_numbers = #tpu.dot_dimension_numbers<[1], [0], [0], [1], [0, 0, 1, 1], [], []>} : vector<1x128xbf16>, vector<128x256xbf16>, vector<1x256xf32> -> vector<1x256xf32>
    %528 = arith.addf %525, %527 : vector<1x256xf32>
    %529 = vector.extract_strided_slice %528 {offsets = [0, 0], sizes = [1, 128], strides = [1, 1]} : vector<1x256xf32> to vector<1x128xf32>
    %530 = vector.extract_strided_slice %528 {offsets = [0, 128], sizes = [1, 128], strides = [1, 1]} : vector<1x256xf32> to vector<1x128xf32>
    %531 = math.tanh %529 : vector<1x128xf32>
    %532 = math.tanh %530 : vector<1x128xf32>
    %cst_188 = arith.constant 5.000000e-01 : f32
    %533 = vector.broadcast %cst_188 : f32 to vector<1x128xf32>
    %534 = arith.mulf %533, %531 : vector<1x128xf32>
    %cst_189 = arith.constant 5.000000e-01 : f32
    %535 = vector.broadcast %cst_189 : f32 to vector<1x128xf32>
    %536 = arith.addf %535, %534 : vector<1x128xf32>
    %cst_190 = arith.constant 5.000000e-01 : f32
    %537 = vector.broadcast %cst_190 : f32 to vector<1x128xf32>
    %538 = arith.mulf %537, %532 : vector<1x128xf32>
    %cst_191 = arith.constant 5.000000e-01 : f32
    %539 = vector.broadcast %cst_191 : f32 to vector<1x128xf32>
    %540 = arith.addf %539, %538 : vector<1x128xf32>
    %c64_i32_192 = arith.constant 64 : i32
    %541 = tpu.dynamic_rotate %531 by %c64_i32_192 dim 1 : vector<1x128xf32>, i32 -> vector<1x128xf32>
    %c64_i32_193 = arith.constant 64 : i32
    %542 = tpu.dynamic_rotate %540 by %c64_i32_193 dim 1 : vector<1x128xf32>, i32 -> vector<1x128xf32>
    %543 = arith.mulf %540, %494 : vector<1x128xf32>
    %544 = arith.mulf %536, %541 : vector<1x128xf32>
    %545 = arith.addf %543, %544 : vector<1x128xf32>
    %546 = math.tanh %545 : vector<1x128xf32>
    %547 = arith.mulf %542, %546 : vector<1x128xf32>
    %548 = arith.truncf %547 : vector<1x128xf32> to vector<1x128xbf16>
    %cst_194 = arith.constant dense<0.000000e+00> : vector<1x256xf32>
    %549 = tpu.matmul %548, %8, %cst_194 {dimension_numbers = #tpu.dot_dimension_numbers<[1], [0], [0], [1], [0, 0, 1, 1], [], []>} : vector<1x128xbf16>, vector<128x256xbf16>, vector<1x256xf32> -> vector<1x256xf32>
    %550 = arith.addf %549, %523 : vector<1x256xf32>
    %551 = arith.addf %550, %10 : vector<1x256xf32>
    %552 = vector.extract_strided_slice %551 {offsets = [0, 0], sizes = [1, 128], strides = [1, 1]} : vector<1x256xf32> to vector<1x128xf32>
    %553 = vector.extract_strided_slice %551 {offsets = [0, 128], sizes = [1, 128], strides = [1, 1]} : vector<1x256xf32> to vector<1x128xf32>
    %554 = math.tanh %552 : vector<1x128xf32>
    %555 = math.tanh %553 : vector<1x128xf32>
    %cst_195 = arith.constant 5.000000e-01 : f32
    %556 = vector.broadcast %cst_195 : f32 to vector<1x128xf32>
    %557 = arith.mulf %556, %554 : vector<1x128xf32>
    %cst_196 = arith.constant 5.000000e-01 : f32
    %558 = vector.broadcast %cst_196 : f32 to vector<1x128xf32>
    %559 = arith.addf %558, %557 : vector<1x128xf32>
    %cst_197 = arith.constant 5.000000e-01 : f32
    %560 = vector.broadcast %cst_197 : f32 to vector<1x128xf32>
    %561 = arith.mulf %560, %555 : vector<1x128xf32>
    %cst_198 = arith.constant 5.000000e-01 : f32
    %562 = vector.broadcast %cst_198 : f32 to vector<1x128xf32>
    %563 = arith.addf %562, %561 : vector<1x128xf32>
    %c64_i32_199 = arith.constant 64 : i32
    %564 = tpu.dynamic_rotate %554 by %c64_i32_199 dim 1 : vector<1x128xf32>, i32 -> vector<1x128xf32>
    %c64_i32_200 = arith.constant 64 : i32
    %565 = tpu.dynamic_rotate %563 by %c64_i32_200 dim 1 : vector<1x128xf32>, i32 -> vector<1x128xf32>
    %566 = arith.mulf %563, %517 : vector<1x128xf32>
    %567 = arith.mulf %559, %564 : vector<1x128xf32>
    %568 = arith.addf %566, %567 : vector<1x128xf32>
    %569 = math.tanh %568 : vector<1x128xf32>
    %570 = arith.mulf %565, %569 : vector<1x128xf32>
    %571 = arith.index_cast %c10_i32 : i32 to index
    %c0_201 = arith.constant 0 : index
    %572 = vector.load %arg11[%571, %c0_201] : memref<16x128xf32, #tpu.memory_space<vmem>>, vector<1x128xf32>
    tpu.vector_store %arg11[%571, %c0_201], %570 {strides = array<i32>} : memref<16x128xf32, #tpu.memory_space<vmem>>, vector<1x128xf32>,
    %c11_i32 = arith.constant 11 : i32
    %573 = arith.truncf %570 : vector<1x128xf32> to vector<1x128xbf16>
    %cst_202 = arith.constant dense<0.000000e+00> : vector<1x256xf32>
    %574 = tpu.matmul %573, %9, %cst_202 {dimension_numbers = #tpu.dot_dimension_numbers<[1], [0], [0], [1], [0, 0, 1, 1], [], []>} : vector<1x128xbf16>, vector<128x256xbf16>, vector<1x256xf32> -> vector<1x256xf32>
    %575 = arith.index_cast %c11_i32 : i32 to index
    %c0_203 = arith.constant 0 : index
    %576 = vector.load %arg10[%575, %c0_203] : memref<16x256xf32, #tpu.memory_space<vmem>>, vector<1x256xf32>
    %577 = arith.truncf %547 : vector<1x128xf32> to vector<1x128xbf16>
    %cst_204 = arith.constant dense<0.000000e+00> : vector<1x256xf32>
    %578 = tpu.matmul %577, %7, %cst_204 {dimension_numbers = #tpu.dot_dimension_numbers<[1], [0], [0], [1], [0, 0, 1, 1], [], []>} : vector<1x128xbf16>, vector<128x256xbf16>, vector<1x256xf32> -> vector<1x256xf32>
    %579 = arith.addf %576, %578 : vector<1x256xf32>
    %580 = vector.extract_strided_slice %579 {offsets = [0, 0], sizes = [1, 128], strides = [1, 1]} : vector<1x256xf32> to vector<1x128xf32>
    %581 = vector.extract_strided_slice %579 {offsets = [0, 128], sizes = [1, 128], strides = [1, 1]} : vector<1x256xf32> to vector<1x128xf32>
    %582 = math.tanh %580 : vector<1x128xf32>
    %583 = math.tanh %581 : vector<1x128xf32>
    %cst_205 = arith.constant 5.000000e-01 : f32
    %584 = vector.broadcast %cst_205 : f32 to vector<1x128xf32>
    %585 = arith.mulf %584, %582 : vector<1x128xf32>
    %cst_206 = arith.constant 5.000000e-01 : f32
    %586 = vector.broadcast %cst_206 : f32 to vector<1x128xf32>
    %587 = arith.addf %586, %585 : vector<1x128xf32>
    %cst_207 = arith.constant 5.000000e-01 : f32
    %588 = vector.broadcast %cst_207 : f32 to vector<1x128xf32>
    %589 = arith.mulf %588, %583 : vector<1x128xf32>
    %cst_208 = arith.constant 5.000000e-01 : f32
    %590 = vector.broadcast %cst_208 : f32 to vector<1x128xf32>
    %591 = arith.addf %590, %589 : vector<1x128xf32>
    %c64_i32_209 = arith.constant 64 : i32
    %592 = tpu.dynamic_rotate %582 by %c64_i32_209 dim 1 : vector<1x128xf32>, i32 -> vector<1x128xf32>
    %c64_i32_210 = arith.constant 64 : i32
    %593 = tpu.dynamic_rotate %591 by %c64_i32_210 dim 1 : vector<1x128xf32>, i32 -> vector<1x128xf32>
    %594 = arith.mulf %591, %545 : vector<1x128xf32>
    %595 = arith.mulf %587, %592 : vector<1x128xf32>
    %596 = arith.addf %594, %595 : vector<1x128xf32>
    %597 = math.tanh %596 : vector<1x128xf32>
    %598 = arith.mulf %593, %597 : vector<1x128xf32>
    %599 = arith.truncf %598 : vector<1x128xf32> to vector<1x128xbf16>
    %cst_211 = arith.constant dense<0.000000e+00> : vector<1x256xf32>
    %600 = tpu.matmul %599, %8, %cst_211 {dimension_numbers = #tpu.dot_dimension_numbers<[1], [0], [0], [1], [0, 0, 1, 1], [], []>} : vector<1x128xbf16>, vector<128x256xbf16>, vector<1x256xf32> -> vector<1x256xf32>
    %601 = arith.addf %600, %574 : vector<1x256xf32>
    %602 = arith.addf %601, %10 : vector<1x256xf32>
    %603 = vector.extract_strided_slice %602 {offsets = [0, 0], sizes = [1, 128], strides = [1, 1]} : vector<1x256xf32> to vector<1x128xf32>
    %604 = vector.extract_strided_slice %602 {offsets = [0, 128], sizes = [1, 128], strides = [1, 1]} : vector<1x256xf32> to vector<1x128xf32>
    %605 = math.tanh %603 : vector<1x128xf32>
    %606 = math.tanh %604 : vector<1x128xf32>
    %cst_212 = arith.constant 5.000000e-01 : f32
    %607 = vector.broadcast %cst_212 : f32 to vector<1x128xf32>
    %608 = arith.mulf %607, %605 : vector<1x128xf32>
    %cst_213 = arith.constant 5.000000e-01 : f32
    %609 = vector.broadcast %cst_213 : f32 to vector<1x128xf32>
    %610 = arith.addf %609, %608 : vector<1x128xf32>
    %cst_214 = arith.constant 5.000000e-01 : f32
    %611 = vector.broadcast %cst_214 : f32 to vector<1x128xf32>
    %612 = arith.mulf %611, %606 : vector<1x128xf32>
    %cst_215 = arith.constant 5.000000e-01 : f32
    %613 = vector.broadcast %cst_215 : f32 to vector<1x128xf32>
    %614 = arith.addf %613, %612 : vector<1x128xf32>
    %c64_i32_216 = arith.constant 64 : i32
    %615 = tpu.dynamic_rotate %605 by %c64_i32_216 dim 1 : vector<1x128xf32>, i32 -> vector<1x128xf32>
    %c64_i32_217 = arith.constant 64 : i32
    %616 = tpu.dynamic_rotate %614 by %c64_i32_217 dim 1 : vector<1x128xf32>, i32 -> vector<1x128xf32>
    %617 = arith.mulf %614, %568 : vector<1x128xf32>
    %618 = arith.mulf %610, %615 : vector<1x128xf32>
    %619 = arith.addf %617, %618 : vector<1x128xf32>
    %620 = math.tanh %619 : vector<1x128xf32>
    %621 = arith.mulf %616, %620 : vector<1x128xf32>
    %622 = arith.index_cast %c11_i32 : i32 to index
    %c0_218 = arith.constant 0 : index
    %623 = vector.load %arg11[%622, %c0_218] : memref<16x128xf32, #tpu.memory_space<vmem>>, vector<1x128xf32>
    tpu.vector_store %arg11[%622, %c0_218], %621 {strides = array<i32>} : memref<16x128xf32, #tpu.memory_space<vmem>>, vector<1x128xf32>,
    %c12_i32 = arith.constant 12 : i32
    %624 = arith.truncf %621 : vector<1x128xf32> to vector<1x128xbf16>
    %cst_219 = arith.constant dense<0.000000e+00> : vector<1x256xf32>
    %625 = tpu.matmul %624, %9, %cst_219 {dimension_numbers = #tpu.dot_dimension_numbers<[1], [0], [0], [1], [0, 0, 1, 1], [], []>} : vector<1x128xbf16>, vector<128x256xbf16>, vector<1x256xf32> -> vector<1x256xf32>
    %626 = arith.index_cast %c12_i32 : i32 to index
    %c0_220 = arith.constant 0 : index
    %627 = vector.load %arg10[%626, %c0_220] : memref<16x256xf32, #tpu.memory_space<vmem>>, vector<1x256xf32>
    %628 = arith.truncf %598 : vector<1x128xf32> to vector<1x128xbf16>
    %cst_221 = arith.constant dense<0.000000e+00> : vector<1x256xf32>
    %629 = tpu.matmul %628, %7, %cst_221 {dimension_numbers = #tpu.dot_dimension_numbers<[1], [0], [0], [1], [0, 0, 1, 1], [], []>} : vector<1x128xbf16>, vector<128x256xbf16>, vector<1x256xf32> -> vector<1x256xf32>
    %630 = arith.addf %627, %629 : vector<1x256xf32>
    %631 = vector.extract_strided_slice %630 {offsets = [0, 0], sizes = [1, 128], strides = [1, 1]} : vector<1x256xf32> to vector<1x128xf32>
    %632 = vector.extract_strided_slice %630 {offsets = [0, 128], sizes = [1, 128], strides = [1, 1]} : vector<1x256xf32> to vector<1x128xf32>
    %633 = math.tanh %631 : vector<1x128xf32>
    %634 = math.tanh %632 : vector<1x128xf32>
    %cst_222 = arith.constant 5.000000e-01 : f32
    %635 = vector.broadcast %cst_222 : f32 to vector<1x128xf32>
    %636 = arith.mulf %635, %633 : vector<1x128xf32>
    %cst_223 = arith.constant 5.000000e-01 : f32
    %637 = vector.broadcast %cst_223 : f32 to vector<1x128xf32>
    %638 = arith.addf %637, %636 : vector<1x128xf32>
    %cst_224 = arith.constant 5.000000e-01 : f32
    %639 = vector.broadcast %cst_224 : f32 to vector<1x128xf32>
    %640 = arith.mulf %639, %634 : vector<1x128xf32>
    %cst_225 = arith.constant 5.000000e-01 : f32
    %641 = vector.broadcast %cst_225 : f32 to vector<1x128xf32>
    %642 = arith.addf %641, %640 : vector<1x128xf32>
    %c64_i32_226 = arith.constant 64 : i32
    %643 = tpu.dynamic_rotate %633 by %c64_i32_226 dim 1 : vector<1x128xf32>, i32 -> vector<1x128xf32>
    %c64_i32_227 = arith.constant 64 : i32
    %644 = tpu.dynamic_rotate %642 by %c64_i32_227 dim 1 : vector<1x128xf32>, i32 -> vector<1x128xf32>
    %645 = arith.mulf %642, %596 : vector<1x128xf32>
    %646 = arith.mulf %638, %643 : vector<1x128xf32>
    %647 = arith.addf %645, %646 : vector<1x128xf32>
    %648 = math.tanh %647 : vector<1x128xf32>
    %649 = arith.mulf %644, %648 : vector<1x128xf32>
    %650 = arith.truncf %649 : vector<1x128xf32> to vector<1x128xbf16>
    %cst_228 = arith.constant dense<0.000000e+00> : vector<1x256xf32>
    %651 = tpu.matmul %650, %8, %cst_228 {dimension_numbers = #tpu.dot_dimension_numbers<[1], [0], [0], [1], [0, 0, 1, 1], [], []>} : vector<1x128xbf16>, vector<128x256xbf16>, vector<1x256xf32> -> vector<1x256xf32>
    %652 = arith.addf %651, %625 : vector<1x256xf32>
    %653 = arith.addf %652, %10 : vector<1x256xf32>
    %654 = vector.extract_strided_slice %653 {offsets = [0, 0], sizes = [1, 128], strides = [1, 1]} : vector<1x256xf32> to vector<1x128xf32>
    %655 = vector.extract_strided_slice %653 {offsets = [0, 128], sizes = [1, 128], strides = [1, 1]} : vector<1x256xf32> to vector<1x128xf32>
    %656 = math.tanh %654 : vector<1x128xf32>
    %657 = math.tanh %655 : vector<1x128xf32>
    %cst_229 = arith.constant 5.000000e-01 : f32
    %658 = vector.broadcast %cst_229 : f32 to vector<1x128xf32>
    %659 = arith.mulf %658, %656 : vector<1x128xf32>
    %cst_230 = arith.constant 5.000000e-01 : f32
    %660 = vector.broadcast %cst_230 : f32 to vector<1x128xf32>
    %661 = arith.addf %660, %659 : vector<1x128xf32>
    %cst_231 = arith.constant 5.000000e-01 : f32
    %662 = vector.broadcast %cst_231 : f32 to vector<1x128xf32>
    %663 = arith.mulf %662, %657 : vector<1x128xf32>
    %cst_232 = arith.constant 5.000000e-01 : f32
    %664 = vector.broadcast %cst_232 : f32 to vector<1x128xf32>
    %665 = arith.addf %664, %663 : vector<1x128xf32>
    %c64_i32_233 = arith.constant 64 : i32
    %666 = tpu.dynamic_rotate %656 by %c64_i32_233 dim 1 : vector<1x128xf32>, i32 -> vector<1x128xf32>
    %c64_i32_234 = arith.constant 64 : i32
    %667 = tpu.dynamic_rotate %665 by %c64_i32_234 dim 1 : vector<1x128xf32>, i32 -> vector<1x128xf32>
    %668 = arith.mulf %665, %619 : vector<1x128xf32>
    %669 = arith.mulf %661, %666 : vector<1x128xf32>
    %670 = arith.addf %668, %669 : vector<1x128xf32>
    %671 = math.tanh %670 : vector<1x128xf32>
    %672 = arith.mulf %667, %671 : vector<1x128xf32>
    %673 = arith.index_cast %c12_i32 : i32 to index
    %c0_235 = arith.constant 0 : index
    %674 = vector.load %arg11[%673, %c0_235] : memref<16x128xf32, #tpu.memory_space<vmem>>, vector<1x128xf32>
    tpu.vector_store %arg11[%673, %c0_235], %672 {strides = array<i32>} : memref<16x128xf32, #tpu.memory_space<vmem>>, vector<1x128xf32>,
    %c13_i32 = arith.constant 13 : i32
    %675 = arith.truncf %672 : vector<1x128xf32> to vector<1x128xbf16>
    %cst_236 = arith.constant dense<0.000000e+00> : vector<1x256xf32>
    %676 = tpu.matmul %675, %9, %cst_236 {dimension_numbers = #tpu.dot_dimension_numbers<[1], [0], [0], [1], [0, 0, 1, 1], [], []>} : vector<1x128xbf16>, vector<128x256xbf16>, vector<1x256xf32> -> vector<1x256xf32>
    %677 = arith.index_cast %c13_i32 : i32 to index
    %c0_237 = arith.constant 0 : index
    %678 = vector.load %arg10[%677, %c0_237] : memref<16x256xf32, #tpu.memory_space<vmem>>, vector<1x256xf32>
    %679 = arith.truncf %649 : vector<1x128xf32> to vector<1x128xbf16>
    %cst_238 = arith.constant dense<0.000000e+00> : vector<1x256xf32>
    %680 = tpu.matmul %679, %7, %cst_238 {dimension_numbers = #tpu.dot_dimension_numbers<[1], [0], [0], [1], [0, 0, 1, 1], [], []>} : vector<1x128xbf16>, vector<128x256xbf16>, vector<1x256xf32> -> vector<1x256xf32>
    %681 = arith.addf %678, %680 : vector<1x256xf32>
    %682 = vector.extract_strided_slice %681 {offsets = [0, 0], sizes = [1, 128], strides = [1, 1]} : vector<1x256xf32> to vector<1x128xf32>
    %683 = vector.extract_strided_slice %681 {offsets = [0, 128], sizes = [1, 128], strides = [1, 1]} : vector<1x256xf32> to vector<1x128xf32>
    %684 = math.tanh %682 : vector<1x128xf32>
    %685 = math.tanh %683 : vector<1x128xf32>
    %cst_239 = arith.constant 5.000000e-01 : f32
    %686 = vector.broadcast %cst_239 : f32 to vector<1x128xf32>
    %687 = arith.mulf %686, %684 : vector<1x128xf32>
    %cst_240 = arith.constant 5.000000e-01 : f32
    %688 = vector.broadcast %cst_240 : f32 to vector<1x128xf32>
    %689 = arith.addf %688, %687 : vector<1x128xf32>
    %cst_241 = arith.constant 5.000000e-01 : f32
    %690 = vector.broadcast %cst_241 : f32 to vector<1x128xf32>
    %691 = arith.mulf %690, %685 : vector<1x128xf32>
    %cst_242 = arith.constant 5.000000e-01 : f32
    %692 = vector.broadcast %cst_242 : f32 to vector<1x128xf32>
    %693 = arith.addf %692, %691 : vector<1x128xf32>
    %c64_i32_243 = arith.constant 64 : i32
    %694 = tpu.dynamic_rotate %684 by %c64_i32_243 dim 1 : vector<1x128xf32>, i32 -> vector<1x128xf32>
    %c64_i32_244 = arith.constant 64 : i32
    %695 = tpu.dynamic_rotate %693 by %c64_i32_244 dim 1 : vector<1x128xf32>, i32 -> vector<1x128xf32>
    %696 = arith.mulf %693, %647 : vector<1x128xf32>
    %697 = arith.mulf %689, %694 : vector<1x128xf32>
    %698 = arith.addf %696, %697 : vector<1x128xf32>
    %699 = math.tanh %698 : vector<1x128xf32>
    %700 = arith.mulf %695, %699 : vector<1x128xf32>
    %701 = arith.truncf %700 : vector<1x128xf32> to vector<1x128xbf16>
    %cst_245 = arith.constant dense<0.000000e+00> : vector<1x256xf32>
    %702 = tpu.matmul %701, %8, %cst_245 {dimension_numbers = #tpu.dot_dimension_numbers<[1], [0], [0], [1], [0, 0, 1, 1], [], []>} : vector<1x128xbf16>, vector<128x256xbf16>, vector<1x256xf32> -> vector<1x256xf32>
    %703 = arith.addf %702, %676 : vector<1x256xf32>
    %704 = arith.addf %703, %10 : vector<1x256xf32>
    %705 = vector.extract_strided_slice %704 {offsets = [0, 0], sizes = [1, 128], strides = [1, 1]} : vector<1x256xf32> to vector<1x128xf32>
    %706 = vector.extract_strided_slice %704 {offsets = [0, 128], sizes = [1, 128], strides = [1, 1]} : vector<1x256xf32> to vector<1x128xf32>
    %707 = math.tanh %705 : vector<1x128xf32>
    %708 = math.tanh %706 : vector<1x128xf32>
    %cst_246 = arith.constant 5.000000e-01 : f32
    %709 = vector.broadcast %cst_246 : f32 to vector<1x128xf32>
    %710 = arith.mulf %709, %707 : vector<1x128xf32>
    %cst_247 = arith.constant 5.000000e-01 : f32
    %711 = vector.broadcast %cst_247 : f32 to vector<1x128xf32>
    %712 = arith.addf %711, %710 : vector<1x128xf32>
    %cst_248 = arith.constant 5.000000e-01 : f32
    %713 = vector.broadcast %cst_248 : f32 to vector<1x128xf32>
    %714 = arith.mulf %713, %708 : vector<1x128xf32>
    %cst_249 = arith.constant 5.000000e-01 : f32
    %715 = vector.broadcast %cst_249 : f32 to vector<1x128xf32>
    %716 = arith.addf %715, %714 : vector<1x128xf32>
    %c64_i32_250 = arith.constant 64 : i32
    %717 = tpu.dynamic_rotate %707 by %c64_i32_250 dim 1 : vector<1x128xf32>, i32 -> vector<1x128xf32>
    %c64_i32_251 = arith.constant 64 : i32
    %718 = tpu.dynamic_rotate %716 by %c64_i32_251 dim 1 : vector<1x128xf32>, i32 -> vector<1x128xf32>
    %719 = arith.mulf %716, %670 : vector<1x128xf32>
    %720 = arith.mulf %712, %717 : vector<1x128xf32>
    %721 = arith.addf %719, %720 : vector<1x128xf32>
    %722 = math.tanh %721 : vector<1x128xf32>
    %723 = arith.mulf %718, %722 : vector<1x128xf32>
    %724 = arith.index_cast %c13_i32 : i32 to index
    %c0_252 = arith.constant 0 : index
    %725 = vector.load %arg11[%724, %c0_252] : memref<16x128xf32, #tpu.memory_space<vmem>>, vector<1x128xf32>
    tpu.vector_store %arg11[%724, %c0_252], %723 {strides = array<i32>} : memref<16x128xf32, #tpu.memory_space<vmem>>, vector<1x128xf32>,
    %c14_i32 = arith.constant 14 : i32
    %726 = arith.truncf %723 : vector<1x128xf32> to vector<1x128xbf16>
    %cst_253 = arith.constant dense<0.000000e+00> : vector<1x256xf32>
    %727 = tpu.matmul %726, %9, %cst_253 {dimension_numbers = #tpu.dot_dimension_numbers<[1], [0], [0], [1], [0, 0, 1, 1], [], []>} : vector<1x128xbf16>, vector<128x256xbf16>, vector<1x256xf32> -> vector<1x256xf32>
    %728 = arith.index_cast %c14_i32 : i32 to index
    %c0_254 = arith.constant 0 : index
    %729 = vector.load %arg10[%728, %c0_254] : memref<16x256xf32, #tpu.memory_space<vmem>>, vector<1x256xf32>
    %730 = arith.truncf %700 : vector<1x128xf32> to vector<1x128xbf16>
    %cst_255 = arith.constant dense<0.000000e+00> : vector<1x256xf32>
    %731 = tpu.matmul %730, %7, %cst_255 {dimension_numbers = #tpu.dot_dimension_numbers<[1], [0], [0], [1], [0, 0, 1, 1], [], []>} : vector<1x128xbf16>, vector<128x256xbf16>, vector<1x256xf32> -> vector<1x256xf32>
    %732 = arith.addf %729, %731 : vector<1x256xf32>
    %733 = vector.extract_strided_slice %732 {offsets = [0, 0], sizes = [1, 128], strides = [1, 1]} : vector<1x256xf32> to vector<1x128xf32>
    %734 = vector.extract_strided_slice %732 {offsets = [0, 128], sizes = [1, 128], strides = [1, 1]} : vector<1x256xf32> to vector<1x128xf32>
    %735 = math.tanh %733 : vector<1x128xf32>
    %736 = math.tanh %734 : vector<1x128xf32>
    %cst_256 = arith.constant 5.000000e-01 : f32
    %737 = vector.broadcast %cst_256 : f32 to vector<1x128xf32>
    %738 = arith.mulf %737, %735 : vector<1x128xf32>
    %cst_257 = arith.constant 5.000000e-01 : f32
    %739 = vector.broadcast %cst_257 : f32 to vector<1x128xf32>
    %740 = arith.addf %739, %738 : vector<1x128xf32>
    %cst_258 = arith.constant 5.000000e-01 : f32
    %741 = vector.broadcast %cst_258 : f32 to vector<1x128xf32>
    %742 = arith.mulf %741, %736 : vector<1x128xf32>
    %cst_259 = arith.constant 5.000000e-01 : f32
    %743 = vector.broadcast %cst_259 : f32 to vector<1x128xf32>
    %744 = arith.addf %743, %742 : vector<1x128xf32>
    %c64_i32_260 = arith.constant 64 : i32
    %745 = tpu.dynamic_rotate %735 by %c64_i32_260 dim 1 : vector<1x128xf32>, i32 -> vector<1x128xf32>
    %c64_i32_261 = arith.constant 64 : i32
    %746 = tpu.dynamic_rotate %744 by %c64_i32_261 dim 1 : vector<1x128xf32>, i32 -> vector<1x128xf32>
    %747 = arith.mulf %744, %698 : vector<1x128xf32>
    %748 = arith.mulf %740, %745 : vector<1x128xf32>
    %749 = arith.addf %747, %748 : vector<1x128xf32>
    %750 = math.tanh %749 : vector<1x128xf32>
    %751 = arith.mulf %746, %750 : vector<1x128xf32>
    %752 = arith.truncf %751 : vector<1x128xf32> to vector<1x128xbf16>
    %cst_262 = arith.constant dense<0.000000e+00> : vector<1x256xf32>
    %753 = tpu.matmul %752, %8, %cst_262 {dimension_numbers = #tpu.dot_dimension_numbers<[1], [0], [0], [1], [0, 0, 1, 1], [], []>} : vector<1x128xbf16>, vector<128x256xbf16>, vector<1x256xf32> -> vector<1x256xf32>
    %754 = arith.addf %753, %727 : vector<1x256xf32>
    %755 = arith.addf %754, %10 : vector<1x256xf32>
    %756 = vector.extract_strided_slice %755 {offsets = [0, 0], sizes = [1, 128], strides = [1, 1]} : vector<1x256xf32> to vector<1x128xf32>
    %757 = vector.extract_strided_slice %755 {offsets = [0, 128], sizes = [1, 128], strides = [1, 1]} : vector<1x256xf32> to vector<1x128xf32>
    %758 = math.tanh %756 : vector<1x128xf32>
    %759 = math.tanh %757 : vector<1x128xf32>
    %cst_263 = arith.constant 5.000000e-01 : f32
    %760 = vector.broadcast %cst_263 : f32 to vector<1x128xf32>
    %761 = arith.mulf %760, %758 : vector<1x128xf32>
    %cst_264 = arith.constant 5.000000e-01 : f32
    %762 = vector.broadcast %cst_264 : f32 to vector<1x128xf32>
    %763 = arith.addf %762, %761 : vector<1x128xf32>
    %cst_265 = arith.constant 5.000000e-01 : f32
    %764 = vector.broadcast %cst_265 : f32 to vector<1x128xf32>
    %765 = arith.mulf %764, %759 : vector<1x128xf32>
    %cst_266 = arith.constant 5.000000e-01 : f32
    %766 = vector.broadcast %cst_266 : f32 to vector<1x128xf32>
    %767 = arith.addf %766, %765 : vector<1x128xf32>
    %c64_i32_267 = arith.constant 64 : i32
    %768 = tpu.dynamic_rotate %758 by %c64_i32_267 dim 1 : vector<1x128xf32>, i32 -> vector<1x128xf32>
    %c64_i32_268 = arith.constant 64 : i32
    %769 = tpu.dynamic_rotate %767 by %c64_i32_268 dim 1 : vector<1x128xf32>, i32 -> vector<1x128xf32>
    %770 = arith.mulf %767, %721 : vector<1x128xf32>
    %771 = arith.mulf %763, %768 : vector<1x128xf32>
    %772 = arith.addf %770, %771 : vector<1x128xf32>
    %773 = math.tanh %772 : vector<1x128xf32>
    %774 = arith.mulf %769, %773 : vector<1x128xf32>
    %775 = arith.index_cast %c14_i32 : i32 to index
    %c0_269 = arith.constant 0 : index
    %776 = vector.load %arg11[%775, %c0_269] : memref<16x128xf32, #tpu.memory_space<vmem>>, vector<1x128xf32>
    tpu.vector_store %arg11[%775, %c0_269], %774 {strides = array<i32>} : memref<16x128xf32, #tpu.memory_space<vmem>>, vector<1x128xf32>,
    %c15_i32 = arith.constant 15 : i32
    %777 = arith.truncf %774 : vector<1x128xf32> to vector<1x128xbf16>
    %cst_270 = arith.constant dense<0.000000e+00> : vector<1x256xf32>
    %778 = tpu.matmul %777, %9, %cst_270 {dimension_numbers = #tpu.dot_dimension_numbers<[1], [0], [0], [1], [0, 0, 1, 1], [], []>} : vector<1x128xbf16>, vector<128x256xbf16>, vector<1x256xf32> -> vector<1x256xf32>
    %779 = arith.index_cast %c15_i32 : i32 to index
    %c0_271 = arith.constant 0 : index
    %780 = vector.load %arg10[%779, %c0_271] : memref<16x256xf32, #tpu.memory_space<vmem>>, vector<1x256xf32>
    %781 = arith.truncf %751 : vector<1x128xf32> to vector<1x128xbf16>
    %cst_272 = arith.constant dense<0.000000e+00> : vector<1x256xf32>
    %782 = tpu.matmul %781, %7, %cst_272 {dimension_numbers = #tpu.dot_dimension_numbers<[1], [0], [0], [1], [0, 0, 1, 1], [], []>} : vector<1x128xbf16>, vector<128x256xbf16>, vector<1x256xf32> -> vector<1x256xf32>
    %783 = arith.addf %780, %782 : vector<1x256xf32>
    %784 = vector.extract_strided_slice %783 {offsets = [0, 0], sizes = [1, 128], strides = [1, 1]} : vector<1x256xf32> to vector<1x128xf32>
    %785 = vector.extract_strided_slice %783 {offsets = [0, 128], sizes = [1, 128], strides = [1, 1]} : vector<1x256xf32> to vector<1x128xf32>
    %786 = math.tanh %784 : vector<1x128xf32>
    %787 = math.tanh %785 : vector<1x128xf32>
    %cst_273 = arith.constant 5.000000e-01 : f32
    %788 = vector.broadcast %cst_273 : f32 to vector<1x128xf32>
    %789 = arith.mulf %788, %786 : vector<1x128xf32>
    %cst_274 = arith.constant 5.000000e-01 : f32
    %790 = vector.broadcast %cst_274 : f32 to vector<1x128xf32>
    %791 = arith.addf %790, %789 : vector<1x128xf32>
    %cst_275 = arith.constant 5.000000e-01 : f32
    %792 = vector.broadcast %cst_275 : f32 to vector<1x128xf32>
    %793 = arith.mulf %792, %787 : vector<1x128xf32>
    %cst_276 = arith.constant 5.000000e-01 : f32
    %794 = vector.broadcast %cst_276 : f32 to vector<1x128xf32>
    %795 = arith.addf %794, %793 : vector<1x128xf32>
    %c64_i32_277 = arith.constant 64 : i32
    %796 = tpu.dynamic_rotate %786 by %c64_i32_277 dim 1 : vector<1x128xf32>, i32 -> vector<1x128xf32>
    %c64_i32_278 = arith.constant 64 : i32
    %797 = tpu.dynamic_rotate %795 by %c64_i32_278 dim 1 : vector<1x128xf32>, i32 -> vector<1x128xf32>
    %798 = arith.mulf %795, %749 : vector<1x128xf32>
    %799 = arith.mulf %791, %796 : vector<1x128xf32>
    %800 = arith.addf %798, %799 : vector<1x128xf32>
    %801 = math.tanh %800 : vector<1x128xf32>
    %802 = arith.mulf %797, %801 : vector<1x128xf32>
    %803 = arith.truncf %802 : vector<1x128xf32> to vector<1x128xbf16>
    %cst_279 = arith.constant dense<0.000000e+00> : vector<1x256xf32>
    %804 = tpu.matmul %803, %8, %cst_279 {dimension_numbers = #tpu.dot_dimension_numbers<[1], [0], [0], [1], [0, 0, 1, 1], [], []>} : vector<1x128xbf16>, vector<128x256xbf16>, vector<1x256xf32> -> vector<1x256xf32>
    %805 = arith.addf %804, %778 : vector<1x256xf32>
    %806 = arith.addf %805, %10 : vector<1x256xf32>
    %807 = vector.extract_strided_slice %806 {offsets = [0, 0], sizes = [1, 128], strides = [1, 1]} : vector<1x256xf32> to vector<1x128xf32>
    %808 = vector.extract_strided_slice %806 {offsets = [0, 128], sizes = [1, 128], strides = [1, 1]} : vector<1x256xf32> to vector<1x128xf32>
    %809 = math.tanh %807 : vector<1x128xf32>
    %810 = math.tanh %808 : vector<1x128xf32>
    %cst_280 = arith.constant 5.000000e-01 : f32
    %811 = vector.broadcast %cst_280 : f32 to vector<1x128xf32>
    %812 = arith.mulf %811, %809 : vector<1x128xf32>
    %cst_281 = arith.constant 5.000000e-01 : f32
    %813 = vector.broadcast %cst_281 : f32 to vector<1x128xf32>
    %814 = arith.addf %813, %812 : vector<1x128xf32>
    %cst_282 = arith.constant 5.000000e-01 : f32
    %815 = vector.broadcast %cst_282 : f32 to vector<1x128xf32>
    %816 = arith.mulf %815, %810 : vector<1x128xf32>
    %cst_283 = arith.constant 5.000000e-01 : f32
    %817 = vector.broadcast %cst_283 : f32 to vector<1x128xf32>
    %818 = arith.addf %817, %816 : vector<1x128xf32>
    %c64_i32_284 = arith.constant 64 : i32
    %819 = tpu.dynamic_rotate %809 by %c64_i32_284 dim 1 : vector<1x128xf32>, i32 -> vector<1x128xf32>
    %c64_i32_285 = arith.constant 64 : i32
    %820 = tpu.dynamic_rotate %818 by %c64_i32_285 dim 1 : vector<1x128xf32>, i32 -> vector<1x128xf32>
    %821 = arith.mulf %818, %772 : vector<1x128xf32>
    %822 = arith.mulf %814, %819 : vector<1x128xf32>
    %823 = arith.addf %821, %822 : vector<1x128xf32>
    %824 = math.tanh %823 : vector<1x128xf32>
    %825 = arith.mulf %820, %824 : vector<1x128xf32>
    %826 = arith.index_cast %c15_i32 : i32 to index
    %c0_286 = arith.constant 0 : index
    %827 = vector.load %arg11[%826, %c0_286] : memref<16x128xf32, #tpu.memory_space<vmem>>, vector<1x128xf32>
    tpu.vector_store %arg11[%826, %c0_286], %825 {strides = array<i32>} : memref<16x128xf32, #tpu.memory_space<vmem>>, vector<1x128xf32>,
    %c16_i32 = arith.constant 16 : i32
    %c0_287 = arith.constant 0 : index
    %c0_288 = arith.constant 0 : index
    %828 = vector.load %arg11[%c0_287, %c0_288] : memref<16x128xf32, #tpu.memory_space<vmem>>, vector<16x128xf32>
    %829 = arith.truncf %828 : vector<16x128xf32> to vector<16x128xbf16>
    %c0_289 = arith.constant 0 : index
    %c0_290 = arith.constant 0 : index
    %830 = vector.load %arg7[%c0_289, %c0_290] : memref<128x128xbf16, #tpu.memory_space<vmem>>, vector<128x128xbf16>
    %cst_291 = arith.constant dense<0.000000e+00> : vector<16x128xf32>
    %831 = tpu.matmul %829, %830, %cst_291 {dimension_numbers = #tpu.dot_dimension_numbers<[1], [0], [0], [1], [0, 0, 1, 1], [], []>} : vector<16x128xbf16>, vector<128x128xbf16>, vector<16x128xf32> -> vector<16x128xf32>
    %c0_292 = arith.constant 0 : index
    %c0_293 = arith.constant 0 : index
    %832 = vector.load %arg8[%c0_292, %c0_293] : memref<1x128xf32, #tpu.memory_space<vmem>>, vector<1x128xf32>
    %833 = vector.broadcast %832 : vector<1x128xf32> to vector<16x128xf32>
    %834 = arith.addf %831, %833 : vector<16x128xf32>
    %cst_294 = arith.constant 0.000000e+00 : f32
    %835 = vector.broadcast %cst_294 : f32 to vector<16x128xf32>
    %836 = arith.maximumf %834, %835 : vector<16x128xf32>
    %cst_295 = arith.constant dense<0xFF800000> : vector<16xf32>
    %837 = vector.multi_reduction <maximumf>, %836, %cst_295 [1] : vector<16x128xf32> to vector<16xf32>
    %838 = vector.shape_cast %837 : vector<16xf32> to vector<16x1xf32>
    %839 = vector.broadcast %838 : vector<16x1xf32> to vector<16x128xf32>
    %840 = arith.subf %836, %839 : vector<16x128xf32>
    %841 = math.exp %840 : vector<16x128xf32>
    %cst_296 = arith.constant dense<0.000000e+00> : vector<16xf32>
    %842 = vector.multi_reduction <add>, %841, %cst_296 [1] : vector<16x128xf32> to vector<16xf32>
    %843 = vector.shape_cast %842 : vector<16xf32> to vector<16x1xf32>
    %844 = math.log %843 : vector<16x1xf32>
    %845 = arith.addf %838, %844 : vector<16x1xf32>
    %846 = vector.broadcast %845 : vector<16x1xf32> to vector<16x128xf32>
    %847 = arith.subf %836, %846 : vector<16x128xf32>
    %c0_297 = arith.constant 0 : index
    %c0_298 = arith.constant 0 : index
    %848 = vector.load %arg9[%c0_297, %c0_298] : memref<16x128xf32, #tpu.memory_space<vmem>>, vector<16x128xf32>
    tpu.vector_store %arg9[%c0_297, %c0_298], %847 {strides = array<i32>} : memref<16x128xf32, #tpu.memory_space<vmem>>, vector<16x128xf32>,
    return
  }
}

</mosaic_0001>

<bundles_post_ra>
// kernel: tpu_custom_call.1
= control target key start
LH: loop header
LB: loop body
LE: loop exit
PB: predicated region body
PF: predicated region fallthrough
CT: control target
= control target key end

     0   :  { %14 = vsyncpa [#allocation5], 0  ;;  %s4528_s0 = inlined_call_operand.hbm [shape: bf16[16,32], index: 0, kind: input, shape index: {}]   ;;  %s4529_s1 = inlined_call_operand.hbm [shape: bf16[32,256], index: 1, kind: input, shape index: {}]   ;;  %s4530_s2 = inlined_call_operand.hbm [shape: bf16[128,256], index: 2, kind: input, shape index: {}]   ;;  %s4531_s3 = inlined_call_operand.vmem [shape: f32[1,256], index: 3, kind: input, shape index: {}]   ;;  %s4532_s4 = inlined_call_operand.hbm [shape: bf16[128,256], index: 4, kind: input, shape index: {}]   ;;  %s4533_s5 = inlined_call_operand.hbm [shape: bf16[128,256], index: 5, kind: input, shape index: {}]   ;;  %s4534_s6 = inlined_call_operand.vmem [shape: f32[1,256], index: 6, kind: input, shape index: {}]   ;;  %s4535_s7 = inlined_call_operand.hbm [shape: bf16[128,128], index: 7, kind: input, shape index: {}]   ;;  %s4536_s8 = inlined_call_operand.vmem [shape: f32[1,128], index: 8, kind: input, shape index: {}]   ;;  %s4537_s9 = inlined_call_operand.hbm [shape: f32[16,128], index: 9, kind: output, shape index: {}]  }
   0x1   :  { %15 = vsyncpa [#allocation8], 0 }
   0x2   :  { %16 = vsyncpa [#allocation11], 0 }
   0x3   :  { %17 = vsyncpa [#allocation14], 0  ;;  %s36_s11 = sshll.u32 %s4529_s1, 4  ;;  %s37_s11 = int_to_ptr.hbm [resolvable:$true] %s36_s11 }
   0x4   :  { %18 = vsyncpa [#allocation6], 0  ;;  %s3309_s12 = smov [#allocation7]   ;;  %s64_s16 = sshll.u32 %s4532_s4, 4  ;;  %s65_s16 = int_to_ptr.hbm [resolvable:$true] %s64_s16 }
   0x5   :  { %s38_s13 = sshll.u32 %s3309_s12, 4  ;;  %s3310_s17 = smov 128   ;;  %s39_s13 = int_to_ptr.vmem [resolvable:$true] %s38_s13 }
   0x6   :  { %s3311_s18 = smov 8   ;;  %s3312_s19 = smov [#allocation10]  }
   0x7   :  { %44 = dma.hbm_to_vmem [thread:$0]  %s37_s11, 512, %s39_s13, [#allocation8], %s3310_s17, %s3310_s17, %s3311_s18  }
   0x8   :  { %s66_s20 = sshll.u32 %s3312_s19, 4  ;;  %s23_s22 = sshll.u32 %s4528_s0, 4  ;;  %s67_s20 = int_to_ptr.vmem [resolvable:$true] %s66_s20  ;;  %s24_s22 = int_to_ptr.hbm [resolvable:$true] %s23_s22 }
   0x9   :  { %72 = dma.hbm_to_vmem [thread:$0]  %s65_s16, 2048, %s67_s20, [#allocation11], %s3310_s17, %s3310_s17, %s3311_s18  }
   0xa   :  { %s3313_s4 = smov [#allocation4]   ;;  %s49_s26 = sshll.u32 %s4530_s2, 4  ;;  %s50_s26 = int_to_ptr.hbm [resolvable:$true] %s49_s26 }
   0xb   :  { %s25_s23 = sshll.u32 %s3313_s4, 4  ;;  %s3314_s27 = smov 64   ;;  %s26_s23 = int_to_ptr.vmem [resolvable:$true] %s25_s23 }
   0xc   :  { %s3315_s28 = smov 4   ;;  %s3316_s0 = smov [#allocation9]  }
   0xd   :  { %31 = dma.hbm_to_vmem [thread:$0]  %s24_s22, 128, %s26_s23, [#allocation5], %s3314_s27, %s3314_s27, %s3315_s28  }
   0xe   :  { %s51_s29 = sshll.u32 %s3316_s0, 4  ;;  %s77_s11 = sshll.u32 %s4533_s5, 4  ;;  %s52_s29 = int_to_ptr.vmem [resolvable:$true] %s51_s29  ;;  %s78_s11 = int_to_ptr.hbm [resolvable:$true] %s77_s11 }
   0xf   :  { %57 = dma.hbm_to_vmem [thread:$0]  %s50_s26, 2048, %s52_s29, [#allocation8], %s3310_s17, %s3310_s17, %s3311_s18  }
  0x10   :  { %s92_s13 = sshll.u32 %s4535_s7, 4  ;;  %s3317_s14 = smov [#allocation12]   ;;  %s93_s13 = int_to_ptr.hbm [resolvable:$true] %s92_s13 }
  0x11   :  { %s79_s15 = sshll.u32 %s3317_s14, 4  ;;  %s3318_s16 = smov [#allocation13]   ;;  %s80_s15 = int_to_ptr.vmem [resolvable:$true] %s79_s15 }
  0x12   :  { %85 = dma.hbm_to_vmem [thread:$0]  %s78_s11, 2048, %s80_s15, [#allocation11], %s3310_s17, %s3310_s17, %s3311_s18  }
  0x13   :  { %s94_s5 = sshll.u32 %s3318_s16, 4  ;;  %s95_s5 = int_to_ptr.vmem [resolvable:$true] %s94_s5 }
  0x14   :  { %100 = dma.hbm_to_vmem [thread:$0]  %s93_s13, 1024, %s95_s5, [#allocation14], %s3314_s27, %s3314_s27, %s3315_s28  }
  0x15   :  { %3299 = dma.done.wait [#allocation5], 128  }
  0x16   :  { %3300 = vsyncadd [#allocation5], 4294967168 }
  0x17   :  { %3301 = dma.done.wait [#allocation8], 2560  }
  0x18   :  { %3302 = vsyncadd [#allocation8], 4294964736 }
  0x19   :  { %3303 = dma.done.wait [#allocation11], 4096  }
  0x1a   :  { %3304 = vsyncadd [#allocation11], 4294963200 }
  0x1b   :  { %3305 = dma.done.wait [#allocation14], 1024  }
  0x1c   :  { %3306 = vsyncadd [#allocation14], 4294966272  ;;  %v2625_v0 = vld [vmem:[#allocation7 + $0x10] sm:$0xf]  ;;  %v2861_v1 = vld [vmem:[#allocation7 + $0x14] sm:$0xf0] }
  0x1d   :  { %v2860_v2 = vld [vmem:[#allocation7 + $0x14] sm:$0xf]  ;;  %v2626_v3 = vor.u32 %v2861_v1, %v2625_v0  ;;  %v2627_v4 = vld [vmem:[#allocation7 + $0x18] sm:$0xf0]  ;;  %v2617_v5 = vld [vmem:[#allocation7] sm:$0xf] }
  0x1e   :  { %v2859_v6 = vld [vmem:[#allocation7 + $0x4] sm:$0xf0]  ;;  %v2630_v7 = vor.u32 %v2860_v2, %v2627_v4  ;;  %v2858_v8 = vld [vmem:[#allocation7 + $0x4] sm:$0xf]  ;;  %v2619_v9 = vld [vmem:[#allocation7 + $0x8] sm:$0xf0] }
  0x1f   :  { %v2755_v10 = vld [vmem:[#allocation9 + $0x70] sm:$0xf]  ;;  %175 = vmatpush.bf16.msra.mxu0 %v2626_v3  ;;  %v2618_v11 = vor.u32 %v2859_v6, %v2617_v5  ;;  %v2877_v12 = vld [vmem:[#allocation9 + $0x74] sm:$0xf0]  ;;  %v2876_v13 = vld [vmem:[#allocation9 + $0x74] sm:$0xf]  ;;  %v2622_v15 = vor.u32 %v2858_v8, %v2619_v9 }
  0x20   :  { %v2757_v14 = vld [vmem:[#allocation9 + $0x78] sm:$0xf0]  ;;  %189 = vmatpush.bf16.msra.mxu1 %v2630_v7  ;;  %v3405_v16 = vor.u32 %v2877_v12, %v2755_v10  ;;  %v2747_v18 = vld [vmem:[#allocation9 + $0x60] sm:$0xf]  ;;  %v2875_v19 = vld [vmem:[#allocation9 + $0x64] sm:$0xf0] }
  0x21   :  { %v3407_v17 = vor.u32 %v2876_v13, %v2757_v14  ;;  %v2874_v20 = vld [vmem:[#allocation9 + $0x64] sm:$0xf]  ;;  %v2749_v21 = vld [vmem:[#allocation9 + $0x68] sm:$0xf0]  ;;  %v2857_v22 = vld [vmem:[#allocation4] sm:$0xff]  ;;  %vm165_vm0 = vcmask 261120   ;;  %v3410_v23 = vor.u32 %v2875_v19, %v2747_v18 }
  0x22   :  { %v3413_v24 = vor.u32 %v2874_v20, %v2749_v21  ;;  %v2739_v25 = vld [vmem:[#allocation9 + $0x50] sm:$0xf]  ;;  %v2873_v26 = vld [vmem:[#allocation9 + $0x54] sm:$0xf0]  ;;  %v2872_v27 = vld [vmem:[#allocation9 + $0x54] sm:$0xf] }
  0x23   :  { %176 = vmatpush.bf16.msra.mxu0 %v2618_v11  ;;  %v2741_v28 = vld [vmem:[#allocation9 + $0x58] sm:$0xf0]  ;;  %v3416_v29 = vor.u32 %v2873_v26, %v2739_v25  ;;  %v2731_v31 = vld [vmem:[#allocation9 + $0x40] sm:$0xf]  ;;  %v2871_v32 = vld [vmem:[#allocation9 + $0x44] sm:$0xf0] }
  0x24   :  { %190 = vmatpush.bf16.msra.mxu1 %v2622_v15  ;;  %v3419_v30 = vor.u32 %v2872_v27, %v2741_v28  ;;  %v2870_v33 = vld [vmem:[#allocation9 + $0x44] sm:$0xf]  ;;  %v2733_v34 = vld [vmem:[#allocation9 + $0x48] sm:$0xf0]  ;;  %v3422_v35 = vor.u32 %v2871_v32, %v2731_v31  ;;  %v2723_v37 = vld [vmem:[#allocation9 + $0x30] sm:$0xf] }
  0x25   :  { %v3425_v36 = vor.u32 %v2870_v33, %v2733_v34  ;;  %v2869_v38 = vld [vmem:[#allocation9 + $0x34] sm:$0xf0]  ;;  %v2868_v39 = vld [vmem:[#allocation9 + $0x34] sm:$0xf]  ;;  %v2725_v40 = vld [vmem:[#allocation9 + $0x38] sm:$0xf0] }
  0x26   :  { %2631 = vmatmul.msk.bf16.vlgmr.msra.gmra.mxu0 %vm165_vm0, %v2857_v22  ;;  %v3428_v41 = vor.u32 %v2869_v38, %v2723_v37  ;;  %v3431_v42 = vor.u32 %v2868_v39, %v2725_v40  ;;  %v2715_v43 = vld [vmem:[#allocation9 + $0x20] sm:$0xf]  ;;  %v2867_v44 = vld [vmem:[#allocation9 + $0x24] sm:$0xf0]  ;;  %v2866_v45 = vld [vmem:[#allocation9 + $0x24] sm:$0xf] }
  0x27   :  { %437 = vmatpush.bf16.msrb.mxu0 %v3405_v16  ;;  %2632 = vmatmul.msk.bf16.vlgmr.msra.gmra.mxu1 %vm165_vm0, %v2857_v22  ;;  %v2717_v46 = vld [vmem:[#allocation9 + $0x28] sm:$0xf0]  ;;  %v3434_v47 = vor.u32 %v2867_v44, %v2715_v43  ;;  %v2707_v49 = vld [vmem:[#allocation9 + $0x10] sm:$0xf]  ;;  %v2865_v50 = vld [vmem:[#allocation9 + $0x14] sm:$0xf0] }
  0x28   :  { %450 = vmatpush.bf16.msrb.mxu1 %v3407_v17  ;;  %v3437_v48 = vor.u32 %v2866_v45, %v2717_v46  ;;  %v2864_v51 = vld [vmem:[#allocation9 + $0x14] sm:$0xf]  ;;  %v2709_v52 = vld [vmem:[#allocation9 + $0x18] sm:$0xf0]  ;;  %v3440_v53 = vor.u32 %v2865_v50, %v2707_v49  ;;  %v2699_v55 = vld [vmem:[#allocation9] sm:$0xf] }
  0x29   :  { %v3443_v54 = vor.u32 %v2864_v51, %v2709_v52  ;;  %v2863_v56 = vld [vmem:[#allocation9 + $0x4] sm:$0xf0]  ;;  %v2862_v57 = vld [vmem:[#allocation9 + $0x4] sm:$0xf]  ;;  %v2701_v58 = vld [vmem:[#allocation9 + $0x8] sm:$0xf0] }
  0x2a   :  { %v3446_v59 = vor.u32 %v2863_v56, %v2699_v55  ;;  %v3449_v60 = vor.u32 %v2862_v57, %v2701_v58  ;;  %v3319_v61 = vmov 0   ;;  %v134_v62 = vld [vmem:[%s4531_s3] sm:$0x3]  ;;  %v2691_v9 = vld [vmem:[#allocation12 + $0x70] sm:$0xf]  ;;  %vm466_vm1 = vcmask 1040384  }
  0x2b   :  { %438 = vmatpush.bf16.msrb.mxu0 %v3410_v23  ;;  %v136_v63 = vperm.slane %v134_v62, 0  ;;  %v137_v0 = vperm.slane %v134_v62, 1  ;;  %v2909_v10 = vld [vmem:[#allocation12 + $0x74] sm:$0xf0]  ;;  %v2908_v11 = vld [vmem:[#allocation12 + $0x74] sm:$0xf] }
  0x2c   :  { %451 = vmatpush.bf16.msrb.mxu1 %v3413_v24  ;;  %v3458_v12 = vor.u32 %v2909_v10, %v2691_v9  ;;  %v2693_v13 = vld [vmem:[#allocation12 + $0x78] sm:$0xf0]  ;;  %v2683_v14 = vld [vmem:[#allocation12 + $0x60] sm:$0xf]  ;;  %v2907_v15 = vld [vmem:[#allocation12 + $0x64] sm:$0xf0] }
  0x2d   :  { %v3460_v18 = vor.u32 %v2908_v11, %v2693_v13  ;;  %v2906_v19 = vld [vmem:[#allocation12 + $0x64] sm:$0xf]  ;;  %v2685_v20 = vld [vmem:[#allocation12 + $0x68] sm:$0xf0]  ;;  %v3463_v21 = vor.u32 %v2907_v15, %v2683_v14  ;;  %v2675_v25 = vld [vmem:[#allocation12 + $0x50] sm:$0xf] }
  0x2e   :  { %330 = vmatpush.bf16.msra.mxu2 %v3458_v12  ;;  %v3467_v22 = vor.u32 %v2906_v19, %v2685_v20  ;;  %v2905_v26 = vld [vmem:[#allocation12 + $0x54] sm:$0xf0]  ;;  %v2904_v27 = vld [vmem:[#allocation12 + $0x54] sm:$0xf]  ;;  %v2677_v28 = vld [vmem:[#allocation12 + $0x58] sm:$0xf0] }
  0x2f   :  { %439 = vmatpush.bf16.msrb.mxu0 %v3416_v29  ;;  %343 = vmatpush.bf16.msra.mxu3 %v3460_v18  ;;  %v3471_v31 = vor.u32 %v2905_v26, %v2675_v25  ;;  %v3475_v32 = vor.u32 %v2904_v27, %v2677_v28  ;;  %v2667_v33 = vld [vmem:[#allocation12 + $0x40] sm:$0xf]  ;;  %v2903_v34 = vld [vmem:[#allocation12 + $0x44] sm:$0xf0]  ;;  %v2902_v37 = vld [vmem:[#allocation12 + $0x44] sm:$0xf] }
  0x30   :  { %452 = vmatpush.bf16.msrb.mxu1 %v3419_v30  ;;  %v2669_v38 = vld [vmem:[#allocation12 + $0x48] sm:$0xf0]  ;;  %v3479_v43 = vor.u32 %v2903_v34, %v2667_v33  ;;  %v2659_v46 = vld [vmem:[#allocation12 + $0x30] sm:$0xf]  ;;  %v2901_v49 = vld [vmem:[#allocation12 + $0x34] sm:$0xf0] }
  0x31   :  { %v3483_v45 = vor.u32 %v2902_v37, %v2669_v38  ;;  %v2900_v50 = vld [vmem:[#allocation12 + $0x34] sm:$0xf]  ;;  %v2661_v51 = vld [vmem:[#allocation12 + $0x38] sm:$0xf0]  ;;  %v3488_v57 = vor.u32 %v2901_v49, %v2659_v46  ;;  %v2651_v62 = vld [vmem:[#allocation12 + $0x20] sm:$0xf] }
  0x32   :  { %331 = vmatpush.bf16.msra.mxu2 %v3463_v21  ;;  %v3492_v58 = vor.u32 %v2900_v50, %v2661_v51  ;;  %v2896_v9 = vld [vmem:[#allocation12 + $0x14] sm:$0xf]  ;;  %v2645_v10 = vld [vmem:[#allocation12 + $0x18] sm:$0xf0]  ;;  %v2635_v15 = vld [vmem:[#allocation12] sm:$0xf] }
  0x33   :  { %440 = vmatpush.bf16.msrb.mxu0 %v3422_v35  ;;  %344 = vmatpush.bf16.msra.mxu3 %v3467_v22  ;;  %v3512_v14 = vor.u32 %v2896_v9, %v2645_v10  ;;  %v2895_v19 = vld [vmem:[#allocation12 + $0x4] sm:$0xf0]  ;;  %v2894_v20 = vld [vmem:[#allocation12 + $0x4] sm:$0xf]  ;;  %v2637_v26 = vld [vmem:[#allocation12 + $0x8] sm:$0xf0] }
  0x34   :  { %453 = vmatpush.bf16.msrb.mxu1 %v3425_v36  ;;  %v2819_v27 = vld [vmem:[#allocation10 + $0x70] sm:$0xf]  ;;  %v2893_v28 = vld [vmem:[#allocation10 + $0x74] sm:$0xf0]  ;;  %v2892_v34 = vld [vmem:[#allocation10 + $0x74] sm:$0xf]  ;;  %v3516_v38 = vor.u32 %v2895_v19, %v2635_v15 }
  0x35   :  { %v2821_v37 = vld [vmem:[#allocation10 + $0x78] sm:$0xf0]  ;;  %v2811_v46 = vld [vmem:[#allocation10 + $0x60] sm:$0xf]  ;;  %v2891_v49 = vld [vmem:[#allocation10 + $0x64] sm:$0xf0] }
  0x36   :  { %332 = vmatpush.bf16.msra.mxu2 %v3471_v31  ;;  %v2890_v51 = vld [vmem:[#allocation10 + $0x64] sm:$0xf]  ;;  %v2797_v9 = vld [vmem:[#allocation10 + $0x48] sm:$0xf0]  ;;  %v2787_v15 = vld [vmem:[#allocation10 + $0x30] sm:$0xf] }
  0x37   :  { %441 = vmatpush.bf16.msrb.mxu0 %v3428_v41  ;;  %345 = vmatpush.bf16.msra.mxu3 %v3475_v32  ;;  %v2885_v19 = vld [vmem:[#allocation10 + $0x34] sm:$0xf0]  ;;  %s2595_s23 = sshll.u32 %s4537_s9, 4  ;;  %s2596_s23 = int_to_ptr.hbm [resolvable:$true] %s2595_s23 }
  0x38   :  { %454 = vmatpush.bf16.msrb.mxu1 %v3431_v42 }
  0x3a   :  { %333 = vmatpush.bf16.msra.mxu2 %v3479_v43 }
  0x3b   :  { %442 = vmatpush.bf16.msrb.mxu0 %v3434_v47  ;;  %346 = vmatpush.bf16.msra.mxu3 %v3483_v45 }
  0x3c   :  { %455 = vmatpush.bf16.msrb.mxu1 %v3437_v48 }
  0x3e   :  { %334 = vmatpush.bf16.msra.mxu2 %v3488_v57 }
  0x3f   :  { %443 = vmatpush.bf16.msrb.mxu0 %v3440_v53  ;;  %347 = vmatpush.bf16.msra.mxu3 %v3492_v58 }
  0x40   :  { %456 = vmatpush.bf16.msrb.mxu1 %v3443_v54 }
  0x43   :  { %444 = vmatpush.bf16.msrb.mxu0 %v3446_v59 }
  0x44   :  { %457 = vmatpush.bf16.msrb.mxu1 %v3449_v60 }
  0x46   :  { %445 = vmatmul.bf16.vlgmr.msrb.gmra.mxu0 %v3319_v61 }
  0x47   :  { %458 = vmatmul.bf16.vlgmr.msrb.gmra.mxu1 %v3319_v61  ;;  %619 = vmatpush.bf16.msra.mxu0 %v3458_v12 }
  0x48   :  { %632 = vmatpush.bf16.msra.mxu1 %v3460_v18 }
  0x4b   :  { %620 = vmatpush.bf16.msra.mxu0 %v3463_v21 }
  0x4c   :  { %633 = vmatpush.bf16.msra.mxu1 %v3467_v22 }
  0x4f   :  { %621 = vmatpush.bf16.msra.mxu0 %v3471_v31 }
  0x50   :  { %634 = vmatpush.bf16.msra.mxu1 %v3475_v32 }
  0x53   :  { %622 = vmatpush.bf16.msra.mxu0 %v3479_v43 }
  0x54   :  { %635 = vmatpush.bf16.msra.mxu1 %v3483_v45 }
  0x57   :  { %623 = vmatpush.bf16.msra.mxu0 %v3488_v57 }
  0x58   :  { %636 = vmatpush.bf16.msra.mxu1 %v3492_v58 }
  0xa3   :  { %v178_v1 = vpop.f32.mrf.mxu0 }
  0xa4   :  { %v179_v2 = vadd.f32 %v178_v1, %v136_v63  ;;  %v192_v3 = vpop.f32.mrf.mxu1  ;;  %v2898_v1 = vld [vmem:[#allocation12 + $0x24] sm:$0xf] }
  0xa5   :  { %v193_v4 = vadd.f32 %v192_v3, %v137_v0 }
  0xa6   :  { %197 = vst [vmem:[#allocation2] sm:$0xff] %v179_v2  ;;  %v2653_v2 = vld [vmem:[#allocation12 + $0x28] sm:$0xf0] }
  0xa7   :  { %198 = vst [vmem:[#allocation2 + $0x8] sm:$0xff] %v193_v4 }
  0xab   :  { %v180_v5 = vpop.f32.mrf.mxu0 }
  0xac   :  { %v181_v6 = vadd.f32 %v180_v5, %v136_v63  ;;  %v194_v7 = vpop.f32.mrf.mxu1  ;;  %v2899_v63 = vld [vmem:[#allocation12 + $0x24] sm:$0xf0] }
  0xad   :  { %v195_v8 = vadd.f32 %v194_v7, %v137_v0  ;;  %v3496_v5 = vor.u32 %v2899_v63, %v2651_v62  ;;  %v2643_v7 = vld [vmem:[#allocation12 + $0x10] sm:$0xf]  ;;  %v2889_v63 = vld [vmem:[#allocation10 + $0x54] sm:$0xf0] }
  0xae   :  { %199 = vst [vmem:[#allocation2 + $0x10] sm:$0xff] %v181_v6  ;;  %v356_v52 = vld [vmem:[#allocation2] ss:$8 sm:$0x3]  ;;  %v3500_v6 = vor.u32 %v2898_v1, %v2653_v2  ;;  %v2805_v1 = vld [vmem:[#allocation10 + $0x58] sm:$0xf0] }
  0xaf   :  { %200 = vst [vmem:[#allocation2 + $0x18] sm:$0xff] %v195_v8  ;;  %v2897_v8 = vld [vmem:[#allocation12 + $0x14] sm:$0xf0]  ;;  %335 = vmatpush.bf16.msra.mxu2 %v3496_v5  ;;  %624 = vmatpush.bf16.msra.mxu0 %v3496_v5  ;;  %v2803_v62 = vld [vmem:[#allocation10 + $0x50] sm:$0xf] }
  0xb0   :  { %v3506_v13 = vor.u32 %v2897_v8, %v2643_v7  ;;  %348 = vmatpush.bf16.msra.mxu3 %v3500_v6  ;;  %637 = vmatpush.bf16.msra.mxu1 %v3500_v6  ;;  %v3547_v2 = vor.u32 %v2889_v63, %v2803_v62  ;;  %v2887_v7 = vld [vmem:[#allocation10 + $0x44] sm:$0xf0]  ;;  %v2886_v8 = vld [vmem:[#allocation10 + $0x44] sm:$0xf]  ;;  %v2880_v62 = vld [vmem:[#allocation10 + $0x14] sm:$0xf] }
  0xb1   :  { %v3557_v10 = vor.u32 %v2886_v8, %v2797_v9  ;;  %v2773_v63 = vld [vmem:[#allocation10 + $0x18] sm:$0xf0]  ;;  %v2878_v8 = vld [vmem:[#allocation10 + $0x4] sm:$0xf]  ;;  %v2765_v9 = vld [vmem:[#allocation10 + $0x8] sm:$0xf0] }
  0xb3   :  { %336 = vmatpush.bf16.msra.mxu2 %v3506_v13  ;;  %625 = vmatpush.bf16.msra.mxu0 %v3506_v13 }
  0xb4   :  { %349 = vmatpush.bf16.msra.mxu3 %v3512_v14  ;;  %638 = vmatpush.bf16.msra.mxu1 %v3512_v14 }
  0xb7   :  { %337 = vmatpush.bf16.msra.mxu2 %v3516_v38  ;;  %626 = vmatpush.bf16.msra.mxu0 %v3516_v38 }
  0xba   :  { %338 = vmatmul.bf16.vlgmr.msra.gmra.mxu2 %v3319_v61 }
  0xc3   :  { %v446_v39 = vpop.f32.mrf.mxu0 }
  0xc4   :  { %v459_v40 = vpop.f32.mrf.mxu1 }
  0xc5   :  { %v465_v44 = vrot.slane %v459_v40, 7  ;;  %v3522_v40 = vor.u32 %v2893_v28, %v2819_v27  ;;  %v2779_v28 = vld [vmem:[#allocation10 + $0x20] sm:$0xf] }
  0xc7   :  { %v467_v55 = vsel %vm466_vm1, %v446_v39, %v465_v44  ;;  %v3520_v39 = vor.u32 %v2894_v20, %v2637_v26  ;;  %v3524_v44 = vor.u32 %v2892_v34, %v2821_v37  ;;  %569 = vmatpush.bf16.msrb.mxu2 %v3522_v40  ;;  %698 = vmatpush.bf16.msrb.mxu0 %v3522_v40  ;;  %v2884_v20 = vld [vmem:[#allocation10 + $0x34] sm:$0xf]  ;;  %v2882_v34 = vld [vmem:[#allocation10 + $0x24] sm:$0xf]  ;;  %v2781_v37 = vld [vmem:[#allocation10 + $0x28] sm:$0xf0] }
  0xc8   :  { %v469_v56 = vadd.f32 %v467_v55, %v356_v52  ;;  %v2813_v52 = vld [vmem:[#allocation10 + $0x68] sm:$0xf0]  ;;  %v3536_v55 = vor.u32 %v2891_v49, %v2811_v46  ;;  %v3563_v26 = vor.u32 %v2885_v19, %v2787_v15  ;;  %v3573_v49 = vor.u32 %v2882_v34, %v2781_v37 }
  0xc9   :  { %350 = vmatpush.bf16.msra.mxu3 %v3520_v39  ;;  %639 = vmatpush.bf16.msra.mxu1 %v3520_v39  ;;  %v3589_v19 = vor.u32 %v2878_v8, %v2765_v9  ;;  %v249_v8 = vld [vmem:[%s4534_s6] sm:$0x3] }
  0xca   :  { %2931 = vtanh.f32 %v469_v56  ;;  %v472_v0 = vrot.slane %v469_v56, 1  ;;  %v3538_v56 = vor.u32 %v2890_v51, %v2813_v52  ;;  %4550 = vst [vmem:[#allocation21_spill] sm:$0xff] %v3573_v49  ;;  %v2771_v51 = vld [vmem:[#allocation10 + $0x10] sm:$0xf]  ;;  %v2881_v52 = vld [vmem:[#allocation10 + $0x14] sm:$0xf0] }
  0xcb   :  { %v448_v3 = vpop.f32.mrf.mxu0  ;;  %570 = vmatpush.bf16.msrb.mxu2 %v3536_v55  ;;  %699 = vmatpush.bf16.msrb.mxu0 %v3536_v55  ;;  %4554 = vst [vmem:[#allocation25_spill] sm:$0xff] %v3589_v19  ;;  %v3653_v9 = vperm.slane %v249_v8, 0 }
  0xcc   :  { %v461_v4 = vpop.f32.mrf.mxu1  ;;  %2933 = vtanh.f32 %v472_v0  ;;  %v2888_v0 = vld [vmem:[#allocation10 + $0x54] sm:$0xf]  ;;  %351 = vmatmul.bf16.vlgmr.msra.gmra.mxu3 %v3319_v61 }
  0xcd   :  { %582 = vmatpush.bf16.msrb.mxu3 %v3524_v44  ;;  %711 = vmatpush.bf16.msrb.mxu1 %v3524_v44  ;;  %v3549_v3 = vor.u32 %v2888_v0, %v2805_v1  ;;  %v2795_v4 = vld [vmem:[#allocation10 + $0x40] sm:$0xf]  ;;  %v3579_v0 = vor.u32 %v2881_v52, %v2771_v51  ;;  %v3581_v1 = vor.u32 %v2880_v62, %v2773_v63 }
  0xce   :  { %v3555_v61 = vor.u32 %v2887_v7, %v2795_v4  ;;  %v2763_v4 = vld [vmem:[#allocation10] sm:$0xf]  ;;  %v2879_v7 = vld [vmem:[#allocation10 + $0x4] sm:$0xf0] }
  0xcf   :  { %571 = vmatpush.bf16.msrb.mxu2 %v3547_v2  ;;  %700 = vmatpush.bf16.msrb.mxu0 %v3547_v2  ;;  %4551 = vst [vmem:[#allocation22_spill] sm:$0xff] %v3579_v0  ;;  %v3587_v15 = vor.u32 %v2879_v7, %v2763_v4 }
  0xd0   :  { %v3503_v11 = vpop.eup %2931  ;;  %4552 = vst [vmem:[#allocation23_spill] sm:$0xff] %v3581_v1 }
  0xd1   :  { %479 = vrot.lane.b32.xlu0 %v3503_v11, %s3314_s27  ;;  %583 = vmatpush.bf16.msrb.mxu3 %v3538_v56  ;;  %4553 = vst [vmem:[#allocation24_spill] sm:$0xff] %v3587_v15 }
  0xd2   :  { %v2934_v25 = vpop.eup %2933  ;;  %712 = vmatpush.bf16.msrb.mxu1 %v3538_v56 }
  0xd3   :  { %v477_v33 = vmul.f32 0.5, %v2934_v25  ;;  %v2789_v25 = vld [vmem:[#allocation10 + $0x38] sm:$0xf0]  ;;  %572 = vmatpush.bf16.msrb.mxu2 %v3555_v61  ;;  %701 = vmatpush.bf16.msrb.mxu0 %v3555_v61 }
  0xd4   :  { %v3565_v27 = vor.u32 %v2884_v20, %v2789_v25  ;;  %v475_v20 = vmul.f32 0.5, %v3503_v11 }
  0xd5   :  { %v3527_v50 = vadd.f32 0.5, %v477_v33  ;;  %584 = vmatpush.bf16.msrb.mxu3 %v3549_v3  ;;  %v2883_v33 = vld [vmem:[#allocation10 + $0x24] sm:$0xf0] }
  0xd6   :  { %713 = vmatpush.bf16.msrb.mxu1 %v3549_v3  ;;  %v3571_v46 = vor.u32 %v2883_v33, %v2779_v28  ;;  %v476_v25 = vadd.f32 0.5, %v475_v20  ;;  %v3655_v20 = vperm.slane %v249_v8, 1 }
  0xd7   :  { %573 = vmatpush.bf16.msrb.mxu2 %v3563_v26  ;;  %702 = vmatpush.bf16.msrb.mxu0 %v3563_v26  ;;  %v483_v33 = vmul.f32 0.0, %v3527_v50 }
  0xd8   :  { %4555 = vst [vmem:[#allocation26_spill] sm:$0xff] %v3655_v20 }
  0xd9   :  { %481 = vrot.lane.b32.xlu0 %v3527_v50, %s3314_s27  ;;  %585 = vmatpush.bf16.msrb.mxu3 %v3557_v10 }
  0xda   :  { %714 = vmatpush.bf16.msrb.mxu1 %v3557_v10 }
  0xdb   :  { %574 = vmatpush.bf16.msrb.mxu2 %v3571_v46  ;;  %703 = vmatpush.bf16.msrb.mxu0 %v3571_v46 }
  0xdd   :  { %586 = vmatpush.bf16.msrb.mxu3 %v3565_v27 }
  0xde   :  { %715 = vmatpush.bf16.msrb.mxu1 %v3565_v27 }
  0xdf   :  { %575 = vmatpush.bf16.msrb.mxu2 %v3579_v0  ;;  %704 = vmatpush.bf16.msrb.mxu0 %v3579_v0 }
  0xe1   :  { %587 = vmatpush.bf16.msrb.mxu3 %v3573_v49 }
  0xe2   :  { %716 = vmatpush.bf16.msrb.mxu1 %v3573_v49 }
  0xe3   :  { %576 = vmatpush.bf16.msrb.mxu2 %v3587_v15  ;;  %705 = vmatpush.bf16.msrb.mxu0 %v3587_v15 }
  0xe5   :  { %588 = vmatpush.bf16.msrb.mxu3 %v3581_v1 }
  0xe6   :  { %717 = vmatpush.bf16.msrb.mxu1 %v3581_v1 }
  0xe7   :  { %647 = vmatpush.bf16.msra.mxu2 %v3405_v16 }
  0xe9   :  { %589 = vmatpush.bf16.msrb.mxu3 %v3589_v19 }
  0xea   :  { %718 = vmatpush.bf16.msrb.mxu1 %v3589_v19 }
  0xeb   :  { %648 = vmatpush.bf16.msra.mxu2 %v3410_v23 }
  0xed   :  { %660 = vmatpush.bf16.msra.mxu3 %v3407_v17 }
  0xef   :  { %649 = vmatpush.bf16.msra.mxu2 %v3416_v29 }
  0xf1   :  { %661 = vmatpush.bf16.msra.mxu3 %v3413_v24 }
  0xf3   :  { %650 = vmatpush.bf16.msra.mxu2 %v3422_v35 }
  0xf5   :  { %662 = vmatpush.bf16.msra.mxu3 %v3419_v30 }
  0xf7   :  { %651 = vmatpush.bf16.msra.mxu2 %v3428_v41 }
  0xf9   :  { %663 = vmatpush.bf16.msra.mxu3 %v3425_v36 }
  0xfb   :  { %652 = vmatpush.bf16.msra.mxu2 %v3434_v47 }
  0xfd   :  { %664 = vmatpush.bf16.msra.mxu3 %v3431_v42 }
  0xff   :  { %653 = vmatpush.bf16.msra.mxu2 %v3440_v53 }
 0x101   :  { %665 = vmatpush.bf16.msra.mxu3 %v3437_v48 }
 0x103   :  { %654 = vmatpush.bf16.msra.mxu2 %v3446_v59 }
 0x105   :  { %666 = vmatpush.bf16.msra.mxu3 %v3443_v54 }
 0x109   :  { %667 = vmatpush.bf16.msra.mxu3 %v3449_v60 }
 0x13d   :  { %v339_v11 = vpop.f32.mrf.mxu2 }
 0x143   :  { %v480_v28 = vpop.permute.xlu0 %479 }
 0x144   :  { %v484_v34 = vmul.f32 %v480_v28, %v476_v25 }
 0x145   :  { %v341_v4 = vpop.f32.mrf.mxu2 }
 0x146   :  { %v3615_v37 = vadd.f32 %v484_v34, %v483_v33 }
 0x148   :  { %2935 = vtanh.f32 %v3615_v37 }
 0x14b   :  { %v482_v52 = vpop.permute.xlu0 %481 }
 0x14e   :  { %v2936_v51 = vpop.eup %2935 }
 0x14f   :  { %v487_v62 = vmul.f32 %v2936_v51, %v482_v52  ;;  %v352_v50 = vpop.f32.mrf.mxu3 }
 0x151   :  { %v488_v63 = vpack.c.bf16 %v487_v62, %v487_v62 }
 0x153   :  { %577 = vmatmul.bf16.vlgmr.msrb.gmra.mxu2 %v488_v63  ;;  %590 = vmatmul.bf16.vlgmr.msrb.gmra.mxu3 %v488_v63 }
 0x154   :  { %743 = vmatpush.bf16.msrb.mxu2 %v3458_v12  ;;  %756 = vmatpush.bf16.msrb.mxu3 %v3460_v18 }
 0x157   :  { %v354_v7 = vpop.f32.mrf.mxu3 }
 0x158   :  { %744 = vmatpush.bf16.msrb.mxu2 %v3463_v21  ;;  %757 = vmatpush.bf16.msrb.mxu3 %v3467_v22 }
 0x15c   :  { %745 = vmatpush.bf16.msrb.mxu2 %v3471_v31  ;;  %758 = vmatpush.bf16.msrb.mxu3 %v3475_v32 }
 0x160   :  { %746 = vmatpush.bf16.msrb.mxu2 %v3479_v43  ;;  %759 = vmatpush.bf16.msrb.mxu3 %v3483_v45 }
 0x163   :  { %655 = vmatmul.bf16.vlgmr.msra.gmra.mxu2 %v488_v63  ;;  %668 = vmatmul.bf16.vlgmr.msra.gmra.mxu3 %v488_v63 }
 0x164   :  { %747 = vmatpush.bf16.msrb.mxu2 %v3488_v57  ;;  %760 = vmatpush.bf16.msrb.mxu3 %v3492_v58 }
 0x168   :  { %748 = vmatpush.bf16.msrb.mxu2 %v3496_v5  ;;  %761 = vmatpush.bf16.msrb.mxu3 %v3500_v6 }
 0x16c   :  { %749 = vmatpush.bf16.msrb.mxu2 %v3506_v13  ;;  %762 = vmatpush.bf16.msrb.mxu3 %v3512_v14 }
 0x170   :  { %750 = vmatpush.bf16.msrb.mxu2 %v3516_v38  ;;  %763 = vmatpush.bf16.msrb.mxu3 %v3520_v39 }
 0x174   :  { %822 = vmatpush.bf16.msra.mxu2 %v3522_v40  ;;  %835 = vmatpush.bf16.msra.mxu3 %v3524_v44 }
 0x178   :  { %823 = vmatpush.bf16.msra.mxu2 %v3536_v55  ;;  %836 = vmatpush.bf16.msra.mxu3 %v3538_v56 }
 0x17c   :  { %824 = vmatpush.bf16.msra.mxu2 %v3547_v2  ;;  %837 = vmatpush.bf16.msra.mxu3 %v3549_v3 }
 0x180   :  { %825 = vmatpush.bf16.msra.mxu2 %v3555_v61  ;;  %838 = vmatpush.bf16.msra.mxu3 %v3557_v10 }
 0x184   :  { %826 = vmatpush.bf16.msra.mxu2 %v3563_v26  ;;  %839 = vmatpush.bf16.msra.mxu3 %v3565_v27 }
 0x188   :  { %827 = vmatpush.bf16.msra.mxu2 %v3571_v46  ;;  %840 = vmatpush.bf16.msra.mxu3 %v3573_v49  ;;  %v646_v49 = vld [vmem:[#allocation2 + $0x1] ss:$8 sm:$0x3] }
 0x18c   :  { %828 = vmatpush.bf16.msra.mxu2 %v3579_v0  ;;  %841 = vmatpush.bf16.msra.mxu3 %v3581_v1 }
 0x190   :  { %829 = vmatpush.bf16.msra.mxu2 %v3587_v15  ;;  %842 = vmatpush.bf16.msra.mxu3 %v3589_v19 }
 0x1d6   :  { %v578_v25 = vpop.f32.mrf.mxu2  ;;  %v591_v28 = vpop.f32.mrf.mxu3 }
 0x1d7   :  { %v579_v33 = vadd.f32 %v578_v25, %v339_v11  ;;  %v592_v34 = vadd.f32 %v591_v28, %v352_v50 }
 0x1d9   :  { %v600_v51 = vadd.f32 %v3653_v9, %v579_v33  ;;  %v601_v52 = vadd.f32 %v3655_v20, %v592_v34 }
 0x1db   :  { %2937 = vtanh.f32 %v600_v51 }
 0x1dc   :  { %2939 = vtanh.f32 %v601_v52 }
 0x1de   :  { %v580_v62 = vpop.f32.mrf.mxu2  ;;  %v593_v63 = vpop.f32.mrf.mxu3 }
 0x1e1   :  { %v2938_v4 = vpop.eup %2937 }
 0x1e2   :  { %v2940_v7 = vpop.eup %2939  ;;  %608 = vrot.lane.b32.xlu1 %v2938_v4, %s3314_s27 }
 0x1e3   :  { %v606_v19 = vmul.f32 0.5, %v2940_v7 }
 0x1e5   :  { %v607_v0 = vadd.f32 0.5, %v606_v19 }
 0x1e6   :  { %v656_v15 = vpop.f32.mrf.mxu2  ;;  %v669_v8 = vpop.f32.mrf.mxu3 }
 0x1e7   :  { %v675_v1 = vrot.slane %v669_v8, 7 }
 0x1e9   :  { %v676_v11 = vsel %vm466_vm1, %v656_v15, %v675_v1  ;;  %v604_v15 = vmul.f32 0.5, %v2938_v4 }
 0x1ea   :  { %v678_v50 = vadd.f32 %v676_v11, %v646_v49  ;;  %610 = vrot.lane.b32.xlu1 %v607_v0, %s3314_s27 }
 0x1eb   :  { %v605_v11 = vadd.f32 0.5, %v604_v15 }
 0x1ec   :  { %2941 = vtanh.f32 %v678_v50  ;;  %v681_v25 = vrot.slane %v678_v50, 1 }
 0x1ee   :  { %v658_v28 = vpop.f32.mrf.mxu2  ;;  %v671_v33 = vpop.f32.mrf.mxu3  ;;  %2943 = vtanh.f32 %v681_v25  ;;  %v612_v25 = vmul.f32 0.0, %v607_v0 }
 0x1f2   :  { %v2942_v34 = vpop.eup %2941 }
 0x1f3   :  { %688 = vrot.lane.b32.xlu2 %v2942_v34, %s3314_s27  ;;  %v684_v19 = vmul.f32 0.5, %v2942_v34 }
 0x1f4   :  { %v2944_v51 = vpop.eup %2943 }
 0x1f5   :  { %v686_v52 = vmul.f32 0.5, %v2944_v51  ;;  %v685_v63 = vadd.f32 0.5, %v684_v19  ;;  %v4557_v19 = vld [vmem:[#allocation22_spill] sm:$0xff] }
 0x1f7   :  { %v687_v62 = vadd.f32 0.5, %v686_v52 }
 0x1f9   :  { %v692_v49 = vmul.f32 %v687_v62, %v3615_v37 }
 0x1fb   :  { %690 = vrot.lane.b32.xlu2 %v687_v62, %s3314_s27  ;;  %v4556_v62 = vld [vmem:[#allocation21_spill] sm:$0xff] }
 0x24d   :  { %v689_v7 = vpop.permute.xlu2 %688 }
 0x24e   :  { %v693_v1 = vmul.f32 %v689_v7, %v685_v63  ;;  %v4558_v63 = vld [vmem:[#allocation23_spill] sm:$0xff]  ;;  %v4559_v7 = vld [vmem:[#allocation24_spill] sm:$0xff] }
 0x250   :  { %v3665_v8 = vadd.f32 %v693_v1, %v692_v49  ;;  %v4560_v49 = vld [vmem:[#allocation25_spill] sm:$0xff] }
 0x254   :  { %v609_v50 = vpop.permute.xlu1 %608 }
 0x255   :  { %v613_v28 = vmul.f32 %v609_v50, %v605_v11  ;;  %v691_v37 = vpop.permute.xlu2 %690 }
 0x257   :  { %v3667_v33 = vadd.f32 %v613_v28, %v612_v25 }
 0x259   :  { %2945 = vtanh.f32 %v3667_v33 }
 0x25a   :  { %2947 = vtanh.f32 %v3665_v8 }
 0x25c   :  { %v611_v52 = vpop.permute.xlu1 %610 }
 0x25f   :  { %v2946_v51 = vpop.eup %2945 }
 0x260   :  { %v616_v20 = vmul.f32 %v2946_v51, %v611_v52  ;;  %v2948_v0 = vpop.eup %2947 }
 0x261   :  { %v696_v4 = vmul.f32 %v2948_v0, %v691_v37  ;;  %v4561_v0 = vld [vmem:[#allocation26_spill] sm:$0xff] }
 0x262   :  { %617 = vst [vmem:[#allocation3] sm:$0x1] %v616_v20  ;;  %v618_v34 = vpack.c.bf16 %v616_v20, %v616_v20 }
 0x263   :  { %v697_v20 = vpack.c.bf16 %v696_v4, %v696_v4 }
 0x264   :  { %627 = vmatmul.bf16.vlgmr.msra.gmra.mxu0 %v618_v34  ;;  %640 = vmatmul.bf16.vlgmr.msra.gmra.mxu1 %v618_v34 }
 0x265   :  { %771 = vmatpush.bf16.msra.mxu0 %v3405_v16  ;;  %784 = vmatpush.bf16.msra.mxu1 %v3407_v17 }
 0x269   :  { %772 = vmatpush.bf16.msra.mxu0 %v3410_v23  ;;  %785 = vmatpush.bf16.msra.mxu1 %v3413_v24 }
 0x26d   :  { %773 = vmatpush.bf16.msra.mxu0 %v3416_v29  ;;  %786 = vmatpush.bf16.msra.mxu1 %v3419_v30 }
 0x271   :  { %774 = vmatpush.bf16.msra.mxu0 %v3422_v35  ;;  %787 = vmatpush.bf16.msra.mxu1 %v3425_v36 }
 0x274   :  { %706 = vmatmul.bf16.vlgmr.msrb.gmra.mxu0 %v697_v20  ;;  %719 = vmatmul.bf16.vlgmr.msrb.gmra.mxu1 %v697_v20 }
 0x275   :  { %775 = vmatpush.bf16.msra.mxu0 %v3428_v41  ;;  %788 = vmatpush.bf16.msra.mxu1 %v3431_v42 }
 0x279   :  { %776 = vmatpush.bf16.msra.mxu0 %v3434_v47  ;;  %789 = vmatpush.bf16.msra.mxu1 %v3437_v48 }
 0x27d   :  { %777 = vmatpush.bf16.msra.mxu0 %v3440_v53  ;;  %790 = vmatpush.bf16.msra.mxu1 %v3443_v54 }
 0x281   :  { %778 = vmatpush.bf16.msra.mxu0 %v3446_v59  ;;  %791 = vmatpush.bf16.msra.mxu1 %v3449_v60 }
 0x284   :  { %779 = vmatmul.bf16.vlgmr.msra.gmra.mxu0 %v697_v20  ;;  %792 = vmatmul.bf16.vlgmr.msra.gmra.mxu1 %v697_v20 }
 0x285   :  { %867 = vmatpush.bf16.msrb.mxu0 %v3458_v12  ;;  %880 = vmatpush.bf16.msrb.mxu1 %v3460_v18 }
 0x289   :  { %868 = vmatpush.bf16.msrb.mxu0 %v3463_v21  ;;  %881 = vmatpush.bf16.msrb.mxu1 %v3467_v22 }
 0x28d   :  { %869 = vmatpush.bf16.msrb.mxu0 %v3471_v31  ;;  %882 = vmatpush.bf16.msrb.mxu1 %v3475_v32 }
 0x291   :  { %870 = vmatpush.bf16.msrb.mxu0 %v3479_v43  ;;  %883 = vmatpush.bf16.msrb.mxu1 %v3483_v45 }
 0x295   :  { %871 = vmatpush.bf16.msrb.mxu0 %v3488_v57  ;;  %884 = vmatpush.bf16.msrb.mxu1 %v3492_v58 }
 0x299   :  { %872 = vmatpush.bf16.msrb.mxu0 %v3496_v5  ;;  %885 = vmatpush.bf16.msrb.mxu1 %v3500_v6 }
 0x29d   :  { %873 = vmatpush.bf16.msrb.mxu0 %v3506_v13  ;;  %886 = vmatpush.bf16.msrb.mxu1 %v3512_v14 }
 0x2a1   :  { %874 = vmatpush.bf16.msrb.mxu0 %v3516_v38  ;;  %887 = vmatpush.bf16.msrb.mxu1 %v3520_v39 }
 0x2a5   :  { %946 = vmatpush.bf16.msra.mxu0 %v3522_v40  ;;  %959 = vmatpush.bf16.msra.mxu1 %v3524_v44 }
 0x2a9   :  { %947 = vmatpush.bf16.msra.mxu0 %v3536_v55  ;;  %960 = vmatpush.bf16.msra.mxu1 %v3538_v56 }
 0x2ad   :  { %948 = vmatpush.bf16.msra.mxu0 %v3547_v2  ;;  %961 = vmatpush.bf16.msra.mxu1 %v3549_v3 }
 0x2b1   :  { %949 = vmatpush.bf16.msra.mxu0 %v3555_v61  ;;  %962 = vmatpush.bf16.msra.mxu1 %v3557_v10 }
 0x2b5   :  { %950 = vmatpush.bf16.msra.mxu0 %v3563_v26  ;;  %963 = vmatpush.bf16.msra.mxu1 %v3565_v27 }
 0x2b9   :  { %951 = vmatpush.bf16.msra.mxu0 %v3571_v46  ;;  %964 = vmatpush.bf16.msra.mxu1 %v4556_v62 }
 0x2bd   :  { %952 = vmatpush.bf16.msra.mxu0 %v4557_v19  ;;  %965 = vmatpush.bf16.msra.mxu1 %v4558_v63 }
 0x2c1   :  { %953 = vmatpush.bf16.msra.mxu0 %v4559_v7  ;;  %966 = vmatpush.bf16.msra.mxu1 %v4560_v49 }
 0x2e1   :  { %v628_v1 = vpop.f32.mrf.mxu0  ;;  %v641_v15 = vpop.f32.mrf.mxu1 }
 0x2e9   :  { %v630_v11 = vpop.f32.mrf.mxu0  ;;  %v643_v50 = vpop.f32.mrf.mxu1 }
 0x2f1   :  { %v707_v25 = vpop.f32.mrf.mxu0  ;;  %v720_v28 = vpop.f32.mrf.mxu1 }
 0x2f2   :  { %v708_v51 = vadd.f32 %v707_v25, %v628_v1  ;;  %v721_v52 = vadd.f32 %v720_v28, %v641_v15  ;;  %v770_v1 = vld [vmem:[#allocation2 + $0x2] ss:$8 sm:$0x3] }
 0x2f4   :  { %v724_v34 = vadd.f32 %v708_v51, %v3653_v9  ;;  %v725_v37 = vadd.f32 %v721_v52, %v4561_v0 }
 0x2f6   :  { %2949 = vtanh.f32 %v724_v34 }
 0x2f7   :  { %2951 = vtanh.f32 %v725_v37 }
 0x2f9   :  { %v709_v4 = vpop.f32.mrf.mxu0  ;;  %v722_v20 = vpop.f32.mrf.mxu1 }
 0x2fc   :  { %v2950_v63 = vpop.eup %2949 }
 0x2fd   :  { %v2952_v7 = vpop.eup %2951  ;;  %732 = vrot.lane.b32.xlu0 %v2950_v63, %s3314_s27 }
 0x2fe   :  { %v730_v49 = vmul.f32 0.5, %v2952_v7 }
 0x300   :  { %v731_v19 = vadd.f32 0.5, %v730_v49 }
 0x301   :  { %v793_v11 = vpop.f32.mrf.mxu1  ;;  %v780_v50 = vpop.f32.mrf.mxu0 }
 0x302   :  { %v799_v62 = vrot.slane %v793_v11, 7  ;;  %734 = vrot.lane.b32.xlu1 %v731_v19, %s3314_s27 }
 0x304   :  { %v800_v15 = vsel %vm466_vm1, %v780_v50, %v799_v62  ;;  %v728_v50 = vmul.f32 0.5, %v2950_v63 }
 0x305   :  { %v802_v25 = vadd.f32 %v800_v15, %v770_v1 }
 0x306   :  { %v729_v15 = vadd.f32 0.5, %v728_v50 }
 0x307   :  { %2953 = vtanh.f32 %v802_v25  ;;  %v805_v28 = vrot.slane %v802_v25, 1 }
 0x309   :  { %v782_v51 = vpop.f32.mrf.mxu0  ;;  %v795_v52 = vpop.f32.mrf.mxu1  ;;  %2955 = vtanh.f32 %v805_v28  ;;  %v736_v28 = vmul.f32 %v731_v19, %v3667_v33 }
 0x30d   :  { %v2954_v34 = vpop.eup %2953 }
 0x30e   :  { %812 = vrot.lane.b32.xlu2 %v2954_v34, %s3314_s27  ;;  %v808_v4 = vmul.f32 0.5, %v2954_v34 }
 0x30f   :  { %v2956_v37 = vpop.eup %2955 }
 0x310   :  { %v810_v7 = vmul.f32 0.5, %v2956_v37  ;;  %v809_v20 = vadd.f32 0.5, %v808_v4 }
 0x312   :  { %v811_v49 = vadd.f32 0.5, %v810_v7 }
 0x314   :  { %814 = vrot.lane.b32.xlu0 %v811_v49, %s3314_s27  ;;  %v816_v0 = vmul.f32 %v811_v49, %v3665_v8  ;;  %v4563_v49 = vld [vmem:[#allocation22_spill] sm:$0xff] }
 0x368   :  { %v813_v11 = vpop.permute.xlu2 %812 }
 0x369   :  { %v817_v62 = vmul.f32 %v813_v11, %v809_v20  ;;  %v4564_v20 = vld [vmem:[#allocation23_spill] sm:$0xff]  ;;  %v4565_v11 = vld [vmem:[#allocation24_spill] sm:$0xff] }
 0x36b   :  { %v3727_v1 = vadd.f32 %v817_v62, %v816_v0  ;;  %v4562_v0 = vld [vmem:[#allocation21_spill] sm:$0xff] }
 0x36c   :  { %v4566_v62 = vld [vmem:[#allocation25_spill] sm:$0xff] }
 0x36f   :  { %v733_v25 = vpop.permute.xlu0 %732 }
 0x370   :  { %v737_v51 = vmul.f32 %v733_v25, %v729_v15 }
 0x372   :  { %v3730_v52 = vadd.f32 %v737_v51, %v736_v28 }
 0x374   :  { %2957 = vtanh.f32 %v3730_v52  ;;  %v735_v7 = vpop.permute.xlu1 %734 }
 0x375   :  { %2959 = vtanh.f32 %v3727_v1 }
 0x37a   :  { %v2958_v37 = vpop.eup %2957 }
 0x37b   :  { %v740_v34 = vmul.f32 %v2958_v37, %v735_v7  ;;  %v2960_v33 = vpop.eup %2959 }
 0x37d   :  { %741 = vst [vmem:[#allocation3 + $0x1] sm:$0x1] %v740_v34  ;;  %v742_v4 = vpack.c.bf16 %v740_v34, %v740_v34 }
 0x37f   :  { %751 = vmatmul.bf16.vlgmr.msrb.gmra.mxu2 %v742_v4  ;;  %764 = vmatmul.bf16.vlgmr.msrb.gmra.mxu3 %v742_v4 }
 0x380   :  { %895 = vmatpush.bf16.msrb.mxu2 %v3405_v16  ;;  %908 = vmatpush.bf16.msrb.mxu3 %v3407_v17 }
 0x384   :  { %896 = vmatpush.bf16.msrb.mxu2 %v3410_v23  ;;  %909 = vmatpush.bf16.msrb.mxu3 %v3413_v24 }
 0x386   :  { %v815_v8 = vpop.permute.xlu0 %814 }
 0x387   :  { %v820_v19 = vmul.f32 %v2960_v33, %v815_v8  ;;  %v4567_v8 = vld [vmem:[#allocation26_spill] sm:$0xff] }
 0x388   :  { %897 = vmatpush.bf16.msrb.mxu2 %v3416_v29  ;;  %910 = vmatpush.bf16.msrb.mxu3 %v3419_v30 }
 0x389   :  { %v821_v63 = vpack.c.bf16 %v820_v19, %v820_v19 }
 0x38c   :  { %898 = vmatpush.bf16.msrb.mxu2 %v3422_v35  ;;  %911 = vmatpush.bf16.msrb.mxu3 %v3425_v36 }
 0x38f   :  { %830 = vmatmul.bf16.vlgmr.msra.gmra.mxu2 %v821_v63  ;;  %843 = vmatmul.bf16.vlgmr.msra.gmra.mxu3 %v821_v63 }
 0x390   :  { %899 = vmatpush.bf16.msrb.mxu2 %v3428_v41  ;;  %912 = vmatpush.bf16.msrb.mxu3 %v3431_v42 }
 0x394   :  { %900 = vmatpush.bf16.msrb.mxu2 %v3434_v47  ;;  %913 = vmatpush.bf16.msrb.mxu3 %v3437_v48 }
 0x398   :  { %901 = vmatpush.bf16.msrb.mxu2 %v3440_v53  ;;  %914 = vmatpush.bf16.msrb.mxu3 %v3443_v54 }
 0x39c   :  { %902 = vmatpush.bf16.msrb.mxu2 %v3446_v59  ;;  %915 = vmatpush.bf16.msrb.mxu3 %v3449_v60 }
 0x39f   :  { %903 = vmatmul.bf16.vlgmr.msrb.gmra.mxu2 %v821_v63  ;;  %916 = vmatmul.bf16.vlgmr.msrb.gmra.mxu3 %v821_v63 }
 0x3a0   :  { %991 = vmatpush.bf16.msra.mxu2 %v3458_v12  ;;  %1004 = vmatpush.bf16.msra.mxu3 %v3460_v18 }
 0x3a4   :  { %992 = vmatpush.bf16.msra.mxu2 %v3463_v21  ;;  %1005 = vmatpush.bf16.msra.mxu3 %v3467_v22 }
 0x3a8   :  { %993 = vmatpush.bf16.msra.mxu2 %v3471_v31  ;;  %1006 = vmatpush.bf16.msra.mxu3 %v3475_v32 }
 0x3ac   :  { %994 = vmatpush.bf16.msra.mxu2 %v3479_v43  ;;  %1007 = vmatpush.bf16.msra.mxu3 %v3483_v45 }
 0x3b0   :  { %995 = vmatpush.bf16.msra.mxu2 %v3488_v57  ;;  %1008 = vmatpush.bf16.msra.mxu3 %v3492_v58 }
 0x3b4   :  { %996 = vmatpush.bf16.msra.mxu2 %v3496_v5  ;;  %1009 = vmatpush.bf16.msra.mxu3 %v3500_v6 }
 0x3b8   :  { %997 = vmatpush.bf16.msra.mxu2 %v3506_v13  ;;  %1010 = vmatpush.bf16.msra.mxu3 %v3512_v14 }
 0x3bc   :  { %998 = vmatpush.bf16.msra.mxu2 %v3516_v38  ;;  %1011 = vmatpush.bf16.msra.mxu3 %v3520_v39 }
 0x3c0   :  { %1070 = vmatpush.bf16.msrb.mxu2 %v3522_v40  ;;  %1083 = vmatpush.bf16.msrb.mxu3 %v3524_v44 }
 0x3c4   :  { %1071 = vmatpush.bf16.msrb.mxu2 %v3536_v55  ;;  %1084 = vmatpush.bf16.msrb.mxu3 %v3538_v56 }
 0x3c8   :  { %1072 = vmatpush.bf16.msrb.mxu2 %v3547_v2  ;;  %1085 = vmatpush.bf16.msrb.mxu3 %v3549_v3 }
 0x3cc   :  { %1073 = vmatpush.bf16.msrb.mxu2 %v3555_v61  ;;  %1086 = vmatpush.bf16.msrb.mxu3 %v3557_v10 }
 0x3d0   :  { %1074 = vmatpush.bf16.msrb.mxu2 %v3563_v26  ;;  %1087 = vmatpush.bf16.msrb.mxu3 %v3565_v27 }
 0x3d4   :  { %1075 = vmatpush.bf16.msrb.mxu2 %v3571_v46  ;;  %1088 = vmatpush.bf16.msrb.mxu3 %v4562_v0 }
 0x3d8   :  { %1076 = vmatpush.bf16.msrb.mxu2 %v4563_v49  ;;  %1089 = vmatpush.bf16.msrb.mxu3 %v4564_v20 }
 0x3dc   :  { %1077 = vmatpush.bf16.msrb.mxu2 %v4565_v11  ;;  %1090 = vmatpush.bf16.msrb.mxu3 %v4566_v62 }
 0x402   :  { %v752_v50 = vpop.f32.mrf.mxu2  ;;  %v765_v15 = vpop.f32.mrf.mxu3 }
 0x40a   :  { %v754_v25 = vpop.f32.mrf.mxu2  ;;  %v767_v28 = vpop.f32.mrf.mxu3 }
 0x412   :  { %v831_v51 = vpop.f32.mrf.mxu2  ;;  %v844_v37 = vpop.f32.mrf.mxu3 }
 0x413   :  { %v832_v7 = vadd.f32 %v831_v51, %v752_v50  ;;  %v845_v34 = vadd.f32 %v844_v37, %v765_v15  ;;  %v894_v50 = vld [vmem:[#allocation2 + $0x3] ss:$8 sm:$0x3] }
 0x415   :  { %v848_v4 = vadd.f32 %v832_v7, %v3653_v9  ;;  %v849_v33 = vadd.f32 %v845_v34, %v4567_v8 }
 0x417   :  { %2961 = vtanh.f32 %v848_v4 }
 0x418   :  { %2963 = vtanh.f32 %v849_v33 }
 0x41a   :  { %v833_v19 = vpop.f32.mrf.mxu2  ;;  %v846_v63 = vpop.f32.mrf.mxu3 }
 0x41d   :  { %v2962_v20 = vpop.eup %2961 }
 0x41e   :  { %v2964_v11 = vpop.eup %2963  ;;  %856 = vrot.lane.b32.xlu1 %v2962_v20, %s3314_s27  ;;  %v852_v19 = vmul.f32 0.5, %v2962_v20 }
 0x41f   :  { %v854_v62 = vmul.f32 0.5, %v2964_v11 }
 0x420   :  { %v853_v63 = vadd.f32 0.5, %v852_v19  ;;  %v4569_v19 = vld [vmem:[#allocation22_spill] sm:$0xff] }
 0x421   :  { %v855_v49 = vadd.f32 0.5, %v854_v62 }
 0x422   :  { %v917_v25 = vpop.f32.mrf.mxu3  ;;  %v904_v28 = vpop.f32.mrf.mxu2 }
 0x423   :  { %v923_v0 = vrot.slane %v917_v25, 7  ;;  %858 = vrot.lane.b32.xlu2 %v855_v49, %s3314_s27  ;;  %v860_v8 = vmul.f32 %v855_v49, %v3730_v52 }
 0x425   :  { %v924_v15 = vsel %vm466_vm1, %v904_v28, %v923_v0 }
 0x426   :  { %v926_v51 = vadd.f32 %v924_v15, %v894_v50 }
 0x428   :  { %2965 = vtanh.f32 %v926_v51  ;;  %v929_v37 = vrot.slane %v926_v51, 1 }
 0x42a   :  { %v906_v7 = vpop.f32.mrf.mxu2  ;;  %v919_v34 = vpop.f32.mrf.mxu3  ;;  %2967 = vtanh.f32 %v929_v37 }
 0x42e   :  { %v2966_v4 = vpop.eup %2965 }
 0x42f   :  { %936 = vrot.lane.b32.xlu0 %v2966_v4, %s3314_s27  ;;  %v932_v37 = vmul.f32 0.5, %v2966_v4 }
 0x430   :  { %v2968_v33 = vpop.eup %2967 }
 0x431   :  { %v934_v11 = vmul.f32 0.5, %v2968_v33  ;;  %v933_v34 = vadd.f32 0.5, %v932_v37 }
 0x433   :  { %v935_v62 = vadd.f32 0.5, %v934_v11 }
 0x435   :  { %938 = vrot.lane.b32.xlu1 %v935_v62, %s3314_s27  ;;  %v940_v52 = vmul.f32 %v935_v62, %v3727_v1  ;;  %v4568_v62 = vld [vmem:[#allocation21_spill] sm:$0xff] }
 0x47d   :  { %v859_v15 = vpop.permute.xlu2 %858 }
 0x490   :  { %v857_v25 = vpop.permute.xlu1 %856 }
 0x491   :  { %v861_v0 = vmul.f32 %v857_v25, %v853_v63  ;;  %v4570_v63 = vld [vmem:[#allocation23_spill] sm:$0xff]  ;;  %v4571_v25 = vld [vmem:[#allocation24_spill] sm:$0xff] }
 0x493   :  { %v3790_v28 = vadd.f32 %v861_v0, %v860_v8  ;;  %v4572_v0 = vld [vmem:[#allocation25_spill] sm:$0xff] }
 0x495   :  { %2969 = vtanh.f32 %v3790_v28 }
 0x49b   :  { %v2970_v50 = vpop.eup %2969 }
 0x49c   :  { %v864_v51 = vmul.f32 %v2970_v50, %v859_v15 }
 0x49e   :  { %865 = vst [vmem:[#allocation3 + $0x2] sm:$0x1] %v864_v51  ;;  %v866_v7 = vpack.c.bf16 %v864_v51, %v864_v51 }
 0x4a0   :  { %875 = vmatmul.bf16.vlgmr.msrb.gmra.mxu0 %v866_v7  ;;  %888 = vmatmul.bf16.vlgmr.msrb.gmra.mxu1 %v866_v7 }
 0x4a1   :  { %v937_v33 = vpop.permute.xlu0 %936  ;;  %1019 = vmatpush.bf16.msrb.mxu0 %v3405_v16  ;;  %1032 = vmatpush.bf16.msrb.mxu1 %v3407_v17 }
 0x4a2   :  { %v941_v49 = vmul.f32 %v937_v33, %v933_v34 }
 0x4a4   :  { %v3796_v20 = vadd.f32 %v941_v49, %v940_v52 }
 0x4a5   :  { %1020 = vmatpush.bf16.msrb.mxu0 %v3410_v23  ;;  %1033 = vmatpush.bf16.msrb.mxu1 %v3413_v24 }
 0x4a6   :  { %2971 = vtanh.f32 %v3796_v20 }
 0x4a7   :  { %v939_v4 = vpop.permute.xlu1 %938 }
 0x4a9   :  { %1021 = vmatpush.bf16.msrb.mxu0 %v3416_v29  ;;  %1034 = vmatpush.bf16.msrb.mxu1 %v3419_v30 }
 0x4ac   :  { %v2972_v8 = vpop.eup %2971 }
 0x4ad   :  { %v944_v11 = vmul.f32 %v2972_v8, %v939_v4  ;;  %1022 = vmatpush.bf16.msrb.mxu0 %v3422_v35  ;;  %1035 = vmatpush.bf16.msrb.mxu1 %v3425_v36  ;;  %v4573_v8 = vld [vmem:[#allocation26_spill] sm:$0xff] }
 0x4af   :  { %v945_v1 = vpack.c.bf16 %v944_v11, %v944_v11 }
 0x4b1   :  { %954 = vmatmul.bf16.vlgmr.msra.gmra.mxu0 %v945_v1  ;;  %967 = vmatmul.bf16.vlgmr.msra.gmra.mxu1 %v945_v1 }
 0x4b2   :  { %1023 = vmatpush.bf16.msrb.mxu0 %v3428_v41  ;;  %1036 = vmatpush.bf16.msrb.mxu1 %v3431_v42 }
 0x4b6   :  { %1024 = vmatpush.bf16.msrb.mxu0 %v3434_v47  ;;  %1037 = vmatpush.bf16.msrb.mxu1 %v3437_v48 }
 0x4ba   :  { %1025 = vmatpush.bf16.msrb.mxu0 %v3440_v53  ;;  %1038 = vmatpush.bf16.msrb.mxu1 %v3443_v54 }
 0x4be   :  { %1026 = vmatpush.bf16.msrb.mxu0 %v3446_v59  ;;  %1039 = vmatpush.bf16.msrb.mxu1 %v3449_v60 }
 0x4c1   :  { %1027 = vmatmul.bf16.vlgmr.msrb.gmra.mxu0 %v945_v1  ;;  %1040 = vmatmul.bf16.vlgmr.msrb.gmra.mxu1 %v945_v1 }
 0x4c2   :  { %1115 = vmatpush.bf16.msra.mxu0 %v3458_v12  ;;  %1128 = vmatpush.bf16.msra.mxu1 %v3460_v18 }
 0x4c6   :  { %1116 = vmatpush.bf16.msra.mxu0 %v3463_v21  ;;  %1129 = vmatpush.bf16.msra.mxu1 %v3467_v22 }
 0x4ca   :  { %1117 = vmatpush.bf16.msra.mxu0 %v3471_v31  ;;  %1130 = vmatpush.bf16.msra.mxu1 %v3475_v32 }
 0x4ce   :  { %1118 = vmatpush.bf16.msra.mxu0 %v3479_v43  ;;  %1131 = vmatpush.bf16.msra.mxu1 %v3483_v45 }
 0x4d2   :  { %1119 = vmatpush.bf16.msra.mxu0 %v3488_v57  ;;  %1132 = vmatpush.bf16.msra.mxu1 %v3492_v58 }
 0x4d6   :  { %1120 = vmatpush.bf16.msra.mxu0 %v3496_v5  ;;  %1133 = vmatpush.bf16.msra.mxu1 %v3500_v6 }
 0x4da   :  { %1121 = vmatpush.bf16.msra.mxu0 %v3506_v13  ;;  %1134 = vmatpush.bf16.msra.mxu1 %v3512_v14 }
 0x4de   :  { %1122 = vmatpush.bf16.msra.mxu0 %v3516_v38  ;;  %1135 = vmatpush.bf16.msra.mxu1 %v3520_v39 }
 0x4e2   :  { %1194 = vmatpush.bf16.msrb.mxu0 %v3522_v40  ;;  %1207 = vmatpush.bf16.msrb.mxu1 %v3524_v44 }
 0x4e6   :  { %1195 = vmatpush.bf16.msrb.mxu0 %v3536_v55  ;;  %1208 = vmatpush.bf16.msrb.mxu1 %v3538_v56 }
 0x4ea   :  { %1196 = vmatpush.bf16.msrb.mxu0 %v3547_v2  ;;  %1209 = vmatpush.bf16.msrb.mxu1 %v3549_v3 }
 0x4ee   :  { %1197 = vmatpush.bf16.msrb.mxu0 %v3555_v61  ;;  %1210 = vmatpush.bf16.msrb.mxu1 %v3557_v10 }
 0x4f2   :  { %1198 = vmatpush.bf16.msrb.mxu0 %v3563_v26  ;;  %1211 = vmatpush.bf16.msrb.mxu1 %v3565_v27 }
 0x4f6   :  { %1199 = vmatpush.bf16.msrb.mxu0 %v3571_v46  ;;  %1212 = vmatpush.bf16.msrb.mxu1 %v4568_v62 }
 0x4fa   :  { %1200 = vmatpush.bf16.msrb.mxu0 %v4569_v19  ;;  %1213 = vmatpush.bf16.msrb.mxu1 %v4570_v63 }
 0x4fe   :  { %1201 = vmatpush.bf16.msrb.mxu0 %v4571_v25  ;;  %1214 = vmatpush.bf16.msrb.mxu1 %v4572_v0 }
 0x51d   :  { %v876_v50 = vpop.f32.mrf.mxu0  ;;  %v889_v15 = vpop.f32.mrf.mxu1 }
 0x525   :  { %v878_v51 = vpop.f32.mrf.mxu0  ;;  %v891_v37 = vpop.f32.mrf.mxu1 }
 0x52e   :  { %v955_v7 = vpop.f32.mrf.mxu0  ;;  %v968_v34 = vpop.f32.mrf.mxu1 }
 0x52f   :  { %v956_v33 = vadd.f32 %v955_v7, %v876_v50  ;;  %v969_v52 = vadd.f32 %v968_v34, %v889_v15  ;;  %v1018_v50 = vld [vmem:[#allocation2 + $0x4] ss:$8 sm:$0x3] }
 0x531   :  { %v972_v49 = vadd.f32 %v956_v33, %v3653_v9  ;;  %v973_v4 = vadd.f32 %v969_v52, %v4573_v8 }
 0x533   :  { %2973 = vtanh.f32 %v972_v49 }
 0x534   :  { %2975 = vtanh.f32 %v973_v4 }
 0x536   :  { %v957_v11 = vpop.f32.mrf.mxu0  ;;  %v970_v1 = vpop.f32.mrf.mxu1 }
 0x539   :  { %v2974_v63 = vpop.eup %2973 }
 0x53a   :  { %v2976_v25 = vpop.eup %2975  ;;  %980 = vrot.lane.b32.xlu2 %v2974_v63, %s3314_s27  ;;  %v976_v11 = vmul.f32 0.5, %v2974_v63 }
 0x53b   :  { %v978_v0 = vmul.f32 0.5, %v2976_v25 }
 0x53c   :  { %v977_v1 = vadd.f32 0.5, %v976_v11  ;;  %v4575_v11 = vld [vmem:[#allocation22_spill] sm:$0xff] }
 0x53d   :  { %v979_v19 = vadd.f32 0.5, %v978_v0 }
 0x53e   :  { %v1041_v51 = vpop.f32.mrf.mxu1  ;;  %v1028_v37 = vpop.f32.mrf.mxu0 }
 0x53f   :  { %v1047_v62 = vrot.slane %v1041_v51, 7  ;;  %982 = vrot.lane.b32.xlu0 %v979_v19, %s3314_s27  ;;  %v984_v8 = vmul.f32 %v979_v19, %v3790_v28 }
 0x541   :  { %v1048_v15 = vsel %vm466_vm1, %v1028_v37, %v1047_v62 }
 0x542   :  { %v1050_v7 = vadd.f32 %v1048_v15, %v1018_v50 }
 0x544   :  { %2977 = vtanh.f32 %v1050_v7  ;;  %v1053_v34 = vrot.slane %v1050_v7, 1 }
 0x546   :  { %v1030_v33 = vpop.f32.mrf.mxu0  ;;  %v1043_v52 = vpop.f32.mrf.mxu1  ;;  %2979 = vtanh.f32 %v1053_v34 }
 0x54a   :  { %v2978_v49 = vpop.eup %2977 }
 0x54b   :  { %1060 = vrot.lane.b32.xlu1 %v2978_v49, %s3314_s27  ;;  %v1056_v63 = vmul.f32 0.5, %v2978_v49 }
 0x54c   :  { %v2980_v4 = vpop.eup %2979 }
 0x54d   :  { %v1058_v25 = vmul.f32 0.5, %v2980_v4  ;;  %v1057_v28 = vadd.f32 0.5, %v1056_v63 }
 0x54f   :  { %v1059_v0 = vadd.f32 0.5, %v1058_v25 }
 0x551   :  { %1062 = vrot.lane.b32.xlu2 %v1059_v0, %s3314_s27 }
 0x594   :  { %v981_v51 = vpop.permute.xlu2 %980 }
 0x595   :  { %v985_v62 = vmul.f32 %v981_v51, %v977_v1  ;;  %v4576_v1 = vld [vmem:[#allocation23_spill] sm:$0xff]  ;;  %v4577_v51 = vld [vmem:[#allocation24_spill] sm:$0xff] }
 0x597   :  { %v3853_v37 = vadd.f32 %v985_v62, %v984_v8  ;;  %v1064_v8 = vmul.f32 %v1059_v0, %v3796_v20  ;;  %v4574_v0 = vld [vmem:[#allocation21_spill] sm:$0xff] }
 0x598   :  { %v4578_v62 = vld [vmem:[#allocation25_spill] sm:$0xff] }
 0x599   :  { %2981 = vtanh.f32 %v3853_v37 }
 0x59f   :  { %v2982_v50 = vpop.eup %2981 }
 0x5ab   :  { %v1063_v4 = vpop.permute.xlu2 %1062 }
 0x5b1   :  { %v983_v15 = vpop.permute.xlu0 %982 }
 0x5b2   :  { %v988_v7 = vmul.f32 %v2982_v50, %v983_v15 }
 0x5b4   :  { %989 = vst [vmem:[#allocation3 + $0x3] sm:$0x1] %v988_v7  ;;  %v990_v34 = vpack.c.bf16 %v988_v7, %v988_v7 }
 0x5b6   :  { %999 = vmatmul.bf16.vlgmr.msra.gmra.mxu2 %v990_v34  ;;  %1012 = vmatmul.bf16.vlgmr.msra.gmra.mxu3 %v990_v34 }
 0x5b7   :  { %1143 = vmatpush.bf16.msra.mxu2 %v3405_v16  ;;  %1156 = vmatpush.bf16.msra.mxu3 %v3407_v17 }
 0x5bb   :  { %1144 = vmatpush.bf16.msra.mxu2 %v3410_v23  ;;  %1157 = vmatpush.bf16.msra.mxu3 %v3413_v24 }
 0x5bd   :  { %v1061_v19 = vpop.permute.xlu1 %1060 }
 0x5be   :  { %v1065_v33 = vmul.f32 %v1061_v19, %v1057_v28 }
 0x5bf   :  { %1145 = vmatpush.bf16.msra.mxu2 %v3416_v29  ;;  %1158 = vmatpush.bf16.msra.mxu3 %v3419_v30 }
 0x5c0   :  { %v3863_v52 = vadd.f32 %v1065_v33, %v1064_v8 }
 0x5c2   :  { %2983 = vtanh.f32 %v3863_v52 }
 0x5c3   :  { %1146 = vmatpush.bf16.msra.mxu2 %v3422_v35  ;;  %1159 = vmatpush.bf16.msra.mxu3 %v3425_v36 }
 0x5c7   :  { %1147 = vmatpush.bf16.msra.mxu2 %v3428_v41  ;;  %1160 = vmatpush.bf16.msra.mxu3 %v3431_v42 }
 0x5c8   :  { %v2984_v49 = vpop.eup %2983 }
 0x5c9   :  { %v1068_v20 = vmul.f32 %v2984_v49, %v1063_v4  ;;  %v4579_v49 = vld [vmem:[#allocation26_spill] sm:$0xff] }
 0x5cb   :  { %v1069_v25 = vpack.c.bf16 %v1068_v20, %v1068_v20  ;;  %1148 = vmatpush.bf16.msra.mxu2 %v3434_v47  ;;  %1161 = vmatpush.bf16.msra.mxu3 %v3437_v48 }
 0x5cd   :  { %1078 = vmatmul.bf16.vlgmr.msrb.gmra.mxu2 %v1069_v25  ;;  %1091 = vmatmul.bf16.vlgmr.msrb.gmra.mxu3 %v1069_v25 }
 0x5cf   :  { %1149 = vmatpush.bf16.msra.mxu2 %v3440_v53  ;;  %1162 = vmatpush.bf16.msra.mxu3 %v3443_v54 }
 0x5d3   :  { %1150 = vmatpush.bf16.msra.mxu2 %v3446_v59  ;;  %1163 = vmatpush.bf16.msra.mxu3 %v3449_v60 }
 0x5d7   :  { %1239 = vmatpush.bf16.msrb.mxu2 %v3458_v12  ;;  %1252 = vmatpush.bf16.msrb.mxu3 %v3460_v18 }
 0x5db   :  { %1240 = vmatpush.bf16.msrb.mxu2 %v3463_v21  ;;  %1253 = vmatpush.bf16.msrb.mxu3 %v3467_v22 }
 0x5dd   :  { %1151 = vmatmul.bf16.vlgmr.msra.gmra.mxu2 %v1069_v25  ;;  %1164 = vmatmul.bf16.vlgmr.msra.gmra.mxu3 %v1069_v25 }
 0x5df   :  { %1241 = vmatpush.bf16.msrb.mxu2 %v3471_v31  ;;  %1254 = vmatpush.bf16.msrb.mxu3 %v3475_v32 }
 0x5e3   :  { %1242 = vmatpush.bf16.msrb.mxu2 %v3479_v43  ;;  %1255 = vmatpush.bf16.msrb.mxu3 %v3483_v45 }
 0x5e7   :  { %1243 = vmatpush.bf16.msrb.mxu2 %v3488_v57  ;;  %1256 = vmatpush.bf16.msrb.mxu3 %v3492_v58 }
 0x5eb   :  { %1244 = vmatpush.bf16.msrb.mxu2 %v3496_v5  ;;  %1257 = vmatpush.bf16.msrb.mxu3 %v3500_v6 }
 0x5ef   :  { %1245 = vmatpush.bf16.msrb.mxu2 %v3506_v13  ;;  %1258 = vmatpush.bf16.msrb.mxu3 %v3512_v14 }
 0x5f3   :  { %1246 = vmatpush.bf16.msrb.mxu2 %v3516_v38  ;;  %1259 = vmatpush.bf16.msrb.mxu3 %v3520_v39 }
 0x5f7   :  { %1318 = vmatpush.bf16.msra.mxu2 %v3522_v40  ;;  %1331 = vmatpush.bf16.msra.mxu3 %v3524_v44 }
 0x5fb   :  { %1319 = vmatpush.bf16.msra.mxu2 %v3536_v55  ;;  %1332 = vmatpush.bf16.msra.mxu3 %v3538_v56 }
 0x5ff   :  { %1320 = vmatpush.bf16.msra.mxu2 %v3547_v2  ;;  %1333 = vmatpush.bf16.msra.mxu3 %v3549_v3 }
 0x603   :  { %1321 = vmatpush.bf16.msra.mxu2 %v3555_v61  ;;  %1334 = vmatpush.bf16.msra.mxu3 %v3557_v10 }
 0x607   :  { %1322 = vmatpush.bf16.msra.mxu2 %v3563_v26  ;;  %1335 = vmatpush.bf16.msra.mxu3 %v3565_v27 }
 0x60b   :  { %1323 = vmatpush.bf16.msra.mxu2 %v3571_v46  ;;  %1336 = vmatpush.bf16.msra.mxu3 %v4574_v0 }
 0x60f   :  { %1324 = vmatpush.bf16.msra.mxu2 %v4575_v11  ;;  %1337 = vmatpush.bf16.msra.mxu3 %v4576_v1 }
 0x613   :  { %1325 = vmatpush.bf16.msra.mxu2 %v4577_v51  ;;  %1338 = vmatpush.bf16.msra.mxu3 %v4578_v62 }
 0x639   :  { %v1000_v50 = vpop.f32.mrf.mxu2  ;;  %v1013_v15 = vpop.f32.mrf.mxu3 }
 0x641   :  { %v1002_v7 = vpop.f32.mrf.mxu2  ;;  %v1015_v34 = vpop.f32.mrf.mxu3 }
 0x650   :  { %v1079_v63 = vpop.f32.mrf.mxu2  ;;  %v1092_v28 = vpop.f32.mrf.mxu3 }
 0x651   :  { %v1080_v19 = vadd.f32 %v1079_v63, %v1000_v50  ;;  %v1093_v8 = vadd.f32 %v1092_v28, %v1013_v15  ;;  %v1142_v50 = vld [vmem:[#allocation2 + $0x5] ss:$8 sm:$0x3] }
 0x653   :  { %v1096_v33 = vadd.f32 %v1080_v19, %v3653_v9  ;;  %v1097_v4 = vadd.f32 %v1093_v8, %v4579_v49 }
 0x655   :  { %2985 = vtanh.f32 %v1096_v33 }
 0x656   :  { %2987 = vtanh.f32 %v1097_v4 }
 0x658   :  { %v1081_v20 = vpop.f32.mrf.mxu2  ;;  %v1094_v25 = vpop.f32.mrf.mxu3 }
 0x65b   :  { %v2986_v1 = vpop.eup %2985 }
 0x65c   :  { %v2988_v51 = vpop.eup %2987  ;;  %1104 = vrot.lane.b32.xlu0 %v2986_v1, %s3314_s27 }
 0x65d   :  { %v1102_v62 = vmul.f32 0.5, %v2988_v51 }
 0x65f   :  { %v1103_v11 = vadd.f32 0.5, %v1102_v62 }
 0x660   :  { %v1165_v7 = vpop.f32.mrf.mxu3  ;;  %v1152_v34 = vpop.f32.mrf.mxu2 }
 0x661   :  { %v1171_v0 = vrot.slane %v1165_v7, 7  ;;  %1106 = vrot.lane.b32.xlu1 %v1103_v11, %s3314_s27 }
 0x663   :  { %v1172_v15 = vsel %vm466_vm1, %v1152_v34, %v1171_v0  ;;  %v1100_v34 = vmul.f32 0.5, %v2986_v1 }
 0x664   :  { %v1174_v63 = vadd.f32 %v1172_v15, %v1142_v50 }
 0x665   :  { %v1101_v15 = vadd.f32 0.5, %v1100_v34 }
 0x666   :  { %2989 = vtanh.f32 %v1174_v63  ;;  %v1177_v28 = vrot.slane %v1174_v63, 1 }
 0x668   :  { %v1154_v19 = vpop.f32.mrf.mxu2  ;;  %v1167_v8 = vpop.f32.mrf.mxu3  ;;  %2991 = vtanh.f32 %v1177_v28  ;;  %v1108_v28 = vmul.f32 %v1103_v11, %v3853_v37 }
 0x66c   :  { %v2990_v33 = vpop.eup %2989 }
 0x66d   :  { %1184 = vrot.lane.b32.xlu2 %v2990_v33, %s3314_s27  ;;  %v1180_v20 = vmul.f32 0.5, %v2990_v33 }
 0x66e   :  { %v2992_v4 = vpop.eup %2991 }
 0x66f   :  { %v1182_v51 = vmul.f32 0.5, %v2992_v4  ;;  %v1181_v25 = vadd.f32 0.5, %v1180_v20 }
 0x671   :  { %v1183_v62 = vadd.f32 0.5, %v1182_v51 }
 0x673   :  { %1186 = vrot.lane.b32.xlu0 %v1183_v62, %s3314_s27  ;;  %v1188_v49 = vmul.f32 %v1183_v62, %v3863_v52  ;;  %v4581_v62 = vld [vmem:[#allocation22_spill] sm:$0xff] }
 0x6c7   :  { %v1185_v7 = vpop.permute.xlu2 %1184 }
 0x6c8   :  { %v1189_v0 = vmul.f32 %v1185_v7, %v1181_v25  ;;  %v4582_v25 = vld [vmem:[#allocation23_spill] sm:$0xff]  ;;  %v4583_v7 = vld [vmem:[#allocation24_spill] sm:$0xff] }
 0x6ca   :  { %v3916_v50 = vadd.f32 %v1189_v0, %v1188_v49  ;;  %v4580_v49 = vld [vmem:[#allocation21_spill] sm:$0xff] }
 0x6cb   :  { %v4584_v0 = vld [vmem:[#allocation25_spill] sm:$0xff] }
 0x6ce   :  { %v1105_v63 = vpop.permute.xlu0 %1104 }
 0x6cf   :  { %v1109_v19 = vmul.f32 %v1105_v63, %v1101_v15 }
 0x6d1   :  { %v3919_v8 = vadd.f32 %v1109_v19, %v1108_v28 }
 0x6d3   :  { %2993 = vtanh.f32 %v3919_v8  ;;  %v1107_v51 = vpop.permute.xlu1 %1106 }
 0x6d4   :  { %2995 = vtanh.f32 %v3916_v50 }
 0x6d9   :  { %v2994_v4 = vpop.eup %2993 }
 0x6da   :  { %v1112_v33 = vmul.f32 %v2994_v4, %v1107_v51  ;;  %v2996_v52 = vpop.eup %2995 }
 0x6dc   :  { %1113 = vst [vmem:[#allocation3 + $0x4] sm:$0x1] %v1112_v33  ;;  %v1114_v20 = vpack.c.bf16 %v1112_v33, %v1112_v33 }
 0x6de   :  { %1123 = vmatmul.bf16.vlgmr.msra.gmra.mxu0 %v1114_v20  ;;  %1136 = vmatmul.bf16.vlgmr.msra.gmra.mxu1 %v1114_v20 }
 0x6df   :  { %1267 = vmatpush.bf16.msra.mxu0 %v3405_v16  ;;  %1280 = vmatpush.bf16.msra.mxu1 %v3407_v17 }
 0x6e3   :  { %1268 = vmatpush.bf16.msra.mxu0 %v3410_v23  ;;  %1281 = vmatpush.bf16.msra.mxu1 %v3413_v24 }
 0x6e5   :  { %v1187_v37 = vpop.permute.xlu0 %1186 }
 0x6e6   :  { %v1192_v11 = vmul.f32 %v2996_v52, %v1187_v37  ;;  %v4585_v37 = vld [vmem:[#allocation26_spill] sm:$0xff] }
 0x6e7   :  { %1269 = vmatpush.bf16.msra.mxu0 %v3416_v29  ;;  %1282 = vmatpush.bf16.msra.mxu1 %v3419_v30 }
 0x6e8   :  { %v1193_v1 = vpack.c.bf16 %v1192_v11, %v1192_v11 }
 0x6eb   :  { %1270 = vmatpush.bf16.msra.mxu0 %v3422_v35  ;;  %1283 = vmatpush.bf16.msra.mxu1 %v3425_v36 }
 0x6ee   :  { %1202 = vmatmul.bf16.vlgmr.msrb.gmra.mxu0 %v1193_v1  ;;  %1215 = vmatmul.bf16.vlgmr.msrb.gmra.mxu1 %v1193_v1 }
 0x6ef   :  { %1271 = vmatpush.bf16.msra.mxu0 %v3428_v41  ;;  %1284 = vmatpush.bf16.msra.mxu1 %v3431_v42 }
 0x6f3   :  { %1272 = vmatpush.bf16.msra.mxu0 %v3434_v47  ;;  %1285 = vmatpush.bf16.msra.mxu1 %v3437_v48 }
 0x6f7   :  { %1273 = vmatpush.bf16.msra.mxu0 %v3440_v53  ;;  %1286 = vmatpush.bf16.msra.mxu1 %v3443_v54 }
 0x6fb   :  { %1274 = vmatpush.bf16.msra.mxu0 %v3446_v59  ;;  %1287 = vmatpush.bf16.msra.mxu1 %v3449_v60 }
 0x6fe   :  { %1275 = vmatmul.bf16.vlgmr.msra.gmra.mxu0 %v1193_v1  ;;  %1288 = vmatmul.bf16.vlgmr.msra.gmra.mxu1 %v1193_v1 }
 0x6ff   :  { %1363 = vmatpush.bf16.msrb.mxu0 %v3458_v12  ;;  %1376 = vmatpush.bf16.msrb.mxu1 %v3460_v18 }
 0x703   :  { %1364 = vmatpush.bf16.msrb.mxu0 %v3463_v21  ;;  %1377 = vmatpush.bf16.msrb.mxu1 %v3467_v22 }
 0x707   :  { %1365 = vmatpush.bf16.msrb.mxu0 %v3471_v31  ;;  %1378 = vmatpush.bf16.msrb.mxu1 %v3475_v32 }
 0x70b   :  { %1366 = vmatpush.bf16.msrb.mxu0 %v3479_v43  ;;  %1379 = vmatpush.bf16.msrb.mxu1 %v3483_v45 }
 0x70f   :  { %1367 = vmatpush.bf16.msrb.mxu0 %v3488_v57  ;;  %1380 = vmatpush.bf16.msrb.mxu1 %v3492_v58 }
 0x713   :  { %1368 = vmatpush.bf16.msrb.mxu0 %v3496_v5  ;;  %1381 = vmatpush.bf16.msrb.mxu1 %v3500_v6 }
 0x717   :  { %1369 = vmatpush.bf16.msrb.mxu0 %v3506_v13  ;;  %1382 = vmatpush.bf16.msrb.mxu1 %v3512_v14 }
 0x71b   :  { %1370 = vmatpush.bf16.msrb.mxu0 %v3516_v38  ;;  %1383 = vmatpush.bf16.msrb.mxu1 %v3520_v39 }
 0x71f   :  { %1442 = vmatpush.bf16.msra.mxu0 %v3522_v40  ;;  %1455 = vmatpush.bf16.msra.mxu1 %v3524_v44 }
 0x723   :  { %1443 = vmatpush.bf16.msra.mxu0 %v3536_v55  ;;  %1456 = vmatpush.bf16.msra.mxu1 %v3538_v56 }
 0x727   :  { %1444 = vmatpush.bf16.msra.mxu0 %v3547_v2  ;;  %1457 = vmatpush.bf16.msra.mxu1 %v3549_v3 }
 0x72b   :  { %1445 = vmatpush.bf16.msra.mxu0 %v3555_v61  ;;  %1458 = vmatpush.bf16.msra.mxu1 %v3557_v10 }
 0x72f   :  { %1446 = vmatpush.bf16.msra.mxu0 %v3563_v26  ;;  %1459 = vmatpush.bf16.msra.mxu1 %v3565_v27 }
 0x733   :  { %1447 = vmatpush.bf16.msra.mxu0 %v3571_v46  ;;  %1460 = vmatpush.bf16.msra.mxu1 %v4580_v49 }
 0x737   :  { %1448 = vmatpush.bf16.msra.mxu0 %v4581_v62  ;;  %1461 = vmatpush.bf16.msra.mxu1 %v4582_v25 }
 0x73b   :  { %1449 = vmatpush.bf16.msra.mxu0 %v4583_v7  ;;  %1462 = vmatpush.bf16.msra.mxu1 %v4584_v0 }
 0x75b   :  { %v1124_v34 = vpop.f32.mrf.mxu0  ;;  %v1137_v15 = vpop.f32.mrf.mxu1 }
 0x763   :  { %v1126_v63 = vpop.f32.mrf.mxu0  ;;  %v1139_v28 = vpop.f32.mrf.mxu1 }
 0x76b   :  { %v1203_v19 = vpop.f32.mrf.mxu0  ;;  %v1216_v4 = vpop.f32.mrf.mxu1 }
 0x76c   :  { %v1204_v51 = vadd.f32 %v1203_v19, %v1124_v34  ;;  %v1217_v33 = vadd.f32 %v1216_v4, %v1137_v15  ;;  %v1266_v34 = vld [vmem:[#allocation2 + $0x6] ss:$8 sm:$0x3] }
 0x76e   :  { %v1220_v20 = vadd.f32 %v1204_v51, %v3653_v9  ;;  %v1221_v52 = vadd.f32 %v1217_v33, %v4585_v37 }
 0x770   :  { %2997 = vtanh.f32 %v1220_v20 }
 0x771   :  { %2999 = vtanh.f32 %v1221_v52 }
 0x773   :  { %v1205_v11 = vpop.f32.mrf.mxu0  ;;  %v1218_v1 = vpop.f32.mrf.mxu1 }
 0x776   :  { %v2998_v25 = vpop.eup %2997 }
 0x777   :  { %v3000_v7 = vpop.eup %2999  ;;  %1228 = vrot.lane.b32.xlu1 %v2998_v25, %s3314_s27  ;;  %v1224_v11 = vmul.f32 0.5, %v2998_v25 }
 0x778   :  { %v1226_v0 = vmul.f32 0.5, %v3000_v7 }
 0x779   :  { %v1225_v1 = vadd.f32 0.5, %v1224_v11  ;;  %v4587_v11 = vld [vmem:[#allocation22_spill] sm:$0xff] }
 0x77a   :  { %v1227_v62 = vadd.f32 0.5, %v1226_v0 }
 0x77b   :  { %v1289_v63 = vpop.f32.mrf.mxu1  ;;  %v1276_v28 = vpop.f32.mrf.mxu0 }
 0x77c   :  { %v1295_v49 = vrot.slane %v1289_v63, 7  ;;  %1230 = vrot.lane.b32.xlu2 %v1227_v62, %s3314_s27  ;;  %v1232_v37 = vmul.f32 %v1227_v62, %v3919_v8 }
 0x77e   :  { %v1296_v15 = vsel %vm466_vm1, %v1276_v28, %v1295_v49 }
 0x77f   :  { %v1298_v19 = vadd.f32 %v1296_v15, %v1266_v34 }
 0x781   :  { %3001 = vtanh.f32 %v1298_v19  ;;  %v1301_v4 = vrot.slane %v1298_v19, 1 }
 0x783   :  { %v1278_v51 = vpop.f32.mrf.mxu0  ;;  %v1291_v33 = vpop.f32.mrf.mxu1  ;;  %3003 = vtanh.f32 %v1301_v4 }
 0x787   :  { %v3002_v20 = vpop.eup %3001 }
 0x788   :  { %1308 = vrot.lane.b32.xlu0 %v3002_v20, %s3314_s27  ;;  %v1304_v4 = vmul.f32 0.5, %v3002_v20 }
 0x789   :  { %v3004_v52 = vpop.eup %3003 }
 0x78a   :  { %v1306_v7 = vmul.f32 0.5, %v3004_v52  ;;  %v1305_v33 = vadd.f32 0.5, %v1304_v4 }
 0x78c   :  { %v1307_v0 = vadd.f32 0.5, %v1306_v7 }
 0x78e   :  { %1310 = vrot.lane.b32.xlu1 %v1307_v0, %s3314_s27  ;;  %v1312_v8 = vmul.f32 %v1307_v0, %v3916_v50  ;;  %v4586_v0 = vld [vmem:[#allocation21_spill] sm:$0xff] }
 0x7d6   :  { %v1231_v15 = vpop.permute.xlu2 %1230 }
 0x7e9   :  { %v1229_v63 = vpop.permute.xlu1 %1228 }
 0x7ea   :  { %v1233_v49 = vmul.f32 %v1229_v63, %v1225_v1  ;;  %v4588_v1 = vld [vmem:[#allocation23_spill] sm:$0xff]  ;;  %v4589_v63 = vld [vmem:[#allocation24_spill] sm:$0xff] }
 0x7ec   :  { %v3979_v28 = vadd.f32 %v1233_v49, %v1232_v37  ;;  %v4590_v49 = vld [vmem:[#allocation25_spill] sm:$0xff] }
 0x7ee   :  { %3005 = vtanh.f32 %v3979_v28 }
 0x7f4   :  { %v3006_v34 = vpop.eup %3005 }
 0x7f5   :  { %v1236_v19 = vmul.f32 %v3006_v34, %v1231_v15 }
 0x7f7   :  { %1237 = vst [vmem:[#allocation3 + $0x5] sm:$0x1] %v1236_v19  ;;  %v1238_v51 = vpack.c.bf16 %v1236_v19, %v1236_v19 }
 0x7f9   :  { %1247 = vmatmul.bf16.vlgmr.msrb.gmra.mxu2 %v1238_v51  ;;  %1260 = vmatmul.bf16.vlgmr.msrb.gmra.mxu3 %v1238_v51 }
 0x7fa   :  { %v1309_v52 = vpop.permute.xlu0 %1308  ;;  %1391 = vmatpush.bf16.msrb.mxu2 %v3405_v16  ;;  %1404 = vmatpush.bf16.msrb.mxu3 %v3407_v17 }
 0x7fb   :  { %v1313_v62 = vmul.f32 %v1309_v52, %v1305_v33 }
 0x7fd   :  { %v3985_v25 = vadd.f32 %v1313_v62, %v1312_v8 }
 0x7fe   :  { %1392 = vmatpush.bf16.msrb.mxu2 %v3410_v23  ;;  %1405 = vmatpush.bf16.msrb.mxu3 %v3413_v24 }
 0x7ff   :  { %3007 = vtanh.f32 %v3985_v25 }
 0x800   :  { %v1311_v20 = vpop.permute.xlu1 %1310 }
 0x802   :  { %1393 = vmatpush.bf16.msrb.mxu2 %v3416_v29  ;;  %1406 = vmatpush.bf16.msrb.mxu3 %v3419_v30 }
 0x805   :  { %v3008_v37 = vpop.eup %3007 }
 0x806   :  { %v1316_v7 = vmul.f32 %v3008_v37, %v1311_v20  ;;  %1394 = vmatpush.bf16.msrb.mxu2 %v3422_v35  ;;  %1407 = vmatpush.bf16.msrb.mxu3 %v3425_v36  ;;  %v4591_v37 = vld [vmem:[#allocation26_spill] sm:$0xff] }
 0x808   :  { %v1317_v50 = vpack.c.bf16 %v1316_v7, %v1316_v7 }
 0x80a   :  { %1326 = vmatmul.bf16.vlgmr.msra.gmra.mxu2 %v1317_v50  ;;  %1339 = vmatmul.bf16.vlgmr.msra.gmra.mxu3 %v1317_v50 }
 0x80b   :  { %1395 = vmatpush.bf16.msrb.mxu2 %v3428_v41  ;;  %1408 = vmatpush.bf16.msrb.mxu3 %v3431_v42 }
 0x80f   :  { %1396 = vmatpush.bf16.msrb.mxu2 %v3434_v47  ;;  %1409 = vmatpush.bf16.msrb.mxu3 %v3437_v48 }
 0x813   :  { %1397 = vmatpush.bf16.msrb.mxu2 %v3440_v53  ;;  %1410 = vmatpush.bf16.msrb.mxu3 %v3443_v54 }
 0x817   :  { %1398 = vmatpush.bf16.msrb.mxu2 %v3446_v59  ;;  %1411 = vmatpush.bf16.msrb.mxu3 %v3449_v60 }
 0x81a   :  { %1399 = vmatmul.bf16.vlgmr.msrb.gmra.mxu2 %v1317_v50  ;;  %1412 = vmatmul.bf16.vlgmr.msrb.gmra.mxu3 %v1317_v50 }
 0x81b   :  { %1487 = vmatpush.bf16.msra.mxu2 %v3458_v12  ;;  %1500 = vmatpush.bf16.msra.mxu3 %v3460_v18 }
 0x81f   :  { %1488 = vmatpush.bf16.msra.mxu2 %v3463_v21  ;;  %1501 = vmatpush.bf16.msra.mxu3 %v3467_v22 }
 0x823   :  { %1489 = vmatpush.bf16.msra.mxu2 %v3471_v31  ;;  %1502 = vmatpush.bf16.msra.mxu3 %v3475_v32 }
 0x827   :  { %1490 = vmatpush.bf16.msra.mxu2 %v3479_v43  ;;  %1503 = vmatpush.bf16.msra.mxu3 %v3483_v45 }
 0x82b   :  { %1491 = vmatpush.bf16.msra.mxu2 %v3488_v57  ;;  %1504 = vmatpush.bf16.msra.mxu3 %v3492_v58 }
 0x82f   :  { %1492 = vmatpush.bf16.msra.mxu2 %v3496_v5  ;;  %1505 = vmatpush.bf16.msra.mxu3 %v3500_v6 }
 0x833   :  { %1493 = vmatpush.bf16.msra.mxu2 %v3506_v13  ;;  %1506 = vmatpush.bf16.msra.mxu3 %v3512_v14 }
 0x837   :  { %1494 = vmatpush.bf16.msra.mxu2 %v3516_v38  ;;  %1507 = vmatpush.bf16.msra.mxu3 %v3520_v39 }
 0x83b   :  { %1566 = vmatpush.bf16.msrb.mxu2 %v3522_v40  ;;  %1579 = vmatpush.bf16.msrb.mxu3 %v3524_v44 }
 0x83f   :  { %1567 = vmatpush.bf16.msrb.mxu2 %v3536_v55  ;;  %1580 = vmatpush.bf16.msrb.mxu3 %v3538_v56 }
 0x843   :  { %1568 = vmatpush.bf16.msrb.mxu2 %v3547_v2  ;;  %1581 = vmatpush.bf16.msrb.mxu3 %v3549_v3 }
 0x847   :  { %1569 = vmatpush.bf16.msrb.mxu2 %v3555_v61  ;;  %1582 = vmatpush.bf16.msrb.mxu3 %v3557_v10 }
 0x84b   :  { %1570 = vmatpush.bf16.msrb.mxu2 %v3563_v26  ;;  %1583 = vmatpush.bf16.msrb.mxu3 %v3565_v27 }
 0x84f   :  { %1571 = vmatpush.bf16.msrb.mxu2 %v3571_v46  ;;  %1584 = vmatpush.bf16.msrb.mxu3 %v4586_v0 }
 0x853   :  { %1572 = vmatpush.bf16.msrb.mxu2 %v4587_v11  ;;  %1585 = vmatpush.bf16.msrb.mxu3 %v4588_v1 }
 0x857   :  { %1573 = vmatpush.bf16.msrb.mxu2 %v4589_v63  ;;  %1586 = vmatpush.bf16.msrb.mxu3 %v4590_v49 }
 0x87c   :  { %v1248_v34 = vpop.f32.mrf.mxu2  ;;  %v1261_v15 = vpop.f32.mrf.mxu3 }
 0x884   :  { %v1250_v19 = vpop.f32.mrf.mxu2  ;;  %v1263_v4 = vpop.f32.mrf.mxu3 }
 0x88d   :  { %v1327_v51 = vpop.f32.mrf.mxu2  ;;  %v1340_v33 = vpop.f32.mrf.mxu3 }
 0x88e   :  { %v1328_v52 = vadd.f32 %v1327_v51, %v1248_v34  ;;  %v1341_v8 = vadd.f32 %v1340_v33, %v1261_v15  ;;  %v1390_v34 = vld [vmem:[#allocation2 + $0x7] ss:$8 sm:$0x3] }
 0x890   :  { %v1344_v62 = vadd.f32 %v1328_v52, %v3653_v9  ;;  %v1345_v20 = vadd.f32 %v1341_v8, %v4591_v37 }
 0x892   :  { %3009 = vtanh.f32 %v1344_v62 }
 0x893   :  { %3011 = vtanh.f32 %v1345_v20 }
 0x895   :  { %v1329_v7 = vpop.f32.mrf.mxu2  ;;  %v1342_v50 = vpop.f32.mrf.mxu3 }
 0x898   :  { %v3010_v1 = vpop.eup %3009 }
 0x899   :  { %v3012_v63 = vpop.eup %3011  ;;  %1352 = vrot.lane.b32.xlu2 %v3010_v1, %s3314_s27  ;;  %v1348_v7 = vmul.f32 0.5, %v3010_v1 }
 0x89a   :  { %v1350_v49 = vmul.f32 0.5, %v3012_v63 }
 0x89b   :  { %v1349_v50 = vadd.f32 0.5, %v1348_v7  ;;  %v4593_v7 = vld [vmem:[#allocation22_spill] sm:$0xff] }
 0x89c   :  { %v1351_v11 = vadd.f32 0.5, %v1350_v49 }
 0x89d   :  { %v1413_v19 = vpop.f32.mrf.mxu3  ;;  %v1400_v4 = vpop.f32.mrf.mxu2 }
 0x89e   :  { %v1419_v0 = vrot.slane %v1413_v19, 7  ;;  %1354 = vrot.lane.b32.xlu0 %v1351_v11, %s3314_s27  ;;  %v1356_v37 = vmul.f32 %v1351_v11, %v3979_v28 }
 0x8a0   :  { %v1420_v15 = vsel %vm466_vm1, %v1400_v4, %v1419_v0 }
 0x8a1   :  { %v1422_v51 = vadd.f32 %v1420_v15, %v1390_v34 }
 0x8a3   :  { %3013 = vtanh.f32 %v1422_v51  ;;  %v1425_v33 = vrot.slane %v1422_v51, 1 }
 0x8a5   :  { %v1402_v52 = vpop.f32.mrf.mxu2  ;;  %v1415_v8 = vpop.f32.mrf.mxu3  ;;  %3015 = vtanh.f32 %v1425_v33 }
 0x8a9   :  { %v3014_v62 = vpop.eup %3013 }
 0x8aa   :  { %1432 = vrot.lane.b32.xlu1 %v3014_v62, %s3314_s27  ;;  %v1428_v1 = vmul.f32 0.5, %v3014_v62 }
 0x8ab   :  { %v3016_v20 = vpop.eup %3015 }
 0x8ac   :  { %v1430_v63 = vmul.f32 0.5, %v3016_v20  ;;  %v1429_v28 = vadd.f32 0.5, %v1428_v1 }
 0x8ae   :  { %v1431_v49 = vadd.f32 0.5, %v1430_v63 }
 0x8b0   :  { %1434 = vrot.lane.b32.xlu2 %v1431_v49, %s3314_s27 }
 0x8f3   :  { %v1353_v19 = vpop.permute.xlu2 %1352 }
 0x8f4   :  { %v1357_v0 = vmul.f32 %v1353_v19, %v1349_v50  ;;  %v4594_v50 = vld [vmem:[#allocation23_spill] sm:$0xff]  ;;  %v4595_v19 = vld [vmem:[#allocation24_spill] sm:$0xff] }
 0x8f6   :  { %v4042_v4 = vadd.f32 %v1357_v0, %v1356_v37  ;;  %v1436_v37 = vmul.f32 %v1431_v49, %v3985_v25  ;;  %v4592_v49 = vld [vmem:[#allocation21_spill] sm:$0xff] }
 0x8f7   :  { %v4596_v0 = vld [vmem:[#allocation25_spill] sm:$0xff] }
 0x8f8   :  { %3017 = vtanh.f32 %v4042_v4 }
 0x8fe   :  { %v3018_v34 = vpop.eup %3017 }
 0x90a   :  { %v1435_v20 = vpop.permute.xlu2 %1434 }
 0x910   :  { %v1355_v15 = vpop.permute.xlu0 %1354 }
 0x911   :  { %v1360_v51 = vmul.f32 %v3018_v34, %v1355_v15 }
 0x913   :  { %1361 = vst [vmem:[#allocation3 + $0x6] sm:$0x1] %v1360_v51  ;;  %v1362_v33 = vpack.c.bf16 %v1360_v51, %v1360_v51 }
 0x915   :  { %1371 = vmatmul.bf16.vlgmr.msrb.gmra.mxu0 %v1362_v33  ;;  %1384 = vmatmul.bf16.vlgmr.msrb.gmra.mxu1 %v1362_v33 }
 0x916   :  { %1515 = vmatpush.bf16.msrb.mxu0 %v3405_v16  ;;  %1528 = vmatpush.bf16.msrb.mxu1 %v3407_v17 }
 0x91a   :  { %1516 = vmatpush.bf16.msrb.mxu0 %v3410_v23  ;;  %1529 = vmatpush.bf16.msrb.mxu1 %v3413_v24 }
 0x91c   :  { %v1433_v11 = vpop.permute.xlu1 %1432 }
 0x91d   :  { %v1437_v52 = vmul.f32 %v1433_v11, %v1429_v28 }
 0x91e   :  { %1517 = vmatpush.bf16.msrb.mxu0 %v3416_v29  ;;  %1530 = vmatpush.bf16.msrb.mxu1 %v3419_v30 }
 0x91f   :  { %v4052_v8 = vadd.f32 %v1437_v52, %v1436_v37 }
 0x921   :  { %3019 = vtanh.f32 %v4052_v8 }
 0x922   :  { %1518 = vmatpush.bf16.msrb.mxu0 %v3422_v35  ;;  %1531 = vmatpush.bf16.msrb.mxu1 %v3425_v36 }
 0x926   :  { %1519 = vmatpush.bf16.msrb.mxu0 %v3428_v41  ;;  %1532 = vmatpush.bf16.msrb.mxu1 %v3431_v42 }
 0x927   :  { %v3020_v62 = vpop.eup %3019 }
 0x928   :  { %v1440_v25 = vmul.f32 %v3020_v62, %v1435_v20  ;;  %v4597_v62 = vld [vmem:[#allocation26_spill] sm:$0xff] }
 0x92a   :  { %v1441_v63 = vpack.c.bf16 %v1440_v25, %v1440_v25  ;;  %1520 = vmatpush.bf16.msrb.mxu0 %v3434_v47  ;;  %1533 = vmatpush.bf16.msrb.mxu1 %v3437_v48 }
 0x92c   :  { %1450 = vmatmul.bf16.vlgmr.msra.gmra.mxu0 %v1441_v63  ;;  %1463 = vmatmul.bf16.vlgmr.msra.gmra.mxu1 %v1441_v63 }
 0x92e   :  { %1521 = vmatpush.bf16.msrb.mxu0 %v3440_v53  ;;  %1534 = vmatpush.bf16.msrb.mxu1 %v3443_v54 }
 0x932   :  { %1522 = vmatpush.bf16.msrb.mxu0 %v3446_v59  ;;  %1535 = vmatpush.bf16.msrb.mxu1 %v3449_v60 }
 0x936   :  { %1611 = vmatpush.bf16.msra.mxu0 %v3458_v12  ;;  %1624 = vmatpush.bf16.msra.mxu1 %v3460_v18 }
 0x93a   :  { %1612 = vmatpush.bf16.msra.mxu0 %v3463_v21  ;;  %1625 = vmatpush.bf16.msra.mxu1 %v3467_v22 }
 0x93c   :  { %1523 = vmatmul.bf16.vlgmr.msrb.gmra.mxu0 %v1441_v63  ;;  %1536 = vmatmul.bf16.vlgmr.msrb.gmra.mxu1 %v1441_v63 }
 0x93e   :  { %1613 = vmatpush.bf16.msra.mxu0 %v3471_v31  ;;  %1626 = vmatpush.bf16.msra.mxu1 %v3475_v32 }
 0x942   :  { %1614 = vmatpush.bf16.msra.mxu0 %v3479_v43  ;;  %1627 = vmatpush.bf16.msra.mxu1 %v3483_v45 }
 0x946   :  { %1615 = vmatpush.bf16.msra.mxu0 %v3488_v57  ;;  %1628 = vmatpush.bf16.msra.mxu1 %v3492_v58 }
 0x94a   :  { %1616 = vmatpush.bf16.msra.mxu0 %v3496_v5  ;;  %1629 = vmatpush.bf16.msra.mxu1 %v3500_v6 }
 0x94e   :  { %1617 = vmatpush.bf16.msra.mxu0 %v3506_v13  ;;  %1630 = vmatpush.bf16.msra.mxu1 %v3512_v14 }
 0x952   :  { %1618 = vmatpush.bf16.msra.mxu0 %v3516_v38  ;;  %1631 = vmatpush.bf16.msra.mxu1 %v3520_v39 }
 0x956   :  { %1690 = vmatpush.bf16.msrb.mxu0 %v3522_v40  ;;  %1703 = vmatpush.bf16.msrb.mxu1 %v3524_v44 }
 0x95a   :  { %1691 = vmatpush.bf16.msrb.mxu0 %v3536_v55  ;;  %1704 = vmatpush.bf16.msrb.mxu1 %v3538_v56 }
 0x95e   :  { %1692 = vmatpush.bf16.msrb.mxu0 %v3547_v2  ;;  %1705 = vmatpush.bf16.msrb.mxu1 %v3549_v3 }
 0x962   :  { %1693 = vmatpush.bf16.msrb.mxu0 %v3555_v61  ;;  %1706 = vmatpush.bf16.msrb.mxu1 %v3557_v10 }
 0x966   :  { %1694 = vmatpush.bf16.msrb.mxu0 %v3563_v26  ;;  %1707 = vmatpush.bf16.msrb.mxu1 %v3565_v27 }
 0x96a   :  { %1695 = vmatpush.bf16.msrb.mxu0 %v3571_v46  ;;  %1708 = vmatpush.bf16.msrb.mxu1 %v4592_v49 }
 0x96e   :  { %1696 = vmatpush.bf16.msrb.mxu0 %v4593_v7  ;;  %1709 = vmatpush.bf16.msrb.mxu1 %v4594_v50 }
 0x972   :  { %1697 = vmatpush.bf16.msrb.mxu0 %v4595_v19  ;;  %1710 = vmatpush.bf16.msrb.mxu1 %v4596_v0 }
 0x992   :  { %v1372_v34 = vpop.f32.mrf.mxu0  ;;  %v1385_v15 = vpop.f32.mrf.mxu1 }
 0x99a   :  { %v1374_v51 = vpop.f32.mrf.mxu0  ;;  %v1387_v33 = vpop.f32.mrf.mxu1 }
 0x9a9   :  { %v1451_v1 = vpop.f32.mrf.mxu0  ;;  %v1464_v28 = vpop.f32.mrf.mxu1 }
 0x9aa   :  { %v1452_v11 = vadd.f32 %v1451_v1, %v1372_v34  ;;  %v1465_v37 = vadd.f32 %v1464_v28, %v1385_v15  ;;  %v1514_v34 = vld [vmem:[#allocation2 + $0x10] ss:$8 sm:$0x3] }
 0x9ac   :  { %v1468_v52 = vadd.f32 %v1452_v11, %v3653_v9  ;;  %v1469_v20 = vadd.f32 %v1465_v37, %v4597_v62 }
 0x9ae   :  { %3021 = vtanh.f32 %v1468_v52 }
 0x9af   :  { %3023 = vtanh.f32 %v1469_v20 }
 0x9b1   :  { %v1453_v25 = vpop.f32.mrf.mxu0  ;;  %v1466_v63 = vpop.f32.mrf.mxu1 }
 0x9b4   :  { %v3022_v50 = vpop.eup %3021 }
 0x9b5   :  { %v3024_v19 = vpop.eup %3023  ;;  %1476 = vrot.lane.b32.xlu0 %v3022_v50, %s3314_s27 }
 0x9b6   :  { %v1474_v0 = vmul.f32 0.5, %v3024_v19 }
 0x9b8   :  { %v1475_v7 = vadd.f32 0.5, %v1474_v0 }
 0x9b9   :  { %v1537_v51 = vpop.f32.mrf.mxu1  ;;  %v1524_v33 = vpop.f32.mrf.mxu0 }
 0x9ba   :  { %v1543_v49 = vrot.slane %v1537_v51, 7  ;;  %1478 = vrot.lane.b32.xlu1 %v1475_v7, %s3314_s27 }
 0x9bc   :  { %v1544_v15 = vsel %vm466_vm1, %v1524_v33, %v1543_v49  ;;  %v1472_v33 = vmul.f32 0.5, %v3022_v50 }
 0x9bd   :  { %v1546_v1 = vadd.f32 %v1544_v15, %v1514_v34 }
 0x9be   :  { %v1473_v15 = vadd.f32 0.5, %v1472_v33 }
 0x9bf   :  { %3025 = vtanh.f32 %v1546_v1  ;;  %v1549_v28 = vrot.slane %v1546_v1, 1 }
 0x9c1   :  { %v1526_v11 = vpop.f32.mrf.mxu0  ;;  %v1539_v37 = vpop.f32.mrf.mxu1  ;;  %3027 = vtanh.f32 %v1549_v28  ;;  %v1480_v28 = vmul.f32 %v1475_v7, %v4042_v4 }
 0x9c5   :  { %v3026_v52 = vpop.eup %3025 }
 0x9c6   :  { %1556 = vrot.lane.b32.xlu2 %v3026_v52, %s3314_s27  ;;  %v1552_v25 = vmul.f32 0.5, %v3026_v52 }
 0x9c7   :  { %v3028_v20 = vpop.eup %3027 }
 0x9c8   :  { %v1554_v19 = vmul.f32 0.5, %v3028_v20  ;;  %v1553_v63 = vadd.f32 0.5, %v1552_v25 }
 0x9ca   :  { %v1555_v0 = vadd.f32 0.5, %v1554_v19 }
 0x9cc   :  { %1558 = vrot.lane.b32.xlu0 %v1555_v0, %s3314_s27  ;;  %v1560_v62 = vmul.f32 %v1555_v0, %v4052_v8  ;;  %v4599_v0 = vld [vmem:[#allocation22_spill] sm:$0xff] }
 0xa20   :  { %v1557_v51 = vpop.permute.xlu2 %1556 }
 0xa21   :  { %v1561_v49 = vmul.f32 %v1557_v51, %v1553_v63  ;;  %v4600_v63 = vld [vmem:[#allocation23_spill] sm:$0xff]  ;;  %v4601_v51 = vld [vmem:[#allocation24_spill] sm:$0xff] }
 0xa23   :  { %v4105_v34 = vadd.f32 %v1561_v49, %v1560_v62  ;;  %v4598_v62 = vld [vmem:[#allocation21_spill] sm:$0xff] }
 0xa24   :  { %v4602_v49 = vld [vmem:[#allocation25_spill] sm:$0xff] }
 0xa27   :  { %v1477_v1 = vpop.permute.xlu0 %1476 }
 0xa28   :  { %v1481_v11 = vmul.f32 %v1477_v1, %v1473_v15 }
 0xa2a   :  { %v4108_v37 = vadd.f32 %v1481_v11, %v1480_v28 }
 0xa2c   :  { %3029 = vtanh.f32 %v4108_v37  ;;  %v1479_v19 = vpop.permute.xlu1 %1478 }
 0xa2d   :  { %3031 = vtanh.f32 %v4105_v34 }
 0xa32   :  { %v3030_v20 = vpop.eup %3029 }
 0xa33   :  { %v1484_v52 = vmul.f32 %v3030_v20, %v1479_v19  ;;  %v3032_v8 = vpop.eup %3031 }
 0xa35   :  { %1485 = vst [vmem:[#allocation3 + $0x7] sm:$0x1] %v1484_v52  ;;  %v1486_v25 = vpack.c.bf16 %v1484_v52, %v1484_v52 }
 0xa37   :  { %1495 = vmatmul.bf16.vlgmr.msra.gmra.mxu2 %v1486_v25  ;;  %1508 = vmatmul.bf16.vlgmr.msra.gmra.mxu3 %v1486_v25 }
 0xa38   :  { %1639 = vmatpush.bf16.msra.mxu2 %v3405_v16  ;;  %1652 = vmatpush.bf16.msra.mxu3 %v3407_v17 }
 0xa3c   :  { %1640 = vmatpush.bf16.msra.mxu2 %v3410_v23  ;;  %1653 = vmatpush.bf16.msra.mxu3 %v3413_v24 }
 0xa3e   :  { %v1559_v4 = vpop.permute.xlu0 %1558 }
 0xa3f   :  { %v1564_v7 = vmul.f32 %v3032_v8, %v1559_v4  ;;  %v4603_v4 = vld [vmem:[#allocation26_spill] sm:$0xff] }
 0xa40   :  { %1641 = vmatpush.bf16.msra.mxu2 %v3416_v29  ;;  %1654 = vmatpush.bf16.msra.mxu3 %v3419_v30 }
 0xa41   :  { %v1565_v50 = vpack.c.bf16 %v1564_v7, %v1564_v7 }
 0xa44   :  { %1642 = vmatpush.bf16.msra.mxu2 %v3422_v35  ;;  %1655 = vmatpush.bf16.msra.mxu3 %v3425_v36 }
 0xa47   :  { %1574 = vmatmul.bf16.vlgmr.msrb.gmra.mxu2 %v1565_v50  ;;  %1587 = vmatmul.bf16.vlgmr.msrb.gmra.mxu3 %v1565_v50 }
 0xa48   :  { %1643 = vmatpush.bf16.msra.mxu2 %v3428_v41  ;;  %1656 = vmatpush.bf16.msra.mxu3 %v3431_v42 }
 0xa4c   :  { %1644 = vmatpush.bf16.msra.mxu2 %v3434_v47  ;;  %1657 = vmatpush.bf16.msra.mxu3 %v3437_v48 }
 0xa50   :  { %1645 = vmatpush.bf16.msra.mxu2 %v3440_v53  ;;  %1658 = vmatpush.bf16.msra.mxu3 %v3443_v54 }
 0xa54   :  { %1646 = vmatpush.bf16.msra.mxu2 %v3446_v59  ;;  %1659 = vmatpush.bf16.msra.mxu3 %v3449_v60 }
 0xa57   :  { %1647 = vmatmul.bf16.vlgmr.msra.gmra.mxu2 %v1565_v50  ;;  %1660 = vmatmul.bf16.vlgmr.msra.gmra.mxu3 %v1565_v50 }
 0xa58   :  { %1735 = vmatpush.bf16.msrb.mxu2 %v3458_v12  ;;  %1748 = vmatpush.bf16.msrb.mxu3 %v3460_v18 }
 0xa5c   :  { %1736 = vmatpush.bf16.msrb.mxu2 %v3463_v21  ;;  %1749 = vmatpush.bf16.msrb.mxu3 %v3467_v22 }
 0xa60   :  { %1737 = vmatpush.bf16.msrb.mxu2 %v3471_v31  ;;  %1750 = vmatpush.bf16.msrb.mxu3 %v3475_v32 }
 0xa64   :  { %1738 = vmatpush.bf16.msrb.mxu2 %v3479_v43  ;;  %1751 = vmatpush.bf16.msrb.mxu3 %v3483_v45 }
 0xa68   :  { %1739 = vmatpush.bf16.msrb.mxu2 %v3488_v57  ;;  %1752 = vmatpush.bf16.msrb.mxu3 %v3492_v58 }
 0xa6c   :  { %1740 = vmatpush.bf16.msrb.mxu2 %v3496_v5  ;;  %1753 = vmatpush.bf16.msrb.mxu3 %v3500_v6 }
 0xa70   :  { %1741 = vmatpush.bf16.msrb.mxu2 %v3506_v13  ;;  %1754 = vmatpush.bf16.msrb.mxu3 %v3512_v14 }
 0xa74   :  { %1742 = vmatpush.bf16.msrb.mxu2 %v3516_v38  ;;  %1755 = vmatpush.bf16.msrb.mxu3 %v3520_v39 }
 0xa78   :  { %1814 = vmatpush.bf16.msra.mxu2 %v3522_v40  ;;  %1827 = vmatpush.bf16.msra.mxu3 %v3524_v44 }
 0xa7c   :  { %1815 = vmatpush.bf16.msra.mxu2 %v3536_v55  ;;  %1828 = vmatpush.bf16.msra.mxu3 %v3538_v56 }
 0xa80   :  { %1816 = vmatpush.bf16.msra.mxu2 %v3547_v2  ;;  %1829 = vmatpush.bf16.msra.mxu3 %v3549_v3 }
 0xa84   :  { %1817 = vmatpush.bf16.msra.mxu2 %v3555_v61  ;;  %1830 = vmatpush.bf16.msra.mxu3 %v3557_v10 }
 0xa88   :  { %1818 = vmatpush.bf16.msra.mxu2 %v3563_v26  ;;  %1831 = vmatpush.bf16.msra.mxu3 %v3565_v27 }
 0xa8c   :  { %1819 = vmatpush.bf16.msra.mxu2 %v3571_v46  ;;  %1832 = vmatpush.bf16.msra.mxu3 %v4598_v62 }
 0xa90   :  { %1820 = vmatpush.bf16.msra.mxu2 %v4599_v0  ;;  %1833 = vmatpush.bf16.msra.mxu3 %v4600_v63 }
 0xa94   :  { %1821 = vmatpush.bf16.msra.mxu2 %v4601_v51  ;;  %1834 = vmatpush.bf16.msra.mxu3 %v4602_v49 }
 0xaba   :  { %v1496_v33 = vpop.f32.mrf.mxu2  ;;  %v1509_v15 = vpop.f32.mrf.mxu3 }
 0xac2   :  { %v1498_v1 = vpop.f32.mrf.mxu2  ;;  %v1511_v28 = vpop.f32.mrf.mxu3 }
 0xaca   :  { %v1575_v11 = vpop.f32.mrf.mxu2  ;;  %v1588_v20 = vpop.f32.mrf.mxu3 }
 0xacb   :  { %v1576_v19 = vadd.f32 %v1575_v11, %v1496_v33  ;;  %v1589_v52 = vadd.f32 %v1588_v20, %v1509_v15  ;;  %v1638_v33 = vld [vmem:[#allocation2 + $0x11] ss:$8 sm:$0x3] }
 0xacd   :  { %v1592_v25 = vadd.f32 %v1576_v19, %v3653_v9  ;;  %v1593_v8 = vadd.f32 %v1589_v52, %v4603_v4 }
 0xacf   :  { %3033 = vtanh.f32 %v1592_v25 }
 0xad0   :  { %3035 = vtanh.f32 %v1593_v8 }
 0xad2   :  { %v1577_v7 = vpop.f32.mrf.mxu2  ;;  %v1590_v50 = vpop.f32.mrf.mxu3 }
 0xad5   :  { %v3034_v63 = vpop.eup %3033 }
 0xad6   :  { %v3036_v51 = vpop.eup %3035  ;;  %1600 = vrot.lane.b32.xlu1 %v3034_v63, %s3314_s27  ;;  %v1596_v7 = vmul.f32 0.5, %v3034_v63 }
 0xad7   :  { %v1598_v49 = vmul.f32 0.5, %v3036_v51 }
 0xad8   :  { %v1597_v50 = vadd.f32 0.5, %v1596_v7  ;;  %v4605_v7 = vld [vmem:[#allocation22_spill] sm:$0xff] }
 0xad9   :  { %v1599_v0 = vadd.f32 0.5, %v1598_v49 }
 0xada   :  { %v1661_v1 = vpop.f32.mrf.mxu3  ;;  %v1648_v28 = vpop.f32.mrf.mxu2 }
 0xadb   :  { %v1667_v62 = vrot.slane %v1661_v1, 7  ;;  %1602 = vrot.lane.b32.xlu2 %v1599_v0, %s3314_s27  ;;  %v1604_v4 = vmul.f32 %v1599_v0, %v4108_v37 }
 0xadd   :  { %v1668_v15 = vsel %vm466_vm1, %v1648_v28, %v1667_v62 }
 0xade   :  { %v1670_v11 = vadd.f32 %v1668_v15, %v1638_v33 }
 0xae0   :  { %3037 = vtanh.f32 %v1670_v11  ;;  %v1673_v20 = vrot.slane %v1670_v11, 1 }
 0xae2   :  { %v1650_v19 = vpop.f32.mrf.mxu2  ;;  %v1663_v52 = vpop.f32.mrf.mxu3  ;;  %3039 = vtanh.f32 %v1673_v20 }
 0xae6   :  { %v3038_v25 = vpop.eup %3037 }
 0xae7   :  { %1680 = vrot.lane.b32.xlu0 %v3038_v25, %s3314_s27  ;;  %v1676_v20 = vmul.f32 0.5, %v3038_v25 }
 0xae8   :  { %v3040_v8 = vpop.eup %3039 }
 0xae9   :  { %v1678_v51 = vmul.f32 0.5, %v3040_v8  ;;  %v1677_v52 = vadd.f32 0.5, %v1676_v20 }
 0xaeb   :  { %v1679_v49 = vadd.f32 0.5, %v1678_v51 }
 0xaed   :  { %1682 = vrot.lane.b32.xlu1 %v1679_v49, %s3314_s27  ;;  %v1684_v37 = vmul.f32 %v1679_v49, %v4105_v34  ;;  %v4604_v49 = vld [vmem:[#allocation21_spill] sm:$0xff] }
 0xb35   :  { %v1603_v15 = vpop.permute.xlu2 %1602 }
 0xb48   :  { %v1601_v1 = vpop.permute.xlu1 %1600 }
 0xb49   :  { %v1605_v62 = vmul.f32 %v1601_v1, %v1597_v50  ;;  %v4606_v50 = vld [vmem:[#allocation23_spill] sm:$0xff]  ;;  %v4607_v1 = vld [vmem:[#allocation24_spill] sm:$0xff] }
 0xb4b   :  { %v4168_v28 = vadd.f32 %v1605_v62, %v1604_v4  ;;  %v4608_v62 = vld [vmem:[#allocation25_spill] sm:$0xff] }
 0xb4d   :  { %3041 = vtanh.f32 %v4168_v28 }
 0xb53   :  { %v3042_v33 = vpop.eup %3041 }
 0xb54   :  { %v1608_v11 = vmul.f32 %v3042_v33, %v1603_v15 }
 0xb56   :  { %1609 = vst [vmem:[#allocation3 + $0x8] sm:$0x1] %v1608_v11  ;;  %v1610_v19 = vpack.c.bf16 %v1608_v11, %v1608_v11 }
 0xb58   :  { %1619 = vmatmul.bf16.vlgmr.msra.gmra.mxu0 %v1610_v19  ;;  %1632 = vmatmul.bf16.vlgmr.msra.gmra.mxu1 %v1610_v19 }
 0xb59   :  { %v1681_v8 = vpop.permute.xlu0 %1680  ;;  %1763 = vmatpush.bf16.msra.mxu0 %v3405_v16  ;;  %1776 = vmatpush.bf16.msra.mxu1 %v3407_v17 }
 0xb5a   :  { %v1685_v0 = vmul.f32 %v1681_v8, %v1677_v52 }
 0xb5c   :  { %v4174_v63 = vadd.f32 %v1685_v0, %v1684_v37 }
 0xb5d   :  { %1764 = vmatpush.bf16.msra.mxu0 %v3410_v23  ;;  %1777 = vmatpush.bf16.msra.mxu1 %v3413_v24 }
 0xb5e   :  { %3043 = vtanh.f32 %v4174_v63 }
 0xb5f   :  { %v1683_v25 = vpop.permute.xlu1 %1682 }
 0xb61   :  { %1765 = vmatpush.bf16.msra.mxu0 %v3416_v29  ;;  %1778 = vmatpush.bf16.msra.mxu1 %v3419_v30 }
 0xb64   :  { %v3044_v4 = vpop.eup %3043 }
 0xb65   :  { %v1688_v51 = vmul.f32 %v3044_v4, %v1683_v25  ;;  %1766 = vmatpush.bf16.msra.mxu0 %v3422_v35  ;;  %1779 = vmatpush.bf16.msra.mxu1 %v3425_v36  ;;  %v4609_v4 = vld [vmem:[#allocation26_spill] sm:$0xff] }
 0xb67   :  { %v1689_v34 = vpack.c.bf16 %v1688_v51, %v1688_v51 }
 0xb69   :  { %1698 = vmatmul.bf16.vlgmr.msrb.gmra.mxu0 %v1689_v34  ;;  %1711 = vmatmul.bf16.vlgmr.msrb.gmra.mxu1 %v1689_v34 }
 0xb6a   :  { %1767 = vmatpush.bf16.msra.mxu0 %v3428_v41  ;;  %1780 = vmatpush.bf16.msra.mxu1 %v3431_v42 }
 0xb6e   :  { %1768 = vmatpush.bf16.msra.mxu0 %v3434_v47  ;;  %1781 = vmatpush.bf16.msra.mxu1 %v3437_v48 }
 0xb72   :  { %1769 = vmatpush.bf16.msra.mxu0 %v3440_v53  ;;  %1782 = vmatpush.bf16.msra.mxu1 %v3443_v54 }
 0xb76   :  { %1770 = vmatpush.bf16.msra.mxu0 %v3446_v59  ;;  %1783 = vmatpush.bf16.msra.mxu1 %v3449_v60 }
 0xb79   :  { %1771 = vmatmul.bf16.vlgmr.msra.gmra.mxu0 %v1689_v34  ;;  %1784 = vmatmul.bf16.vlgmr.msra.gmra.mxu1 %v1689_v34 }
 0xb7a   :  { %1859 = vmatpush.bf16.msrb.mxu0 %v3458_v12  ;;  %1872 = vmatpush.bf16.msrb.mxu1 %v3460_v18 }
 0xb7e   :  { %1860 = vmatpush.bf16.msrb.mxu0 %v3463_v21  ;;  %1873 = vmatpush.bf16.msrb.mxu1 %v3467_v22 }
 0xb82   :  { %1861 = vmatpush.bf16.msrb.mxu0 %v3471_v31  ;;  %1874 = vmatpush.bf16.msrb.mxu1 %v3475_v32 }
 0xb86   :  { %1862 = vmatpush.bf16.msrb.mxu0 %v3479_v43  ;;  %1875 = vmatpush.bf16.msrb.mxu1 %v3483_v45 }
 0xb8a   :  { %1863 = vmatpush.bf16.msrb.mxu0 %v3488_v57  ;;  %1876 = vmatpush.bf16.msrb.mxu1 %v3492_v58 }
 0xb8e   :  { %1864 = vmatpush.bf16.msrb.mxu0 %v3496_v5  ;;  %1877 = vmatpush.bf16.msrb.mxu1 %v3500_v6 }
 0xb92   :  { %1865 = vmatpush.bf16.msrb.mxu0 %v3506_v13  ;;  %1878 = vmatpush.bf16.msrb.mxu1 %v3512_v14 }
 0xb96   :  { %1866 = vmatpush.bf16.msrb.mxu0 %v3516_v38  ;;  %1879 = vmatpush.bf16.msrb.mxu1 %v3520_v39 }
 0xb9a   :  { %1938 = vmatpush.bf16.msra.mxu0 %v3522_v40  ;;  %1951 = vmatpush.bf16.msra.mxu1 %v3524_v44 }
 0xb9e   :  { %1939 = vmatpush.bf16.msra.mxu0 %v3536_v55  ;;  %1952 = vmatpush.bf16.msra.mxu1 %v3538_v56 }
 0xba2   :  { %1940 = vmatpush.bf16.msra.mxu0 %v3547_v2  ;;  %1953 = vmatpush.bf16.msra.mxu1 %v3549_v3 }
 0xba6   :  { %1941 = vmatpush.bf16.msra.mxu0 %v3555_v61  ;;  %1954 = vmatpush.bf16.msra.mxu1 %v3557_v10 }
 0xbaa   :  { %1942 = vmatpush.bf16.msra.mxu0 %v3563_v26  ;;  %1955 = vmatpush.bf16.msra.mxu1 %v3565_v27 }
 0xbae   :  { %1943 = vmatpush.bf16.msra.mxu0 %v3571_v46  ;;  %1956 = vmatpush.bf16.msra.mxu1 %v4604_v49 }
 0xbb2   :  { %1944 = vmatpush.bf16.msra.mxu0 %v4605_v7  ;;  %1957 = vmatpush.bf16.msra.mxu1 %v4606_v50 }
 0xbb6   :  { %1945 = vmatpush.bf16.msra.mxu0 %v4607_v1  ;;  %1958 = vmatpush.bf16.msra.mxu1 %v4608_v62 }
 0xbd5   :  { %v1620_v33 = vpop.f32.mrf.mxu0  ;;  %v1633_v15 = vpop.f32.mrf.mxu1 }
 0xbdd   :  { %v1622_v11 = vpop.f32.mrf.mxu0  ;;  %v1635_v20 = vpop.f32.mrf.mxu1 }
 0xbe6   :  { %v1699_v19 = vpop.f32.mrf.mxu0  ;;  %v1712_v52 = vpop.f32.mrf.mxu1 }
 0xbe7   :  { %v1700_v8 = vadd.f32 %v1699_v19, %v1620_v33  ;;  %v1713_v37 = vadd.f32 %v1712_v52, %v1633_v15  ;;  %v1762_v33 = vld [vmem:[#allocation2 + $0x12] ss:$8 sm:$0x3] }
 0xbe9   :  { %v1716_v0 = vadd.f32 %v1700_v8, %v3653_v9  ;;  %v1717_v25 = vadd.f32 %v1713_v37, %v4609_v4 }
 0xbeb   :  { %3045 = vtanh.f32 %v1716_v0 }
 0xbec   :  { %3047 = vtanh.f32 %v1717_v25 }
 0xbee   :  { %v1701_v51 = vpop.f32.mrf.mxu0  ;;  %v1714_v34 = vpop.f32.mrf.mxu1 }
 0xbf1   :  { %v3046_v50 = vpop.eup %3045 }
 0xbf2   :  { %v3048_v1 = vpop.eup %3047  ;;  %1724 = vrot.lane.b32.xlu2 %v3046_v50, %s3314_s27  ;;  %v1720_v51 = vmul.f32 0.5, %v3046_v50 }
 0xbf3   :  { %v1722_v62 = vmul.f32 0.5, %v3048_v1 }
 0xbf4   :  { %v1721_v34 = vadd.f32 0.5, %v1720_v51  ;;  %v4611_v51 = vld [vmem:[#allocation22_spill] sm:$0xff] }
 0xbf5   :  { %v1723_v7 = vadd.f32 0.5, %v1722_v62 }
 0xbf6   :  { %v1785_v11 = vpop.f32.mrf.mxu1  ;;  %v1772_v20 = vpop.f32.mrf.mxu0 }
 0xbf7   :  { %v1791_v49 = vrot.slane %v1785_v11, 7  ;;  %1726 = vrot.lane.b32.xlu0 %v1723_v7, %s3314_s27  ;;  %v1728_v4 = vmul.f32 %v1723_v7, %v4168_v28 }
 0xbf9   :  { %v1792_v15 = vsel %vm466_vm1, %v1772_v20, %v1791_v49 }
 0xbfa   :  { %v1794_v19 = vadd.f32 %v1792_v15, %v1762_v33 }
 0xbfc   :  { %3049 = vtanh.f32 %v1794_v19  ;;  %v1797_v52 = vrot.slane %v1794_v19, 1 }
 0xbfe   :  { %v1774_v8 = vpop.f32.mrf.mxu0  ;;  %v1787_v37 = vpop.f32.mrf.mxu1  ;;  %3051 = vtanh.f32 %v1797_v52 }
 0xc02   :  { %v3050_v0 = vpop.eup %3049 }
 0xc03   :  { %1804 = vrot.lane.b32.xlu1 %v3050_v0, %s3314_s27  ;;  %v1800_v50 = vmul.f32 0.5, %v3050_v0 }
 0xc04   :  { %v3052_v25 = vpop.eup %3051 }
 0xc05   :  { %v1802_v1 = vmul.f32 0.5, %v3052_v25  ;;  %v1801_v28 = vadd.f32 0.5, %v1800_v50 }
 0xc07   :  { %v1803_v62 = vadd.f32 0.5, %v1802_v1 }
 0xc09   :  { %1806 = vrot.lane.b32.xlu2 %v1803_v62, %s3314_s27 }
 0xc4c   :  { %v1725_v11 = vpop.permute.xlu2 %1724 }
 0xc4d   :  { %v1729_v49 = vmul.f32 %v1725_v11, %v1721_v34  ;;  %v4612_v34 = vld [vmem:[#allocation23_spill] sm:$0xff]  ;;  %v4613_v11 = vld [vmem:[#allocation24_spill] sm:$0xff] }
 0xc4f   :  { %v4231_v20 = vadd.f32 %v1729_v49, %v1728_v4  ;;  %v1808_v4 = vmul.f32 %v1803_v62, %v4174_v63  ;;  %v4610_v62 = vld [vmem:[#allocation21_spill] sm:$0xff] }
 0xc50   :  { %v4614_v49 = vld [vmem:[#allocation25_spill] sm:$0xff] }
 0xc51   :  { %3053 = vtanh.f32 %v4231_v20 }
 0xc57   :  { %v3054_v33 = vpop.eup %3053 }
 0xc63   :  { %v1807_v25 = vpop.permute.xlu2 %1806 }
 0xc69   :  { %v1727_v15 = vpop.permute.xlu0 %1726 }
 0xc6a   :  { %v1732_v19 = vmul.f32 %v3054_v33, %v1727_v15 }
 0xc6c   :  { %1733 = vst [vmem:[#allocation3 + $0x9] sm:$0x1] %v1732_v19  ;;  %v1734_v52 = vpack.c.bf16 %v1732_v19, %v1732_v19 }
 0xc6e   :  { %1743 = vmatmul.bf16.vlgmr.msrb.gmra.mxu2 %v1734_v52  ;;  %1756 = vmatmul.bf16.vlgmr.msrb.gmra.mxu3 %v1734_v52 }
 0xc6f   :  { %1887 = vmatpush.bf16.msrb.mxu2 %v3405_v16  ;;  %1900 = vmatpush.bf16.msrb.mxu3 %v3407_v17 }
 0xc73   :  { %1888 = vmatpush.bf16.msrb.mxu2 %v3410_v23  ;;  %1901 = vmatpush.bf16.msrb.mxu3 %v3413_v24 }
 0xc75   :  { %v1805_v7 = vpop.permute.xlu1 %1804 }
 0xc76   :  { %v1809_v8 = vmul.f32 %v1805_v7, %v1801_v28 }
 0xc77   :  { %1889 = vmatpush.bf16.msrb.mxu2 %v3416_v29  ;;  %1902 = vmatpush.bf16.msrb.mxu3 %v3419_v30 }
 0xc78   :  { %v4241_v37 = vadd.f32 %v1809_v8, %v1808_v4 }
 0xc7a   :  { %3055 = vtanh.f32 %v4241_v37 }
 0xc7b   :  { %1890 = vmatpush.bf16.msrb.mxu2 %v3422_v35  ;;  %1903 = vmatpush.bf16.msrb.mxu3 %v3425_v36 }
 0xc7f   :  { %1891 = vmatpush.bf16.msrb.mxu2 %v3428_v41  ;;  %1904 = vmatpush.bf16.msrb.mxu3 %v3431_v42 }
 0xc80   :  { %v3056_v0 = vpop.eup %3055 }
 0xc81   :  { %v1812_v63 = vmul.f32 %v3056_v0, %v1807_v25  ;;  %v4615_v0 = vld [vmem:[#allocation26_spill] sm:$0xff] }
 0xc83   :  { %v1813_v1 = vpack.c.bf16 %v1812_v63, %v1812_v63  ;;  %1892 = vmatpush.bf16.msrb.mxu2 %v3434_v47  ;;  %1905 = vmatpush.bf16.msrb.mxu3 %v3437_v48 }
 0xc85   :  { %1822 = vmatmul.bf16.vlgmr.msra.gmra.mxu2 %v1813_v1  ;;  %1835 = vmatmul.bf16.vlgmr.msra.gmra.mxu3 %v1813_v1 }
 0xc87   :  { %1893 = vmatpush.bf16.msrb.mxu2 %v3440_v53  ;;  %1906 = vmatpush.bf16.msrb.mxu3 %v3443_v54 }
 0xc8b   :  { %1894 = vmatpush.bf16.msrb.mxu2 %v3446_v59  ;;  %1907 = vmatpush.bf16.msrb.mxu3 %v3449_v60 }
 0xc8f   :  { %1983 = vmatpush.bf16.msra.mxu2 %v3458_v12  ;;  %1996 = vmatpush.bf16.msra.mxu3 %v3460_v18 }
 0xc93   :  { %1984 = vmatpush.bf16.msra.mxu2 %v3463_v21  ;;  %1997 = vmatpush.bf16.msra.mxu3 %v3467_v22 }
 0xc95   :  { %1895 = vmatmul.bf16.vlgmr.msrb.gmra.mxu2 %v1813_v1  ;;  %1908 = vmatmul.bf16.vlgmr.msrb.gmra.mxu3 %v1813_v1 }
 0xc97   :  { %1985 = vmatpush.bf16.msra.mxu2 %v3471_v31  ;;  %1998 = vmatpush.bf16.msra.mxu3 %v3475_v32 }
 0xc9b   :  { %1986 = vmatpush.bf16.msra.mxu2 %v3479_v43  ;;  %1999 = vmatpush.bf16.msra.mxu3 %v3483_v45 }
 0xc9f   :  { %1987 = vmatpush.bf16.msra.mxu2 %v3488_v57  ;;  %2000 = vmatpush.bf16.msra.mxu3 %v3492_v58 }
 0xca3   :  { %1988 = vmatpush.bf16.msra.mxu2 %v3496_v5  ;;  %2001 = vmatpush.bf16.msra.mxu3 %v3500_v6 }
 0xca7   :  { %1989 = vmatpush.bf16.msra.mxu2 %v3506_v13  ;;  %2002 = vmatpush.bf16.msra.mxu3 %v3512_v14 }
 0xcab   :  { %1990 = vmatpush.bf16.msra.mxu2 %v3516_v38  ;;  %2003 = vmatpush.bf16.msra.mxu3 %v3520_v39 }
 0xcaf   :  { %2062 = vmatpush.bf16.msrb.mxu2 %v3522_v40  ;;  %2075 = vmatpush.bf16.msrb.mxu3 %v3524_v44 }
 0xcb3   :  { %2063 = vmatpush.bf16.msrb.mxu2 %v3536_v55  ;;  %2076 = vmatpush.bf16.msrb.mxu3 %v3538_v56 }
 0xcb7   :  { %2064 = vmatpush.bf16.msrb.mxu2 %v3547_v2  ;;  %2077 = vmatpush.bf16.msrb.mxu3 %v3549_v3 }
 0xcbb   :  { %2065 = vmatpush.bf16.msrb.mxu2 %v3555_v61  ;;  %2078 = vmatpush.bf16.msrb.mxu3 %v3557_v10 }
 0xcbf   :  { %2066 = vmatpush.bf16.msrb.mxu2 %v3563_v26  ;;  %2079 = vmatpush.bf16.msrb.mxu3 %v3565_v27 }
 0xcc3   :  { %2067 = vmatpush.bf16.msrb.mxu2 %v3571_v46  ;;  %2080 = vmatpush.bf16.msrb.mxu3 %v4610_v62 }
 0xcc7   :  { %2068 = vmatpush.bf16.msrb.mxu2 %v4611_v51  ;;  %2081 = vmatpush.bf16.msrb.mxu3 %v4612_v34 }
 0xccb   :  { %2069 = vmatpush.bf16.msrb.mxu2 %v4613_v11  ;;  %2082 = vmatpush.bf16.msrb.mxu3 %v4614_v49 }
 0xcf1   :  { %v1744_v33 = vpop.f32.mrf.mxu2  ;;  %v1757_v15 = vpop.f32.mrf.mxu3 }
 0xcf9   :  { %v1746_v19 = vpop.f32.mrf.mxu2  ;;  %v1759_v52 = vpop.f32.mrf.mxu3 }
 0xd08   :  { %v1823_v50 = vpop.f32.mrf.mxu2  ;;  %v1836_v28 = vpop.f32.mrf.mxu3 }
 0xd09   :  { %v1824_v7 = vadd.f32 %v1823_v50, %v1744_v33  ;;  %v1837_v4 = vadd.f32 %v1836_v28, %v1757_v15  ;;  %v1886_v33 = vld [vmem:[#allocation2 + $0x13] ss:$8 sm:$0x3] }
 0xd0b   :  { %v1840_v8 = vadd.f32 %v1824_v7, %v3653_v9  ;;  %v1841_v25 = vadd.f32 %v1837_v4, %v4615_v0 }
 0xd0d   :  { %3057 = vtanh.f32 %v1840_v8 }
 0xd0e   :  { %3059 = vtanh.f32 %v1841_v25 }
 0xd10   :  { %v1825_v63 = vpop.f32.mrf.mxu2  ;;  %v1838_v1 = vpop.f32.mrf.mxu3 }
 0xd13   :  { %v3058_v34 = vpop.eup %3057 }
 0xd14   :  { %v3060_v11 = vpop.eup %3059  ;;  %1848 = vrot.lane.b32.xlu0 %v3058_v34, %s3314_s27 }
 0xd15   :  { %v1846_v49 = vmul.f32 0.5, %v3060_v11 }
 0xd17   :  { %v1847_v51 = vadd.f32 0.5, %v1846_v49 }
 0xd18   :  { %v1909_v19 = vpop.f32.mrf.mxu3  ;;  %v1896_v52 = vpop.f32.mrf.mxu2 }
 0xd19   :  { %v1915_v62 = vrot.slane %v1909_v19, 7  ;;  %1850 = vrot.lane.b32.xlu1 %v1847_v51, %s3314_s27 }
 0xd1b   :  { %v1916_v15 = vsel %vm466_vm1, %v1896_v52, %v1915_v62  ;;  %v1844_v52 = vmul.f32 0.5, %v3058_v34 }
 0xd1c   :  { %v1918_v50 = vadd.f32 %v1916_v15, %v1886_v33 }
 0xd1d   :  { %v1845_v15 = vadd.f32 0.5, %v1844_v52 }
 0xd1e   :  { %3061 = vtanh.f32 %v1918_v50  ;;  %v1921_v28 = vrot.slane %v1918_v50, 1 }
 0xd20   :  { %v1898_v7 = vpop.f32.mrf.mxu2  ;;  %v1911_v4 = vpop.f32.mrf.mxu3  ;;  %3063 = vtanh.f32 %v1921_v28  ;;  %v1852_v28 = vmul.f32 %v1847_v51, %v4231_v20 }
 0xd24   :  { %v3062_v8 = vpop.eup %3061 }
 0xd25   :  { %1928 = vrot.lane.b32.xlu2 %v3062_v8, %s3314_s27  ;;  %v1924_v63 = vmul.f32 0.5, %v3062_v8 }
 0xd26   :  { %v3064_v25 = vpop.eup %3063 }
 0xd27   :  { %v1926_v11 = vmul.f32 0.5, %v3064_v25  ;;  %v1925_v1 = vadd.f32 0.5, %v1924_v63 }
 0xd29   :  { %v1927_v49 = vadd.f32 0.5, %v1926_v11 }
 0xd2b   :  { %1930 = vrot.lane.b32.xlu0 %v1927_v49, %s3314_s27  ;;  %v1932_v0 = vmul.f32 %v1927_v49, %v4241_v37  ;;  %v4617_v49 = vld [vmem:[#allocation22_spill] sm:$0xff] }
 0xd7f   :  { %v1929_v19 = vpop.permute.xlu2 %1928 }
 0xd80   :  { %v1933_v62 = vmul.f32 %v1929_v19, %v1925_v1  ;;  %v4618_v1 = vld [vmem:[#allocation23_spill] sm:$0xff]  ;;  %v4619_v19 = vld [vmem:[#allocation24_spill] sm:$0xff] }
 0xd82   :  { %v4294_v33 = vadd.f32 %v1933_v62, %v1932_v0  ;;  %v4616_v0 = vld [vmem:[#allocation21_spill] sm:$0xff] }
 0xd83   :  { %v4620_v62 = vld [vmem:[#allocation25_spill] sm:$0xff] }
 0xd86   :  { %v1849_v50 = vpop.permute.xlu0 %1848 }
 0xd87   :  { %v1853_v7 = vmul.f32 %v1849_v50, %v1845_v15 }
 0xd89   :  { %v4297_v4 = vadd.f32 %v1853_v7, %v1852_v28 }
 0xd8b   :  { %3065 = vtanh.f32 %v4297_v4  ;;  %v1851_v11 = vpop.permute.xlu1 %1850 }
 0xd8c   :  { %3067 = vtanh.f32 %v4294_v33 }
 0xd91   :  { %v3066_v25 = vpop.eup %3065 }
 0xd92   :  { %v1856_v8 = vmul.f32 %v3066_v25, %v1851_v11  ;;  %v3068_v37 = vpop.eup %3067 }
 0xd94   :  { %1857 = vst [vmem:[#allocation3 + $0xa] sm:$0x1] %v1856_v8  ;;  %v1858_v63 = vpack.c.bf16 %v1856_v8, %v1856_v8 }
 0xd96   :  { %1867 = vmatmul.bf16.vlgmr.msrb.gmra.mxu0 %v1858_v63  ;;  %1880 = vmatmul.bf16.vlgmr.msrb.gmra.mxu1 %v1858_v63 }
 0xd97   :  { %2011 = vmatpush.bf16.msrb.mxu0 %v3405_v16  ;;  %2024 = vmatpush.bf16.msrb.mxu1 %v3407_v17 }
 0xd9b   :  { %2012 = vmatpush.bf16.msrb.mxu0 %v3410_v23  ;;  %2025 = vmatpush.bf16.msrb.mxu1 %v3413_v24 }
 0xd9d   :  { %v1931_v20 = vpop.permute.xlu0 %1930 }
 0xd9e   :  { %v1936_v51 = vmul.f32 %v3068_v37, %v1931_v20  ;;  %v4621_v20 = vld [vmem:[#allocation26_spill] sm:$0xff] }
 0xd9f   :  { %2013 = vmatpush.bf16.msrb.mxu0 %v3416_v29  ;;  %2026 = vmatpush.bf16.msrb.mxu1 %v3419_v30 }
 0xda0   :  { %v1937_v34 = vpack.c.bf16 %v1936_v51, %v1936_v51 }
 0xda3   :  { %2014 = vmatpush.bf16.msrb.mxu0 %v3422_v35  ;;  %2027 = vmatpush.bf16.msrb.mxu1 %v3425_v36 }
 0xda6   :  { %1946 = vmatmul.bf16.vlgmr.msra.gmra.mxu0 %v1937_v34  ;;  %1959 = vmatmul.bf16.vlgmr.msra.gmra.mxu1 %v1937_v34 }
 0xda7   :  { %2015 = vmatpush.bf16.msrb.mxu0 %v3428_v41  ;;  %2028 = vmatpush.bf16.msrb.mxu1 %v3431_v42 }
 0xdab   :  { %2016 = vmatpush.bf16.msrb.mxu0 %v3434_v47  ;;  %2029 = vmatpush.bf16.msrb.mxu1 %v3437_v48 }
 0xdaf   :  { %2017 = vmatpush.bf16.msrb.mxu0 %v3440_v53  ;;  %2030 = vmatpush.bf16.msrb.mxu1 %v3443_v54 }
 0xdb3   :  { %2018 = vmatpush.bf16.msrb.mxu0 %v3446_v59  ;;  %2031 = vmatpush.bf16.msrb.mxu1 %v3449_v60 }
 0xdb6   :  { %2019 = vmatmul.bf16.vlgmr.msrb.gmra.mxu0 %v1937_v34  ;;  %2032 = vmatmul.bf16.vlgmr.msrb.gmra.mxu1 %v1937_v34 }
 0xdb7   :  { %2107 = vmatpush.bf16.msra.mxu0 %v3458_v12  ;;  %2120 = vmatpush.bf16.msra.mxu1 %v3460_v18 }
 0xdbb   :  { %2108 = vmatpush.bf16.msra.mxu0 %v3463_v21  ;;  %2121 = vmatpush.bf16.msra.mxu1 %v3467_v22 }
 0xdbf   :  { %2109 = vmatpush.bf16.msra.mxu0 %v3471_v31  ;;  %2122 = vmatpush.bf16.msra.mxu1 %v3475_v32 }
 0xdc3   :  { %2110 = vmatpush.bf16.msra.mxu0 %v3479_v43  ;;  %2123 = vmatpush.bf16.msra.mxu1 %v3483_v45 }
 0xdc7   :  { %2111 = vmatpush.bf16.msra.mxu0 %v3488_v57  ;;  %2124 = vmatpush.bf16.msra.mxu1 %v3492_v58 }
 0xdcb   :  { %2112 = vmatpush.bf16.msra.mxu0 %v3496_v5  ;;  %2125 = vmatpush.bf16.msra.mxu1 %v3500_v6 }
 0xdcf   :  { %2113 = vmatpush.bf16.msra.mxu0 %v3506_v13  ;;  %2126 = vmatpush.bf16.msra.mxu1 %v3512_v14 }
 0xdd3   :  { %2114 = vmatpush.bf16.msra.mxu0 %v3516_v38  ;;  %2127 = vmatpush.bf16.msra.mxu1 %v3520_v39 }
 0xdd7   :  { %2186 = vmatpush.bf16.msrb.mxu0 %v3522_v40  ;;  %2199 = vmatpush.bf16.msrb.mxu1 %v3524_v44 }
 0xddb   :  { %2187 = vmatpush.bf16.msrb.mxu0 %v3536_v55  ;;  %2200 = vmatpush.bf16.msrb.mxu1 %v3538_v56 }
 0xddf   :  { %2188 = vmatpush.bf16.msrb.mxu0 %v3547_v2  ;;  %2201 = vmatpush.bf16.msrb.mxu1 %v3549_v3 }
 0xde3   :  { %2189 = vmatpush.bf16.msrb.mxu0 %v3555_v61  ;;  %2202 = vmatpush.bf16.msrb.mxu1 %v3557_v10 }
 0xde7   :  { %2190 = vmatpush.bf16.msrb.mxu0 %v3563_v26  ;;  %2203 = vmatpush.bf16.msrb.mxu1 %v3565_v27 }
 0xdeb   :  { %2191 = vmatpush.bf16.msrb.mxu0 %v3571_v46  ;;  %2204 = vmatpush.bf16.msrb.mxu1 %v4616_v0 }
 0xdef   :  { %2192 = vmatpush.bf16.msrb.mxu0 %v4617_v49  ;;  %2205 = vmatpush.bf16.msrb.mxu1 %v4618_v1 }
 0xdf3   :  { %2193 = vmatpush.bf16.msrb.mxu0 %v4619_v19  ;;  %2206 = vmatpush.bf16.msrb.mxu1 %v4620_v62 }
 0xe13   :  { %v1868_v52 = vpop.f32.mrf.mxu0  ;;  %v1881_v15 = vpop.f32.mrf.mxu1 }
 0xe1b   :  { %v1870_v50 = vpop.f32.mrf.mxu0  ;;  %v1883_v28 = vpop.f32.mrf.mxu1 }
 0xe23   :  { %v1947_v7 = vpop.f32.mrf.mxu0  ;;  %v1960_v25 = vpop.f32.mrf.mxu1 }
 0xe24   :  { %v1948_v11 = vadd.f32 %v1947_v7, %v1868_v52  ;;  %v1961_v8 = vadd.f32 %v1960_v25, %v1881_v15  ;;  %v2010_v52 = vld [vmem:[#allocation2 + $0x14] ss:$8 sm:$0x3] }
 0xe26   :  { %v1964_v63 = vadd.f32 %v1948_v11, %v3653_v9  ;;  %v1965_v37 = vadd.f32 %v1961_v8, %v4621_v20 }
 0xe28   :  { %3069 = vtanh.f32 %v1964_v63 }
 0xe29   :  { %3071 = vtanh.f32 %v1965_v37 }
 0xe2b   :  { %v1949_v51 = vpop.f32.mrf.mxu0  ;;  %v1962_v34 = vpop.f32.mrf.mxu1 }
 0xe2e   :  { %v3070_v1 = vpop.eup %3069 }
 0xe2f   :  { %v3072_v19 = vpop.eup %3071  ;;  %1972 = vrot.lane.b32.xlu1 %v3070_v1, %s3314_s27  ;;  %v1968_v51 = vmul.f32 0.5, %v3070_v1 }
 0xe30   :  { %v1970_v62 = vmul.f32 0.5, %v3072_v19 }
 0xe31   :  { %v1969_v34 = vadd.f32 0.5, %v1968_v51  ;;  %v4623_v51 = vld [vmem:[#allocation22_spill] sm:$0xff] }
 0xe32   :  { %v1971_v49 = vadd.f32 0.5, %v1970_v62 }
 0xe33   :  { %v2033_v50 = vpop.f32.mrf.mxu1  ;;  %v2020_v28 = vpop.f32.mrf.mxu0 }
 0xe34   :  { %v2039_v0 = vrot.slane %v2033_v50, 7  ;;  %1974 = vrot.lane.b32.xlu2 %v1971_v49, %s3314_s27  ;;  %v1976_v20 = vmul.f32 %v1971_v49, %v4297_v4 }
 0xe36   :  { %v2040_v15 = vsel %vm466_vm1, %v2020_v28, %v2039_v0 }
 0xe37   :  { %v2042_v7 = vadd.f32 %v2040_v15, %v2010_v52 }
 0xe39   :  { %3073 = vtanh.f32 %v2042_v7  ;;  %v2045_v25 = vrot.slane %v2042_v7, 1 }
 0xe3b   :  { %v2022_v11 = vpop.f32.mrf.mxu0  ;;  %v2035_v8 = vpop.f32.mrf.mxu1  ;;  %3075 = vtanh.f32 %v2045_v25 }
 0xe3f   :  { %v3074_v63 = vpop.eup %3073 }
 0xe40   :  { %2052 = vrot.lane.b32.xlu0 %v3074_v63, %s3314_s27  ;;  %v2048_v25 = vmul.f32 0.5, %v3074_v63 }
 0xe41   :  { %v3076_v37 = vpop.eup %3075 }
 0xe42   :  { %v2050_v19 = vmul.f32 0.5, %v3076_v37  ;;  %v2049_v8 = vadd.f32 0.5, %v2048_v25 }
 0xe44   :  { %v2051_v62 = vadd.f32 0.5, %v2050_v19 }
 0xe46   :  { %2054 = vrot.lane.b32.xlu1 %v2051_v62, %s3314_s27  ;;  %v2056_v4 = vmul.f32 %v2051_v62, %v4294_v33  ;;  %v4622_v62 = vld [vmem:[#allocation21_spill] sm:$0xff] }
 0xe8e   :  { %v1975_v15 = vpop.permute.xlu2 %1974 }
 0xea1   :  { %v1973_v50 = vpop.permute.xlu1 %1972 }
 0xea2   :  { %v1977_v0 = vmul.f32 %v1973_v50, %v1969_v34  ;;  %v4624_v34 = vld [vmem:[#allocation23_spill] sm:$0xff]  ;;  %v4625_v50 = vld [vmem:[#allocation24_spill] sm:$0xff] }
 0xea4   :  { %v4357_v28 = vadd.f32 %v1977_v0, %v1976_v20  ;;  %v4626_v0 = vld [vmem:[#allocation25_spill] sm:$0xff] }
 0xea6   :  { %3077 = vtanh.f32 %v4357_v28 }
 0xeac   :  { %v3078_v52 = vpop.eup %3077 }
 0xead   :  { %v1980_v7 = vmul.f32 %v3078_v52, %v1975_v15 }
 0xeaf   :  { %1981 = vst [vmem:[#allocation3 + $0xb] sm:$0x1] %v1980_v7  ;;  %v1982_v11 = vpack.c.bf16 %v1980_v7, %v1980_v7 }
 0xeb1   :  { %1991 = vmatmul.bf16.vlgmr.msra.gmra.mxu2 %v1982_v11  ;;  %2004 = vmatmul.bf16.vlgmr.msra.gmra.mxu3 %v1982_v11 }
 0xeb2   :  { %v2053_v37 = vpop.permute.xlu0 %2052  ;;  %2135 = vmatpush.bf16.msra.mxu2 %v3405_v16  ;;  %2148 = vmatpush.bf16.msra.mxu3 %v3407_v17 }
 0xeb3   :  { %v2057_v49 = vmul.f32 %v2053_v37, %v2049_v8 }
 0xeb5   :  { %v4363_v1 = vadd.f32 %v2057_v49, %v2056_v4 }
 0xeb6   :  { %2136 = vmatpush.bf16.msra.mxu2 %v3410_v23  ;;  %2149 = vmatpush.bf16.msra.mxu3 %v3413_v24 }
 0xeb7   :  { %3079 = vtanh.f32 %v4363_v1 }
 0xeb8   :  { %v2055_v63 = vpop.permute.xlu1 %2054 }
 0xeba   :  { %2137 = vmatpush.bf16.msra.mxu2 %v3416_v29  ;;  %2150 = vmatpush.bf16.msra.mxu3 %v3419_v30 }
 0xebd   :  { %v3080_v20 = vpop.eup %3079 }
 0xebe   :  { %v2060_v19 = vmul.f32 %v3080_v20, %v2055_v63  ;;  %2138 = vmatpush.bf16.msra.mxu2 %v3422_v35  ;;  %2151 = vmatpush.bf16.msra.mxu3 %v3425_v36  ;;  %v4627_v20 = vld [vmem:[#allocation26_spill] sm:$0xff] }
 0xec0   :  { %v2061_v33 = vpack.c.bf16 %v2060_v19, %v2060_v19 }
 0xec2   :  { %2070 = vmatmul.bf16.vlgmr.msrb.gmra.mxu2 %v2061_v33  ;;  %2083 = vmatmul.bf16.vlgmr.msrb.gmra.mxu3 %v2061_v33 }
 0xec3   :  { %2139 = vmatpush.bf16.msra.mxu2 %v3428_v41  ;;  %2152 = vmatpush.bf16.msra.mxu3 %v3431_v42 }
 0xec7   :  { %2140 = vmatpush.bf16.msra.mxu2 %v3434_v47  ;;  %2153 = vmatpush.bf16.msra.mxu3 %v3437_v48 }
 0xecb   :  { %2141 = vmatpush.bf16.msra.mxu2 %v3440_v53  ;;  %2154 = vmatpush.bf16.msra.mxu3 %v3443_v54 }
 0xecf   :  { %2142 = vmatpush.bf16.msra.mxu2 %v3446_v59  ;;  %2155 = vmatpush.bf16.msra.mxu3 %v3449_v60 }
 0xed2   :  { %2143 = vmatmul.bf16.vlgmr.msra.gmra.mxu2 %v2061_v33  ;;  %2156 = vmatmul.bf16.vlgmr.msra.gmra.mxu3 %v2061_v33 }
 0xed3   :  { %2231 = vmatpush.bf16.msrb.mxu2 %v3458_v12  ;;  %2244 = vmatpush.bf16.msrb.mxu3 %v3460_v18 }
 0xed7   :  { %2232 = vmatpush.bf16.msrb.mxu2 %v3463_v21  ;;  %2245 = vmatpush.bf16.msrb.mxu3 %v3467_v22 }
 0xedb   :  { %2233 = vmatpush.bf16.msrb.mxu2 %v3471_v31  ;;  %2246 = vmatpush.bf16.msrb.mxu3 %v3475_v32 }
 0xedf   :  { %2234 = vmatpush.bf16.msrb.mxu2 %v3479_v43  ;;  %2247 = vmatpush.bf16.msrb.mxu3 %v3483_v45 }
 0xee3   :  { %2235 = vmatpush.bf16.msrb.mxu2 %v3488_v57  ;;  %2248 = vmatpush.bf16.msrb.mxu3 %v3492_v58 }
 0xee7   :  { %2236 = vmatpush.bf16.msrb.mxu2 %v3496_v5  ;;  %2249 = vmatpush.bf16.msrb.mxu3 %v3500_v6 }
 0xeeb   :  { %2237 = vmatpush.bf16.msrb.mxu2 %v3506_v13  ;;  %2250 = vmatpush.bf16.msrb.mxu3 %v3512_v14 }
 0xeef   :  { %2238 = vmatpush.bf16.msrb.mxu2 %v3516_v38  ;;  %2251 = vmatpush.bf16.msrb.mxu3 %v3520_v39 }
 0xef3   :  { %2310 = vmatpush.bf16.msra.mxu2 %v3522_v40  ;;  %2323 = vmatpush.bf16.msra.mxu3 %v3524_v44 }
 0xef7   :  { %2311 = vmatpush.bf16.msra.mxu2 %v3536_v55  ;;  %2324 = vmatpush.bf16.msra.mxu3 %v3538_v56 }
 0xefb   :  { %2312 = vmatpush.bf16.msra.mxu2 %v3547_v2  ;;  %2325 = vmatpush.bf16.msra.mxu3 %v3549_v3 }
 0xeff   :  { %2313 = vmatpush.bf16.msra.mxu2 %v3555_v61  ;;  %2326 = vmatpush.bf16.msra.mxu3 %v3557_v10 }
 0xf03   :  { %2314 = vmatpush.bf16.msra.mxu2 %v3563_v26  ;;  %2327 = vmatpush.bf16.msra.mxu3 %v3565_v27 }
 0xf07   :  { %2315 = vmatpush.bf16.msra.mxu2 %v3571_v46  ;;  %2328 = vmatpush.bf16.msra.mxu3 %v4622_v62 }
 0xf0b   :  { %2316 = vmatpush.bf16.msra.mxu2 %v4623_v51  ;;  %2329 = vmatpush.bf16.msra.mxu3 %v4624_v34 }
 0xf0f   :  { %2317 = vmatpush.bf16.msra.mxu2 %v4625_v50  ;;  %2330 = vmatpush.bf16.msra.mxu3 %v4626_v0 }
 0xf34   :  { %v1992_v52 = vpop.f32.mrf.mxu2  ;;  %v2005_v15 = vpop.f32.mrf.mxu3 }
 0xf3c   :  { %v1994_v7 = vpop.f32.mrf.mxu2  ;;  %v2007_v25 = vpop.f32.mrf.mxu3 }
 0xf45   :  { %v2071_v11 = vpop.f32.mrf.mxu2  ;;  %v2084_v8 = vpop.f32.mrf.mxu3 }
 0xf46   :  { %v2072_v37 = vadd.f32 %v2071_v11, %v1992_v52  ;;  %v2085_v4 = vadd.f32 %v2084_v8, %v2005_v15  ;;  %v2134_v52 = vld [vmem:[#allocation2 + $0x15] ss:$8 sm:$0x3] }
 0xf48   :  { %v2088_v49 = vadd.f32 %v2072_v37, %v3653_v9  ;;  %v2089_v63 = vadd.f32 %v2085_v4, %v4627_v20 }
 0xf4a   :  { %3081 = vtanh.f32 %v2088_v49 }
 0xf4b   :  { %3083 = vtanh.f32 %v2089_v63 }
 0xf4d   :  { %v2073_v19 = vpop.f32.mrf.mxu2  ;;  %v2086_v33 = vpop.f32.mrf.mxu3 }
 0xf50   :  { %v3082_v34 = vpop.eup %3081 }
 0xf51   :  { %v3084_v50 = vpop.eup %3083  ;;  %2096 = vrot.lane.b32.xlu2 %v3082_v34, %s3314_s27  ;;  %v2092_v19 = vmul.f32 0.5, %v3082_v34 }
 0xf52   :  { %v2094_v0 = vmul.f32 0.5, %v3084_v50 }
 0xf53   :  { %v2093_v33 = vadd.f32 0.5, %v2092_v19 }
 0xf54   :  { %v2095_v51 = vadd.f32 0.5, %v2094_v0 }
 0xf55   :  { %v2157_v7 = vpop.f32.mrf.mxu3  ;;  %v2144_v25 = vpop.f32.mrf.mxu2 }
 0xf56   :  { %v2163_v62 = vrot.slane %v2157_v7, 7  ;;  %2098 = vrot.lane.b32.xlu0 %v2095_v51, %s3314_s27  ;;  %v2100_v20 = vmul.f32 %v2095_v51, %v4357_v28 }
 0xf58   :  { %v2164_v15 = vsel %vm466_vm1, %v2144_v25, %v2163_v62 }
 0xf59   :  { %v2166_v11 = vadd.f32 %v2164_v15, %v2134_v52 }
 0xf5b   :  { %3085 = vtanh.f32 %v2166_v11  ;;  %v2169_v8 = vrot.slane %v2166_v11, 1 }
 0xf5d   :  { %v2146_v37 = vpop.f32.mrf.mxu2  ;;  %v2159_v4 = vpop.f32.mrf.mxu3  ;;  %3087 = vtanh.f32 %v2169_v8 }
 0xf61   :  { %v3086_v49 = vpop.eup %3085 }
 0xf62   :  { %2176 = vrot.lane.b32.xlu1 %v3086_v49, %s3314_s27  ;;  %v2172_v34 = vmul.f32 0.5, %v3086_v49 }
 0xf63   :  { %v3088_v63 = vpop.eup %3087 }
 0xf64   :  { %v2174_v50 = vmul.f32 0.5, %v3088_v63  ;;  %v2173_v28 = vadd.f32 0.5, %v2172_v34 }
 0xf66   :  { %v2175_v0 = vadd.f32 0.5, %v2174_v50 }
 0xf68   :  { %2178 = vrot.lane.b32.xlu2 %v2175_v0, %s3314_s27 }
 0xfab   :  { %v2097_v7 = vpop.permute.xlu2 %2096 }
 0xfac   :  { %v2101_v62 = vmul.f32 %v2097_v7, %v2093_v33 }
 0xfae   :  { %v4420_v25 = vadd.f32 %v2101_v62, %v2100_v20  ;;  %v2180_v20 = vmul.f32 %v2175_v0, %v4363_v1 }
 0xfb0   :  { %3089 = vtanh.f32 %v4420_v25 }
 0xfb6   :  { %v3090_v52 = vpop.eup %3089 }
 0xfc2   :  { %v2179_v63 = vpop.permute.xlu2 %2178 }
 0xfc8   :  { %v2099_v15 = vpop.permute.xlu0 %2098 }
 0xfc9   :  { %v2104_v11 = vmul.f32 %v3090_v52, %v2099_v15 }
 0xfcb   :  { %2105 = vst [vmem:[#allocation3 + $0xc] sm:$0x1] %v2104_v11  ;;  %v2106_v8 = vpack.c.bf16 %v2104_v11, %v2104_v11 }
 0xfcd   :  { %2115 = vmatmul.bf16.vlgmr.msra.gmra.mxu0 %v2106_v8  ;;  %2128 = vmatmul.bf16.vlgmr.msra.gmra.mxu1 %v2106_v8 }
 0xfce   :  { %2259 = vmatpush.bf16.msra.mxu0 %v3405_v16  ;;  %2272 = vmatpush.bf16.msra.mxu1 %v3407_v17 }
 0xfd2   :  { %2260 = vmatpush.bf16.msra.mxu0 %v3410_v23  ;;  %2273 = vmatpush.bf16.msra.mxu1 %v3413_v24 }
 0xfd4   :  { %v2177_v51 = vpop.permute.xlu1 %2176 }
 0xfd5   :  { %v2181_v37 = vmul.f32 %v2177_v51, %v2173_v28 }
 0xfd6   :  { %2261 = vmatpush.bf16.msra.mxu0 %v3416_v29  ;;  %2274 = vmatpush.bf16.msra.mxu1 %v3419_v30 }
 0xfd7   :  { %v4430_v4 = vadd.f32 %v2181_v37, %v2180_v20 }
 0xfd9   :  { %3091 = vtanh.f32 %v4430_v4 }
 0xfda   :  { %2262 = vmatpush.bf16.msra.mxu0 %v3422_v35  ;;  %2275 = vmatpush.bf16.msra.mxu1 %v3425_v36 }
 0xfde   :  { %2263 = vmatpush.bf16.msra.mxu0 %v3428_v41  ;;  %2276 = vmatpush.bf16.msra.mxu1 %v3431_v42 }
 0xfdf   :  { %v3092_v49 = vpop.eup %3091 }
 0xfe0   :  { %v2184_v1 = vmul.f32 %v3092_v49, %v2179_v63 }
 0xfe2   :  { %v2185_v50 = vpack.c.bf16 %v2184_v1, %v2184_v1  ;;  %2264 = vmatpush.bf16.msra.mxu0 %v3434_v47  ;;  %2277 = vmatpush.bf16.msra.mxu1 %v3437_v48 }
 0xfe4   :  { %2194 = vmatmul.bf16.vlgmr.msrb.gmra.mxu0 %v2185_v50  ;;  %2207 = vmatmul.bf16.vlgmr.msrb.gmra.mxu1 %v2185_v50 }
 0xfe6   :  { %2265 = vmatpush.bf16.msra.mxu0 %v3440_v53  ;;  %2278 = vmatpush.bf16.msra.mxu1 %v3443_v54 }
 0xfea   :  { %2266 = vmatpush.bf16.msra.mxu0 %v3446_v59  ;;  %2279 = vmatpush.bf16.msra.mxu1 %v3449_v60 }
 0xfee   :  { %2355 = vmatpush.bf16.msrb.mxu0 %v3458_v12  ;;  %2368 = vmatpush.bf16.msrb.mxu1 %v3460_v18  ;;  %v4628_v12 = vld [vmem:[#allocation21_spill] sm:$0xff]  ;;  %v4629_v18 = vld [vmem:[#allocation22_spill] sm:$0xff] }
 0xff2   :  { %2356 = vmatpush.bf16.msrb.mxu0 %v3463_v21  ;;  %2369 = vmatpush.bf16.msrb.mxu1 %v3467_v22  ;;  %v4630_v21 = vld [vmem:[#allocation23_spill] sm:$0xff]  ;;  %v4631_v22 = vld [vmem:[#allocation24_spill] sm:$0xff] }
 0xff4   :  { %2267 = vmatmul.bf16.vlgmr.msra.gmra.mxu0 %v2185_v50  ;;  %2280 = vmatmul.bf16.vlgmr.msra.gmra.mxu1 %v2185_v50 }
 0xff6   :  { %2357 = vmatpush.bf16.msrb.mxu0 %v3471_v31  ;;  %2370 = vmatpush.bf16.msrb.mxu1 %v3475_v32  ;;  %v4632_v31 = vld [vmem:[#allocation25_spill] sm:$0xff] }
 0xffa   :  { %2358 = vmatpush.bf16.msrb.mxu0 %v3479_v43  ;;  %2371 = vmatpush.bf16.msrb.mxu1 %v3483_v45 }
 0xffe   :  { %2359 = vmatpush.bf16.msrb.mxu0 %v3488_v57  ;;  %2372 = vmatpush.bf16.msrb.mxu1 %v3492_v58 }
0x1002   :  { %2360 = vmatpush.bf16.msrb.mxu0 %v3496_v5  ;;  %2373 = vmatpush.bf16.msrb.mxu1 %v3500_v6 }
0x1006   :  { %2361 = vmatpush.bf16.msrb.mxu0 %v3506_v13  ;;  %2374 = vmatpush.bf16.msrb.mxu1 %v3512_v14 }
0x100a   :  { %2362 = vmatpush.bf16.msrb.mxu0 %v3516_v38  ;;  %2375 = vmatpush.bf16.msrb.mxu1 %v3520_v39  ;;  %v4633_v38 = vld [vmem:[#allocation26_spill] sm:$0xff] }
0x100e   :  { %2434 = vmatpush.bf16.msra.mxu0 %v3522_v40  ;;  %2447 = vmatpush.bf16.msra.mxu1 %v3524_v44 }
0x1012   :  { %2435 = vmatpush.bf16.msra.mxu0 %v3536_v55  ;;  %2448 = vmatpush.bf16.msra.mxu1 %v3538_v56 }
0x1016   :  { %2436 = vmatpush.bf16.msra.mxu0 %v3547_v2  ;;  %2449 = vmatpush.bf16.msra.mxu1 %v3549_v3 }
0x101a   :  { %2437 = vmatpush.bf16.msra.mxu0 %v3555_v61  ;;  %2450 = vmatpush.bf16.msra.mxu1 %v3557_v10 }
0x101e   :  { %2438 = vmatpush.bf16.msra.mxu0 %v3563_v26  ;;  %2451 = vmatpush.bf16.msra.mxu1 %v3565_v27  ;;  %v2258_v27 = vld [vmem:[#allocation2 + $0x16] ss:$8 sm:$0x3] }
0x1022   :  { %2439 = vmatpush.bf16.msra.mxu0 %v3571_v46  ;;  %2452 = vmatpush.bf16.msra.mxu1 %v4628_v12 }
0x1026   :  { %2440 = vmatpush.bf16.msra.mxu0 %v4629_v18  ;;  %2453 = vmatpush.bf16.msra.mxu1 %v4630_v21 }
0x102a   :  { %2441 = vmatpush.bf16.msra.mxu0 %v4631_v22  ;;  %2454 = vmatpush.bf16.msra.mxu1 %v4632_v31 }
0x104a   :  { %v2116_v32 = vpop.f32.mrf.mxu0  ;;  %v2129_v43 = vpop.f32.mrf.mxu1 }
0x1052   :  { %v2118_v45 = vpop.f32.mrf.mxu0  ;;  %v2131_v57 = vpop.f32.mrf.mxu1 }
0x1061   :  { %v2195_v58 = vpop.f32.mrf.mxu0  ;;  %v2208_v5 = vpop.f32.mrf.mxu1 }
0x1062   :  { %v2196_v6 = vadd.f32 %v2195_v58, %v2116_v32  ;;  %v2209_v13 = vadd.f32 %v2208_v5, %v2129_v43 }
0x1064   :  { %v2212_v14 = vadd.f32 %v2196_v6, %v3653_v9  ;;  %v2213_v39 = vadd.f32 %v2209_v13, %v4633_v38  ;;  %v2382_v6 = vld [vmem:[#allocation2 + $0x17] ss:$8 sm:$0x3] }
0x1066   :  { %3093 = vtanh.f32 %v2212_v14 }
0x1067   :  { %3095 = vtanh.f32 %v2213_v39 }
0x1069   :  { %v2197_v40 = vpop.f32.mrf.mxu0  ;;  %v2210_v44 = vpop.f32.mrf.mxu1 }
0x106c   :  { %v3094_v55 = vpop.eup %3093 }
0x106d   :  { %v3096_v56 = vpop.eup %3095  ;;  %2220 = vrot.lane.b32.xlu0 %v3094_v55, %s3314_s27  ;;  %v2216_v37 = vmul.f32 0.5, %v3094_v55 }
0x106e   :  { %v2218_v2 = vmul.f32 0.5, %v3096_v56 }
0x106f   :  { %v2217_v63 = vadd.f32 0.5, %v2216_v37 }
0x1070   :  { %v2219_v3 = vadd.f32 0.5, %v2218_v2 }
0x1071   :  { %v2281_v61 = vpop.f32.mrf.mxu1  ;;  %v2268_v10 = vpop.f32.mrf.mxu0 }
0x1072   :  { %v2287_v26 = vrot.slane %v2281_v61, 7  ;;  %2222 = vrot.lane.b32.xlu1 %v2219_v3, %s3314_s27  ;;  %v2224_v50 = vmul.f32 %v2219_v3, %v4420_v25 }
0x1074   :  { %v2288_v46 = vsel %vm466_vm1, %v2268_v10, %v2287_v26 }
0x1075   :  { %v2290_v0 = vadd.f32 %v2288_v46, %v2258_v27 }
0x1077   :  { %3097 = vtanh.f32 %v2290_v0  ;;  %v2293_v19 = vrot.slane %v2290_v0, 1 }
0x1079   :  { %v2270_v33 = vpop.f32.mrf.mxu0  ;;  %v2283_v7 = vpop.f32.mrf.mxu1  ;;  %3099 = vtanh.f32 %v2293_v19 }
0x107d   :  { %v3098_v62 = vpop.eup %3097 }
0x107e   :  { %2300 = vrot.lane.b32.xlu2 %v3098_v62, %s3314_s27  ;;  %v2296_v8 = vmul.f32 0.5, %v3098_v62 }
0x107f   :  { %v3100_v52 = vpop.eup %3099 }
0x1080   :  { %v2298_v15 = vmul.f32 0.5, %v3100_v52  ;;  %v2297_v34 = vadd.f32 0.5, %v2296_v8 }
0x1082   :  { %v2299_v11 = vadd.f32 0.5, %v2298_v15 }
0x1084   :  { %2302 = vrot.lane.b32.xlu0 %v2299_v11, %s3314_s27  ;;  %v2304_v51 = vmul.f32 %v2299_v11, %v4430_v4 }
0x10d8   :  { %v2301_v28 = vpop.permute.xlu2 %2300 }
0x10d9   :  { %v2305_v20 = vmul.f32 %v2301_v28, %v2297_v34 }
0x10db   :  { %v4483_v49 = vadd.f32 %v2305_v20, %v2304_v51 }
0x10df   :  { %v2221_v1 = vpop.permute.xlu0 %2220 }
0x10e0   :  { %v2225_v12 = vmul.f32 %v2221_v1, %v2217_v63 }
0x10e2   :  { %v4486_v18 = vadd.f32 %v2225_v12, %v2224_v50 }
0x10e4   :  { %3101 = vtanh.f32 %v4486_v18  ;;  %v2223_v22 = vpop.permute.xlu1 %2222 }
0x10e5   :  { %3103 = vtanh.f32 %v4483_v49 }
0x10ea   :  { %v3102_v21 = vpop.eup %3101 }
0x10eb   :  { %v2228_v31 = vmul.f32 %v3102_v21, %v2223_v22  ;;  %v3104_v4 = vpop.eup %3103 }
0x10ed   :  { %2229 = vst [vmem:[#allocation3 + $0xd] sm:$0x1] %v2228_v31  ;;  %v2230_v32 = vpack.c.bf16 %v2228_v31, %v2228_v31 }
0x10ef   :  { %2239 = vmatmul.bf16.vlgmr.msrb.gmra.mxu2 %v2230_v32  ;;  %2252 = vmatmul.bf16.vlgmr.msrb.gmra.mxu3 %v2230_v32 }
0x10f0   :  { %2383 = vmatpush.bf16.msrb.mxu2 %v3405_v16  ;;  %2396 = vmatpush.bf16.msrb.mxu3 %v3407_v17 }
0x10f4   :  { %2384 = vmatpush.bf16.msrb.mxu2 %v3410_v23  ;;  %2397 = vmatpush.bf16.msrb.mxu3 %v3413_v24 }
0x10f6   :  { %v2303_v25 = vpop.permute.xlu0 %2302 }
0x10f7   :  { %v2308_v43 = vmul.f32 %v3104_v4, %v2303_v25 }
0x10f8   :  { %2385 = vmatpush.bf16.msrb.mxu2 %v3416_v29  ;;  %2398 = vmatpush.bf16.msrb.mxu3 %v3419_v30 }
0x10f9   :  { %v2309_v16 = vpack.c.bf16 %v2308_v43, %v2308_v43 }
0x10fc   :  { %2386 = vmatpush.bf16.msrb.mxu2 %v3422_v35  ;;  %2399 = vmatpush.bf16.msrb.mxu3 %v3425_v36 }
0x10ff   :  { %2318 = vmatmul.bf16.vlgmr.msra.gmra.mxu2 %v2309_v16  ;;  %2331 = vmatmul.bf16.vlgmr.msra.gmra.mxu3 %v2309_v16 }
0x1100   :  { %2387 = vmatpush.bf16.msrb.mxu2 %v3428_v41  ;;  %2400 = vmatpush.bf16.msrb.mxu3 %v3431_v42 }
0x1104   :  { %2388 = vmatpush.bf16.msrb.mxu2 %v3434_v47  ;;  %2401 = vmatpush.bf16.msrb.mxu3 %v3437_v48 }
0x1108   :  { %2389 = vmatpush.bf16.msrb.mxu2 %v3440_v53  ;;  %2402 = vmatpush.bf16.msrb.mxu3 %v3443_v54 }
0x110c   :  { %2390 = vmatpush.bf16.msrb.mxu2 %v3446_v59  ;;  %2403 = vmatpush.bf16.msrb.mxu3 %v3449_v60 }
0x110f   :  { %2391 = vmatmul.bf16.vlgmr.msrb.gmra.mxu2 %v2309_v16  ;;  %2404 = vmatmul.bf16.vlgmr.msrb.gmra.mxu3 %v2309_v16 }
0x1172   :  { %v2240_v17 = vpop.f32.mrf.mxu2  ;;  %v2253_v23 = vpop.f32.mrf.mxu3 }
0x117a   :  { %v2242_v24 = vpop.f32.mrf.mxu2  ;;  %v2255_v29 = vpop.f32.mrf.mxu3 }
0x117b   :  { %v2917_v29 = vld [vmem:[#allocation13 + $0x38] sm:$0xff] }
0x117c   :  { %2549 = vmatpush.bf16.msra.mxu2 %v2917_v29 }
0x1182   :  { %v2319_v30 = vpop.f32.mrf.mxu2  ;;  %v2332_v35 = vpop.f32.mrf.mxu3 }
0x1183   :  { %v2320_v36 = vadd.f32 %v2319_v30, %v2240_v17  ;;  %v2333_v41 = vadd.f32 %v2332_v35, %v2253_v23  ;;  %v2916_v30 = vld [vmem:[#allocation13 + $0x30] sm:$0xff]  ;;  %v2915_v35 = vld [vmem:[#allocation13 + $0x28] sm:$0xff] }
0x1184   :  { %2550 = vmatpush.bf16.msra.mxu2 %v2916_v30 }
0x1185   :  { %v2336_v42 = vadd.f32 %v2320_v36, %v3653_v9  ;;  %v2337_v47 = vadd.f32 %v2333_v41, %v4633_v38 }
0x1187   :  { %3105 = vtanh.f32 %v2336_v42 }
0x1188   :  { %3107 = vtanh.f32 %v2337_v47  ;;  %2551 = vmatpush.bf16.msra.mxu2 %v2915_v35  ;;  %v2912_v47 = vld [vmem:[#allocation13 + $0x10] sm:$0xff] }
0x118a   :  { %v2321_v48 = vpop.f32.mrf.mxu2  ;;  %v2334_v53 = vpop.f32.mrf.mxu3 }
0x118d   :  { %v3106_v54 = vpop.eup %3105 }
0x118e   :  { %v3108_v59 = vpop.eup %3107  ;;  %2344 = vrot.lane.b32.xlu1 %v3106_v54, %s3314_s27  ;;  %v2340_v61 = vmul.f32 0.5, %v3106_v54  ;;  %v2911_v54 = vld [vmem:[#allocation13 + $0x8] sm:$0xff] }
0x118f   :  { %v2342_v60 = vmul.f32 0.5, %v3108_v59 }
0x1190   :  { %v2341_v10 = vadd.f32 0.5, %v2340_v61 }
0x1191   :  { %v2343_v45 = vadd.f32 0.5, %v2342_v60  ;;  %v2910_v60 = vld [vmem:[#allocation13] sm:$0xff] }
0x1192   :  { %v2405_v57 = vpop.f32.mrf.mxu3  ;;  %v2392_v58 = vpop.f32.mrf.mxu2 }
0x1193   :  { %v2411_v5 = vrot.slane %v2405_v57, 7  ;;  %2346 = vrot.lane.b32.xlu2 %v2343_v45, %s3314_s27  ;;  %v2348_v27 = vmul.f32 %v2343_v45, %v4486_v18 }
0x1195   :  { %v2412_v13 = vsel %vm466_vm1, %v2392_v58, %v2411_v5  ;;  %v2478_v5 = vld [vmem:[#allocation3] sm:$0xff] }
0x1196   :  { %v2414_v14 = vadd.f32 %v2412_v13, %v2382_v6 }
0x1198   :  { %3109 = vtanh.f32 %v2414_v14  ;;  %v2417_v39 = vrot.slane %v2414_v14, 1  ;;  %v2930_v14 = vld [vmem:[%s4536_s8] ss:$0 sm:$0xff]  ;;  %s3320_s8 = smov [#allocation15]  }
0x1199   :  { %s2593_s1 = sshll.u32 %s3320_s8, 4  ;;  %s2594_s1 = int_to_ptr.vmem [resolvable:$true] %s2593_s1 }
0x119a   :  { %v2394_v40 = vpop.f32.mrf.mxu2  ;;  %v2407_v44 = vpop.f32.mrf.mxu3  ;;  %3111 = vtanh.f32 %v2417_v39 }
0x119e   :  { %v3110_v55 = vpop.eup %3109 }
0x119f   :  { %2424 = vrot.lane.b32.xlu0 %v3110_v55, %s3314_s27  ;;  %v2420_v62 = vmul.f32 0.5, %v3110_v55 }
0x11a0   :  { %v3112_v56 = vpop.eup %3111 }
0x11a1   :  { %v2422_v2 = vmul.f32 0.5, %v3112_v56  ;;  %v2421_v15 = vadd.f32 0.5, %v2420_v62 }
0x11a3   :  { %v2423_v3 = vadd.f32 0.5, %v2422_v2 }
0x11a5   :  { %2426 = vrot.lane.b32.xlu1 %v2423_v3, %s3314_s27  ;;  %v2428_v8 = vmul.f32 %v2423_v3, %v4483_v49 }
0x11ed   :  { %v2347_v33 = vpop.permute.xlu2 %2346 }
0x1200   :  { %v2345_v26 = vpop.permute.xlu1 %2344 }
0x1201   :  { %v2349_v46 = vmul.f32 %v2345_v26, %v2341_v10 }
0x1203   :  { %v2350_v0 = vadd.f32 %v2349_v46, %v2348_v27 }
0x1205   :  { %3113 = vtanh.f32 %v2350_v0 }
0x120b   :  { %v3114_v19 = vpop.eup %3113 }
0x120c   :  { %v2352_v7 = vmul.f32 %v3114_v19, %v2347_v33 }
0x120e   :  { %2353 = vst [vmem:[#allocation3 + $0xe] sm:$0x1] %v2352_v7  ;;  %v2354_v52 = vpack.c.bf16 %v2352_v7, %v2352_v7 }
0x1210   :  { %2363 = vmatmul.bf16.vlgmr.msrb.gmra.mxu0 %v2354_v52  ;;  %2376 = vmatmul.bf16.vlgmr.msrb.gmra.mxu1 %v2354_v52 }
0x1211   :  { %v2425_v11 = vpop.permute.xlu0 %2424 }
0x1212   :  { %v2429_v34 = vmul.f32 %v2425_v11, %v2421_v15 }
0x1214   :  { %v2430_v28 = vadd.f32 %v2429_v34, %v2428_v8 }
0x1216   :  { %3115 = vtanh.f32 %v2430_v28 }
0x1217   :  { %v2427_v20 = vpop.permute.xlu1 %2426 }
0x121c   :  { %v3116_v51 = vpop.eup %3115 }
0x121d   :  { %v2432_v37 = vmul.f32 %v3116_v51, %v2427_v20 }
0x121f   :  { %v2433_v63 = vpack.c.bf16 %v2432_v37, %v2432_v37 }
0x1221   :  { %2442 = vmatmul.bf16.vlgmr.msra.gmra.mxu0 %v2433_v63  ;;  %2455 = vmatmul.bf16.vlgmr.msra.gmra.mxu1 %v2433_v63 }
0x128d   :  { %v2364_v1 = vpop.f32.mrf.mxu0  ;;  %v2377_v50 = vpop.f32.mrf.mxu1 }
0x1295   :  { %v2366_v12 = vpop.f32.mrf.mxu0  ;;  %v2379_v18 = vpop.f32.mrf.mxu1 }
0x129e   :  { %v2443_v21 = vpop.f32.mrf.mxu0  ;;  %v2456_v22 = vpop.f32.mrf.mxu1 }
0x129f   :  { %v2444_v31 = vadd.f32 %v2443_v21, %v2364_v1  ;;  %v2457_v32 = vadd.f32 %v2456_v22, %v2377_v50 }
0x12a1   :  { %v2460_v25 = vadd.f32 %v2444_v31, %v3653_v9  ;;  %v2461_v49 = vadd.f32 %v2457_v32, %v4633_v38  ;;  %v2914_v9 = vld [vmem:[#allocation13 + $0x20] sm:$0xff]  ;;  %v2913_v38 = vld [vmem:[#allocation13 + $0x18] sm:$0xff] }
0x12a2   :  { %2552 = vmatpush.bf16.msra.mxu2 %v2914_v9 }
0x12a3   :  { %3117 = vtanh.f32 %v2460_v25 }
0x12a4   :  { %3119 = vtanh.f32 %v2461_v49 }
0x12a6   :  { %v2445_v4 = vpop.f32.mrf.mxu0  ;;  %v2458_v43 = vpop.f32.mrf.mxu1  ;;  %2553 = vmatpush.bf16.msra.mxu2 %v2913_v38 }
0x12a9   :  { %v3118_v16 = vpop.eup %3117 }
0x12aa   :  { %v3120_v17 = vpop.eup %3119  ;;  %2468 = vrot.lane.b32.xlu2 %v3118_v16, %s3314_s27  ;;  %v2464_v36 = vmul.f32 0.5, %v3118_v16  ;;  %2554 = vmatpush.bf16.msra.mxu2 %v2912_v47 }
0x12ab   :  { %v2466_v23 = vmul.f32 0.5, %v3120_v17 }
0x12ac   :  { %v2465_v41 = vadd.f32 0.5, %v2464_v36 }
0x12ad   :  { %v2467_v24 = vadd.f32 0.5, %v2466_v23 }
0x12ae   :  { %2555 = vmatpush.bf16.msra.mxu2 %v2911_v54 }
0x12af   :  { %2470 = vrot.lane.b32.xlu0 %v2467_v24, %s3314_s27  ;;  %v2472_v48 = vmul.f32 %v2467_v24, %v2350_v0 }
0x12b2   :  { %2556 = vmatpush.bf16.msra.mxu2 %v2910_v60 }
0x1304   :  { %v2469_v42 = vpop.permute.xlu2 %2468 }
0x1305   :  { %v2473_v53 = vmul.f32 %v2469_v42, %v2465_v41 }
0x1307   :  { %v2474_v59 = vadd.f32 %v2473_v53, %v2472_v48 }
0x1309   :  { %3121 = vtanh.f32 %v2474_v59 }
0x130f   :  { %v3122_v45 = vpop.eup %3121 }
0x1321   :  { %v2471_v57 = vpop.permute.xlu0 %2470 }
0x1322   :  { %v2476_v58 = vmul.f32 %v3122_v45, %v2471_v57 }
0x1324   :  { %2477 = vst [vmem:[#allocation3 + $0xf] sm:$0x1] %v2476_v58 }
0x132b   :  { %v2479_v6 = vld [vmem:[#allocation3 + $0x8] sm:$0xff] }
0x132c   :  { %v2480_v13 = vpack.c.bf16 %v2479_v6, %v2478_v5 }
0x132e   :  { %2557 = vmatmul.bf16.vlgmr.msra.gmra.mxu2 %v2480_v13 }
0x13b1   :  { %v2558_v39 = vpop.f32.mrf.mxu2 }
0x13b2   :  { %v2559_v40 = vadd.f32 %v2930_v14, %v2558_v39 }
0x13b4   :  { %v2563_v44 = vmax.f32 %v2559_v40, 0.0 }
0x13b6   :  { %2565 = vmax.xlane.f32.xlu1 %v2563_v44 }
0x13b9   :  { %v2560_v55 = vpop.f32.mrf.mxu2 }
0x13ba   :  { %v2561_v56 = vadd.f32 %v2930_v14, %v2560_v55 }
0x13bc   :  { %v2564_v2 = vmax.f32 %v2561_v56, 0.0 }
0x13be   :  { %2567 = vmax.xlane.f32.xlu2 %v2564_v2 }
0x1429   :  { %v2566_v3 = vpop.xlane.xlu1 %2565 }
0x142a   :  { %v2569_v61 = vsub.f32 %v2563_v44, %v2566_v3 }
0x142c   :  { %v2571_v10 = vmul.f32 1.442695, %v2569_v61 }
0x142e   :  { %3123 = vpow2.f32 %v2571_v10 }
0x1431   :  { %v2568_v26 = vpop.xlane.xlu2 %2567 }
0x1432   :  { %v2570_v27 = vsub.f32 %v2564_v2, %v2568_v26 }
0x1434   :  { %v3124_v46 = vpop.eup %3123  ;;  %v2573_v0 = vmul.f32 1.442695, %v2570_v27 }
0x1435   :  { %2575 = vadd.xlane.f32.xlu0 %v3124_v46 }
0x1436   :  { %3125 = vpow2.f32 %v2573_v0 }
0x143c   :  { %v3126_v19 = vpop.eup %3125 }
0x143d   :  { %2577 = vadd.xlane.f32.xlu2 %v3126_v19 }
0x14a8   :  { %v2576_v33 = vpop.xlane.xlu0 %2575 }
0x14a9   :  { %3127 = vlog2.f32 %v2576_v33 }
0x14af   :  { %v3128_v7 = vpop.eup %3127 }
0x14b0   :  { %v2580_v62 = vmul.f32 0.6931472, %v3128_v7  ;;  %v2578_v52 = vpop.xlane.xlu2 %2577 }
0x14b1   :  { %3129 = vlog2.f32 %v2578_v52 }
0x14b2   :  { %v2583_v15 = vadd.f32 %v2580_v62, %v2566_v3 }
0x14b4   :  { %v2585_v11 = vsub.f32 %v2563_v44, %v2583_v15 }
0x14b6   :  { %2587 = vst [vmem:[#allocation15] sm:$0xff] %v2585_v11 }
0x14b7   :  { %v3130_v8 = vpop.eup %3129 }
0x14b8   :  { %v2582_v34 = vmul.f32 0.6931472, %v3130_v8 }
0x14ba   :  { %v2584_v28 = vadd.f32 %v2582_v34, %v2568_v26 }
0x14bc   :  { %v2586_v51 = vsub.f32 %v2564_v2, %v2584_v28 }
0x14be   :  { %2588 = vst [vmem:[#allocation15 + $0x8] sm:$0xff] %v2586_v51 }
0x14bf   :  { %2601 = dma.vmem_to_hbm [thread:$0]  %s2594_s1, 256, %s2596_s23, [#allocation6], %s3310_s17, %s3310_s17, %s3311_s18  }
0x14c0   :  { %3307 = dma.done.wait [#allocation6], 256  }
0x14c1   :  { %3308 = vsyncadd [#allocation6], 4294967040 }
0x14c2   :  { %2606 = vsyncpa [#allocation5], 1 }
0x14c3   :  { %2607 = vsyncpa [#allocation8], 1 }
0x14c4   :  { %2608 = vsyncpa [#allocation11], 1 }
0x14c5   :  { %2609 = vsyncpa [#allocation14], 1 }
0x14c6   :  { %2610 = vsyncpa [#allocation6], 1 }

</bundles_post_ra>
